<compile_context>
chip_gen: v6e
topology: v6e:2x2x1
jax: 0.10.0
libtpu: 0.0.40
codegen_flags: <defaults>
</compile_context>

<pallas_src>
import math
import functools

import numpy as np
import jax
import jax.numpy as jnp
from jax.experimental import pallas as pl
from jax.experimental.pallas import tpu as pltpu  # noqa: F401  (TPU backend)


NEG_INF = -1e9


# ----------------------------- config / params -----------------------------

class JointModelConfig:
    num_hidden_layers = 2
    num_attention_heads = 2
    num_key_value_heads = 1
    head_dim = 16
    hidden_size = 32
    intermediate_size = 64
    attn_softclamp = 50.0
    rope_base = 10000.0
    rms_eps = 1e-6
    mixture_names = ("vlm", "proprio", "action")


def init_params(key, cfg):
    params = {}
    for name in cfg.mixture_names:
        layers = []
        for _ in range(cfg.num_hidden_layers):
            key, kq, kk, kv, ko, kg, ku, kd = jax.random.split(key, 8)
            layers.append(dict(
                q_w=0.02 * jax.random.normal(
                    kq, (cfg.hidden_size, cfg.num_attention_heads * cfg.head_dim), jnp.float32),
                k_w=0.02 * jax.random.normal(
                    kk, (cfg.hidden_size, cfg.num_key_value_heads * cfg.head_dim), jnp.float32),
                v_w=0.02 * jax.random.normal(
                    kv, (cfg.hidden_size, cfg.num_key_value_heads * cfg.head_dim), jnp.float32),
                o_w=0.02 * jax.random.normal(
                    ko, (cfg.num_attention_heads * cfg.head_dim, cfg.hidden_size), jnp.float32),
                gate_w=0.02 * jax.random.normal(
                    kg, (cfg.hidden_size, cfg.intermediate_size), jnp.float32),
                up_w=0.02 * jax.random.normal(
                    ku, (cfg.hidden_size, cfg.intermediate_size), jnp.float32),
                down_w=0.02 * jax.random.normal(
                    kd, (cfg.intermediate_size, cfg.hidden_size), jnp.float32),
                input_norm=jnp.zeros((cfg.hidden_size,), jnp.float32),
                post_norm=jnp.zeros((cfg.hidden_size,), jnp.float32),
            ))
        params[name] = dict(
            layers=layers,
            final_norm=jnp.zeros((cfg.hidden_size,), jnp.float32),
        )
    return params


def rotary_cos_sin(position_ids, head_dim, base):
    """(B, S) int positions -> (B, S, Dh) cos / sin tables (reference path)."""
    inv_freq = 1.0 / (base ** (jnp.arange(0, head_dim, 2, dtype=jnp.float32) / head_dim))
    freqs = position_ids.astype(jnp.float32)[..., None] * inv_freq[None, None, :]
    emb = jnp.concatenate([freqs, freqs], axis=-1)
    return jnp.cos(emb), jnp.sin(emb)


# ----------------------------- fused Pallas kernel -----------------------------

def _make_joint_kernel(cfg, names, out_names, row_off, rows_per, num_layers):
    """Kernel body: whole multi-layer forward over the folded joint stream."""
    H = cfg.num_attention_heads
    KVH = cfg.num_key_value_heads
    Dh = cfg.head_dim
    D = cfg.hidden_size
    FF = cfg.intermediate_size
    NM = len(names)
    rep = H // KVH
    half = Dh // 2
    scale = 1.0 / math.sqrt(Dh)
    softclamp = float(cfg.attn_softclamp)
    inv_clamp = 1.0 / softclamp
    eps = float(cfg.rms_eps)

    def mm(a, b):                 # (M, K) @ (K, N), f32 accumulation
        return jax.lax.dot_general(a, b, (((1,), (0,)), ((), ())),
                                   preferred_element_type=jnp.float32)

    def mm_nt(a, b):              # (M, K) @ (N, K)^T -> (M, N)
        return jax.lax.dot_general(a, b, (((1,), (1,)), ((), ())),
                                   preferred_element_type=jnp.float32)

    def rms_hat(v):               # x * rsqrt(mean(x^2)+eps); (1+w) is folded into weights
        return v * jax.lax.rsqrt(jnp.mean(v * v, axis=-1, keepdims=True) + eps)

    def tile_mix(v):              # (R, W) -> (R, NM*W) lane tiling for block-diag matmul
        return jnp.concatenate([v] * NM, axis=-1)

    def rot_half(v):              # concat([x2, x1]); sign is folded into the sin table
        return jnp.concatenate([v[:, half:], v[:, :half]], axis=-1)

    def kernel(x0_ref, cos_ref, sin_ref, mask_ref,
               scat_d_ref, scat_o_ref, scat_ff_ref,
               qkv_w_ref, o_w_ref, gu_w_ref, dn_w_ref, *rest):
        fin_refs = rest[:len(out_names)]
        out_refs = rest[len(out_names):]

        x = x0_ref[...]                      # (R, D) joint residual stream (pre-scaled)
        R = x.shape[0]
        cos = cos_ref[...]                   # (R, Dh)
        sin_s = sin_ref[...]                 # (R, Dh) sign-folded sin
        scat_d = scat_d_ref[...]             # (R, NM*D)   0/1 mixture scatter
        scat_o = scat_o_ref[...]             # (R, NM*H*Dh)
        scat_ff = scat_ff_ref[...]           # (R, NM*FF)
        # head-group replicated tables: built once, reused for every layer
        cos_r = jnp.concatenate([cos] * rep, axis=0)       # (rep*R, Dh)
        sin_r = jnp.concatenate([sin_s] * rep, axis=0)
        mask_r = jnp.concatenate([mask_ref[...]] * rep, axis=0)  # (rep*R, R)

        for layer in range(num_layers):
            # ---- fused input-norm + block-diagonal QKV projection (1 matmul) ----
            xb = tile_mix(rms_hat(x)) * scat_d
            qkv = mm(xb, qkv_w_ref[layer])                  # (R, (H+2*KVH)*Dh)

            # ---- joint attention: heads of a kv group batched along rows ----
            head_ctx = [None] * H
            for g in range(KVH):
                k = qkv[:, (H + g) * Dh:(H + g + 1) * Dh]
                v = qkv[:, (H + KVH + g) * Dh:(H + KVH + g + 1) * Dh]
                k = k * cos + rot_half(k) * sin_s           # joint K slab (R, Dh)
                qs = jnp.concatenate(
                    [qkv[:, h * Dh:(h + 1) * Dh] for h in range(g * rep, (g + 1) * rep)],
                    axis=0)                                  # (rep*R, Dh)
                qs = qs * cos_r + rot_half(qs) * sin_r
                s = mm_nt(qs, k) * scale                     # (rep*R, R)
                s = jnp.tanh(s * inv_clamp) * softclamp + mask_r
                # no max-subtraction: tanh softclamp bounds logits to +-50
                p = jnp.exp(s)
                p = p * pl.reciprocal(jnp.sum(p, axis=-1, keepdims=True), approx=True)
                ctx = mm(p, v)                               # (rep*R, Dh)
                for hl in range(rep):
                    head_ctx[g * rep + hl] = ctx[hl * R:(hl + 1) * R]
            attn = jnp.concatenate(head_ctx, axis=-1)        # (R, H*Dh)

            # ---- block-diagonal o_proj + residual ----
            # TODO(synk): forward_adaptive_scale(time_cond) is identity for
            # time_cond=None (the only path implemented here).
            h1 = x + mm(tile_mix(attn) * scat_o, o_w_ref[layer])

            # ---- post-norm + block-diagonal fused GeGLU MLP + residual ----
            gu = mm(tile_mix(rms_hat(h1)) * scat_d, gu_w_ref[layer])   # (R, 2*FF)
            act = jax.nn.gelu(gu[:, :FF], approximate=True) * gu[:, FF:]
            x = h1 + mm(tile_mix(act) * scat_ff, dn_w_ref[layer])

        # ---- final RMSNorm + store, only for non-skipped mixtures ----
        # TODO(synk): output left at (rows, D=32) (one masked vst); a lane-dense
        # repack would cost more in-kernel relayout than the store saves here.
        for i, n in enumerate(out_names):
            rows = x[row_off[n]: row_off[n] + rows_per[n]]
            out_refs[i][...] = (rms_hat(rows) * (1.0 + fin_refs[i][...])
                                ).astype(out_refs[i].dtype)

    return kernel


def joint_model_forward(cfg, params, attention_mask, position_ids_all, embeds_all,
                        final_layer_post_attn_skip_names=("vlm", "proprio")):
    """Single-pallas_call forward of the JointModel (no-cache path)."""
    # TODO(synk): KVCache objects / cache_mode / return_caches / quant_action are
    # stateful-Python constructs; only the no-cache forward path is implemented.
    names = [n for n in cfg.mixture_names if n in embeds_all]
    out_names = [n for n in names if n not in final_layer_post_attn_skip_names]
    NM = len(names)
    B = embeds_all[names[0]].shape[0]
    D, Dh, FF, L = cfg.hidden_size, cfg.head_dim, cfg.intermediate_size, cfg.num_hidden_layers
    H, KVH = cfg.num_attention_heads, cfg.num_key_value_heads
    S = {n: embeds_all[n].shape[1] for n in names}

    # ---- joint row layout: [mixture][batch][seq], padded to a multiple of 8 ----
    row_off, acc = {}, 0
    for n in names:
        row_off[n] = acc
        acc += B * S[n]
    Rr = acc
    R = ((Rr + 7) // 8) * 8
    rows_per = {n: B * S[n] for n in names}

    # original (per-batch) concat offsets, used to index the provided mask
    off, a = {}, 0
    for n in names:
        off[n] = a
        a += S[n]

    # ---- initial joint state: embeds * sqrt(D), folded over batch, zero-padded ----
    x0 = jnp.concatenate([embeds_all[n].reshape(B * S[n], D) for n in names], axis=0)
    x0 = x0 * (float(D) ** 0.5)
    if R > Rr:
        x0 = jnp.pad(x0, ((0, R - Rr), (0, 0)))

    # ---- per-row rotary tables; sign of rotate-half folded into sin ----
    pos = jnp.concatenate([position_ids_all[n].reshape(B * S[n]) for n in names], axis=0)
    if R > Rr:
        pos = jnp.pad(pos, (0, R - Rr))
    inv_freq = 1.0 / (cfg.rope_base ** (jnp.arange(0, Dh, 2, dtype=jnp.float32) / Dh))
    fr = pos.astype(jnp.float32)[:, None] * inv_freq[None, :]
    emb = jnp.concatenate([fr, fr], axis=-1)                       # (R, Dh)
    cos = jnp.cos(emb)
    sign = jnp.concatenate([-jnp.ones((Dh // 2,), jnp.float32),
                            jnp.ones((Dh // 2,), jnp.float32)])
    sin_signed = jnp.sin(emb) * sign[None, :]

    # ---- joint additive mask: block mask within batch, -inf across batches,
    #      -inf for pad key columns, 0 for pad query rows (keeps them finite) ----
    b_of = np.zeros((Rr,), np.int32)
    q_of = np.zeros((Rr,), np.int32)
    for n in names:
        for b in range(B):
            r0 = row_off[n] + b * S[n]
            b_of[r0:r0 + S[n]] = b
            q_of[r0:r0 + S[n]] = off[n] + np.arange(S[n])
    b_of = jnp.asarray(b_of)
    q_of = jnp.asarray(q_of)
    gathered = attention_mask[b_of[:, None], 0, q_of[:, None], q_of[None, :]]
    same_b = b_of[:, None] == b_of[None, :]
    mj = jnp.where(same_b, gathered, NEG_INF).astype(jnp.float32)
    if R > Rr:
        mj = jnp.pad(mj, ((0, R - Rr), (0, R - Rr)), constant_values=NEG_INF)
        mj = mj.at[Rr:, :].set(0.0)

    # ---- 0/1 mixture scatter selectors (numpy constants) ----
    def scat(width):
        m = np.zeros((R, NM * width), np.float32)
        for i, n in enumerate(names):
            m[row_off[n]:row_off[n] + B * S[n], i * width:(i + 1) * width] = 1.0
        return jnp.asarray(m)

    scat_d, scat_o, scat_ff = scat(D), scat(H * Dh), scat(FF)

    # ---- stacked block-diagonal weights; RMSNorm (1+w) folded into qkv / gate-up ----
    qkv_ws, o_ws, gu_ws, dn_ws = [], [], [], []
    for l in range(L):
        qkv_ws.append(jnp.concatenate([
            (1.0 + params[n]["layers"][l]["input_norm"])[:, None]
            * jnp.concatenate([params[n]["layers"][l]["q_w"],
                               params[n]["layers"][l]["k_w"],
                               params[n]["layers"][l]["v_w"]], axis=1)
            for n in names], axis=0))                               # (NM*D, (H+2KVH)*Dh)
        o_ws.append(jnp.concatenate(
            [params[n]["layers"][l]["o_w"] for n in names], axis=0))   # (NM*H*Dh, D)
        gu_ws.append(jnp.concatenate([
            (1.0 + params[n]["layers"][l]["post_norm"])[:, None]
            * jnp.concatenate([params[n]["layers"][l]["gate_w"],
                               params[n]["layers"][l]["up_w"]], axis=1)
            for n in names], axis=0))                               # (NM*D, 2*FF)
        dn_ws.append(jnp.concatenate(
            [params[n]["layers"][l]["down_w"] for n in names], axis=0))  # (NM*FF, D)
    qkv_w = jnp.stack(qkv_ws)
    o_w = jnp.stack(o_ws)
    gu_w = jnp.stack(gu_ws)
    dn_w = jnp.stack(dn_ws)

    fin_ws = [params[n]["final_norm"].reshape(1, D) for n in out_names]

    out_shapes = tuple(jax.ShapeDtypeStruct((B * S[n], D), embeds_all[n].dtype)
                       for n in out_names)

    kernel = _make_joint_kernel(cfg, names, out_names, row_off, rows_per, L)

    # Single invocation, no grid: every operand is small enough to live whole in
    # VMEM for the entire multi-layer forward (default whole-array mapping).
    outs = pl.pallas_call(kernel, out_shape=out_shapes)(
        x0, cos, sin_signed, mj, scat_d, scat_o, scat_ff,
        qkv_w, o_w, gu_w, dn_w, *fin_ws)

    return {n: outs[i].reshape(B, S[n], D) for i, n in enumerate(out_names)}


# ----------------------------- pure-JAX reference -----------------------------

def joint_model_forward_ref(cfg, params, attention_mask, position_ids_all, embeds_all,
                            final_layer_post_attn_skip_names=("vlm", "proprio")):
    names = [n for n in cfg.mixture_names if n in embeds_all]
    H, KVH, Dh = cfg.num_attention_heads, cfg.num_key_value_heads, cfg.head_dim
    rep = H // KVH

    def rms(v, w):
        var = jnp.mean(v * v, axis=-1, keepdims=True)
        return v * jax.lax.rsqrt(var + cfg.rms_eps) * (1.0 + w)

    def apply_rotary(x, cos, sin):  # x: (B,H,S,Dh), cos/sin: (B,S,Dh)
        cos, sin = cos[:, None], sin[:, None]
        d = x.shape[-1] // 2
        x1, x2 = x[..., :d], x[..., d:]
        return x * cos + jnp.concatenate([-x2, x1], axis=-1) * sin

    x = {n: embeds_all[n] * (embeds_all[n].shape[-1] ** 0.5) for n in names}
    for layer in range(cfg.num_hidden_layers):
        is_final = layer == cfg.num_hidden_layers - 1
        skip = final_layer_post_attn_skip_names if is_final else ()
        res = dict(x)
        qs, ks, vs, lens = [], [], [], []
        for n in names:
            p = params[n]["layers"][layer]
            B, Sn, _ = x[n].shape
            xn = rms(x[n], p["input_norm"])
            q = (xn @ p["q_w"]).reshape(B, Sn, H, Dh).transpose(0, 2, 1, 3)
            k = (xn @ p["k_w"]).reshape(B, Sn, KVH, Dh).transpose(0, 2, 1, 3)
            v = (xn @ p["v_w"]).reshape(B, Sn, KVH, Dh).transpose(0, 2, 1, 3)
            cos, sin = rotary_cos_sin(position_ids_all[n], Dh, cfg.rope_base)
            q = apply_rotary(q, cos, sin)
            k = apply_rotary(k, cos, sin)
            qs.append(q)
            ks.append(jnp.repeat(k, rep, axis=1))
            vs.append(jnp.repeat(v, rep, axis=1))
            lens.append(Sn)
        Q = jnp.concatenate(qs, axis=2)
        K = jnp.concatenate(ks, axis=2)
        V = jnp.concatenate(vs, axis=2)
        s = (Q @ jnp.swapaxes(K, -1, -2)) / math.sqrt(Dh)
        s = jnp.tanh(s / cfg.attn_softclamp) * cfg.attn_softclamp
        s = s + attention_mask
        pattn = jax.nn.softmax(s.astype(jnp.float32), axis=-1)
        attn = (pattn @ V).transpose(0, 2, 1, 3).reshape(Q.shape[0], sum(lens), H * Dh)
        newx, offp = {}, 0
        for n, Sn in zip(names, lens):
            seg = attn[:, offp:offp + Sn]
            offp += Sn
            if n in skip:
                newx[n] = None
                continue
            p = params[n]["layers"][layer]
            h1 = res[n] + seg @ p["o_w"]
            hn = rms(h1, p["post_norm"])
            mlp = (jax.nn.gelu(hn @ p["gate_w"], approximate=True)
                   * (hn @ p["up_w"])) @ p["down_w"]
            newx[n] = h1 + mlp
        x = newx
    return {n: rms(x[n], params[n]["final_norm"])
            for n in names if n not in final_layer_post_attn_skip_names}


# ----------------------------- helpers / main -----------------------------

def build_block_attention_mask(bsz, seq_lens):
    """Block attention: vlm->vlm, proprio->(vlm,proprio), action->all. Additive."""
    total = int(sum(seq_lens))
    m = np.full((total, total), NEG_INF, dtype=np.float32)
    ends = np.cumsum(seq_lens)
    starts = ends - np.asarray(seq_lens)
    for i, (qs, qe) in enumerate(zip(starts, ends)):
        m[qs:qe, : ends[i]] = 0.0
    mask = jnp.asarray(m)[None, None]
    return jnp.broadcast_to(mask, (bsz, 1, total, total))


if __name__ == "__main__":
    cfg = JointModelConfig()
    key = jax.random.PRNGKey(0)
    kp, ke1, ke2, ke3 = jax.random.split(key, 4)

    params = init_params(kp, cfg)

    bsz = 2
    seq_lens = {"vlm": 8, "proprio": 2, "action": 4}
    embeds_all = {
        "vlm": jax.random.normal(ke1, (bsz, seq_lens["vlm"], cfg.hidden_size), jnp.float32),
        "proprio": jax.random.normal(ke2, (bsz, seq_lens["proprio"], cfg.hidden_size), jnp.float32),
        "action": jax.random.normal(ke3, (bsz, seq_lens["action"], cfg.hidden_size), jnp.float32),
    }
    offs = {"vlm": 0, "proprio": seq_lens["vlm"],
            "action": seq_lens["vlm"] + seq_lens["proprio"]}
    position_ids_all = {
        n: jnp.broadcast_to(
            jnp.arange(offs[n], offs[n] + seq_lens[n], dtype=jnp.int32)[None, :],
            (bsz, seq_lens[n]))
        for n in seq_lens
    }
    attention_mask = build_block_attention_mask(
        bsz, [seq_lens["vlm"], seq_lens["proprio"], seq_lens["action"]])

    fwd = jax.jit(functools.partial(joint_model_forward, cfg))
    out = jax.block_until_ready(fwd(params, attention_mask, position_ids_all, embeds_all))

    assert set(out.keys()) == {"action"}
    assert out["action"].shape == (bsz, seq_lens["action"], cfg.hidden_size)
    assert bool(jnp.all(jnp.isfinite(out["action"])))

    # correctness check against a pure-JAX reference of the same module semantics
    ref_fwd = jax.jit(functools.partial(joint_model_forward_ref, cfg))
    ref = jax.block_until_ready(ref_fwd(params, attention_mask, position_ids_all, embeds_all))
    err = float(jnp.max(jnp.abs(out["action"] - ref["action"])))
    assert err < 2e-2, f"pallas vs reference mismatch: max abs err = {err}"

    print("KERNEL_OK")
</pallas_src>

<mosaic_0001>
module attributes {stable_mosaic.version = 11 : i64} {
  func.func @kernel(%arg0: memref<32x32xf32, #tpu.memory_space<vmem>>, %arg1: memref<32x16xf32, #tpu.memory_space<vmem>>, %arg2: memref<32x16xf32, #tpu.memory_space<vmem>>, %arg3: memref<32x32xf32, #tpu.memory_space<vmem>>, %arg4: memref<32x96xf32, #tpu.memory_space<vmem>>, %arg5: memref<32x96xf32, #tpu.memory_space<vmem>>, %arg6: memref<32x192xf32, #tpu.memory_space<vmem>>, %arg7: memref<2x96x64xf32, #tpu.memory_space<vmem>>, %arg8: memref<2x96x32xf32, #tpu.memory_space<vmem>>, %arg9: memref<2x96x128xf32, #tpu.memory_space<vmem>>, %arg10: memref<2x192x32xf32, #tpu.memory_space<vmem>>, %arg11: memref<1x32xf32, #tpu.memory_space<vmem>>, %arg12: memref<8x32xf32, #tpu.memory_space<vmem>>) attributes {dimension_semantics = [], scalar_prefetch = 0 : i64, scratch_operands = 0 : i64, tpu.core_type = #tpu.core_type<tc>} {
    %c0 = arith.constant 0 : index
    %c0_0 = arith.constant 0 : index
    %0 = vector.load %arg0[%c0, %c0_0] : memref<32x32xf32, #tpu.memory_space<vmem>>, vector<32x32xf32>
    %c0_1 = arith.constant 0 : index
    %c0_2 = arith.constant 0 : index
    %1 = vector.load %arg1[%c0_1, %c0_2] : memref<32x16xf32, #tpu.memory_space<vmem>>, vector<32x16xf32>
    %c0_3 = arith.constant 0 : index
    %c0_4 = arith.constant 0 : index
    %2 = vector.load %arg2[%c0_3, %c0_4] : memref<32x16xf32, #tpu.memory_space<vmem>>, vector<32x16xf32>
    %c0_5 = arith.constant 0 : index
    %c0_6 = arith.constant 0 : index
    %3 = vector.load %arg4[%c0_5, %c0_6] : memref<32x96xf32, #tpu.memory_space<vmem>>, vector<32x96xf32>
    %c0_7 = arith.constant 0 : index
    %c0_8 = arith.constant 0 : index
    %4 = vector.load %arg5[%c0_7, %c0_8] : memref<32x96xf32, #tpu.memory_space<vmem>>, vector<32x96xf32>
    %c0_9 = arith.constant 0 : index
    %c0_10 = arith.constant 0 : index
    %5 = vector.load %arg6[%c0_9, %c0_10] : memref<32x192xf32, #tpu.memory_space<vmem>>, vector<32x192xf32>
    %6 = tpu.concatenate %1, %1 in 0 : vector<32x16xf32>, vector<32x16xf32> -> vector<64x16xf32>
    %7 = tpu.concatenate %2, %2 in 0 : vector<32x16xf32>, vector<32x16xf32> -> vector<64x16xf32>
    %c0_11 = arith.constant 0 : index
    %c0_12 = arith.constant 0 : index
    %8 = vector.load %arg3[%c0_11, %c0_12] : memref<32x32xf32, #tpu.memory_space<vmem>>, vector<32x32xf32>
    %9 = tpu.concatenate %8, %8 in 0 : vector<32x32xf32>, vector<32x32xf32> -> vector<64x32xf32>
    %10 = arith.mulf %0, %0 : vector<32x32xf32>
    %cst = arith.constant dense<0.000000e+00> : vector<32xf32>
    %11 = vector.multi_reduction <add>, %10, %cst [1] : vector<32x32xf32> to vector<32xf32>
    %12 = vector.shape_cast %11 : vector<32xf32> to vector<32x1xf32>
    %cst_13 = arith.constant 3.200000e+01 : f32
    %13 = vector.broadcast %cst_13 : f32 to vector<32x1xf32>
    %14 = arith.divf %12, %13 : vector<32x1xf32>
    %cst_14 = arith.constant 9.99999997E-7 : f32
    %15 = vector.broadcast %cst_14 : f32 to vector<32x1xf32>
    %16 = arith.addf %14, %15 : vector<32x1xf32>
    %17 = math.rsqrt %16 : vector<32x1xf32>
    %18 = vector.broadcast %17 : vector<32x1xf32> to vector<32x32xf32>
    %19 = arith.mulf %0, %18 : vector<32x32xf32>
    %20 = tpu.concatenate %19, %19, %19 in 1 : vector<32x32xf32>, vector<32x32xf32>, vector<32x32xf32> -> vector<32x96xf32>
    %21 = arith.mulf %20, %3 : vector<32x96xf32>
    %c0_15 = arith.constant 0 : index
    %c0_16 = arith.constant 0 : index
    %c0_17 = arith.constant 0 : index
    %22 = vector.load %arg7[%c0_15, %c0_16, %c0_17] : memref<2x96x64xf32, #tpu.memory_space<vmem>>, vector<1x96x64xf32>
    %23 = vector.shape_cast %22 : vector<1x96x64xf32> to vector<96x64xf32>
    %cst_18 = arith.constant dense<0.000000e+00> : vector<32x64xf32>
    %24 = tpu.matmul %21, %23, %cst_18 {dimension_numbers = #tpu.dot_dimension_numbers<[1], [0], [0], [1], [0, 0, 1, 1], [], []>} : vector<32x96xf32>, vector<96x64xf32>, vector<32x64xf32> -> vector<32x64xf32>
    %25 = vector.extract_strided_slice %24 {offsets = [0, 32], sizes = [32, 16], strides = [1, 1]} : vector<32x64xf32> to vector<32x16xf32>
    %26 = vector.extract_strided_slice %24 {offsets = [0, 48], sizes = [32, 16], strides = [1, 1]} : vector<32x64xf32> to vector<32x16xf32>
    %27 = arith.mulf %25, %1 : vector<32x16xf32>
    %28 = vector.extract_strided_slice %25 {offsets = [0, 8], sizes = [32, 8], strides = [1, 1]} : vector<32x16xf32> to vector<32x8xf32>
    %29 = vector.extract_strided_slice %25 {offsets = [0, 0], sizes = [32, 8], strides = [1, 1]} : vector<32x16xf32> to vector<32x8xf32>
    %30 = tpu.concatenate %28, %29 in 1 : vector<32x8xf32>, vector<32x8xf32> -> vector<32x16xf32>
    %31 = arith.mulf %30, %2 : vector<32x16xf32>
    %32 = arith.addf %27, %31 : vector<32x16xf32>
    %33 = vector.extract_strided_slice %24 {offsets = [0, 0], sizes = [32, 16], strides = [1, 1]} : vector<32x64xf32> to vector<32x16xf32>
    %34 = vector.extract_strided_slice %24 {offsets = [0, 16], sizes = [32, 16], strides = [1, 1]} : vector<32x64xf32> to vector<32x16xf32>
    %35 = tpu.concatenate %33, %34 in 0 : vector<32x16xf32>, vector<32x16xf32> -> vector<64x16xf32>
    %36 = arith.mulf %35, %6 : vector<64x16xf32>
    %37 = vector.extract_strided_slice %35 {offsets = [0, 8], sizes = [64, 8], strides = [1, 1]} : vector<64x16xf32> to vector<64x8xf32>
    %38 = vector.extract_strided_slice %35 {offsets = [0, 0], sizes = [64, 8], strides = [1, 1]} : vector<64x16xf32> to vector<64x8xf32>
    %39 = tpu.concatenate %37, %38 in 1 : vector<64x8xf32>, vector<64x8xf32> -> vector<64x16xf32>
    %40 = arith.mulf %39, %7 : vector<64x16xf32>
    %41 = arith.addf %36, %40 : vector<64x16xf32>
    %cst_19 = arith.constant dense<0.000000e+00> : vector<64x32xf32>
    %42 = tpu.matmul %41, %32, %cst_19 {dimension_numbers = #tpu.dot_dimension_numbers<[1], [1], [0], [0], [0, 0, 1, 0], [], []>} : vector<64x16xf32>, vector<32x16xf32>, vector<64x32xf32> -> vector<64x32xf32>
    %cst_20 = arith.constant 2.500000e-01 : f32
    %43 = vector.broadcast %cst_20 : f32 to vector<64x32xf32>
    %44 = arith.mulf %42, %43 : vector<64x32xf32>
    %cst_21 = arith.constant 2.000000e-02 : f32
    %45 = vector.broadcast %cst_21 : f32 to vector<64x32xf32>
    %46 = arith.mulf %44, %45 : vector<64x32xf32>
    %47 = math.tanh %46 : vector<64x32xf32>
    %cst_22 = arith.constant 5.000000e+01 : f32
    %48 = vector.broadcast %cst_22 : f32 to vector<64x32xf32>
    %49 = arith.mulf %47, %48 : vector<64x32xf32>
    %50 = arith.addf %49, %9 : vector<64x32xf32>
    %51 = math.exp %50 : vector<64x32xf32>
    %cst_23 = arith.constant dense<0.000000e+00> : vector<64xf32>
    %52 = vector.multi_reduction <add>, %51, %cst_23 [1] : vector<64x32xf32> to vector<64xf32>
    %53 = vector.shape_cast %52 : vector<64xf32> to vector<64x1xf32>
    %54 = tpu.reciprocal %53 {approx = true} : vector<64x1xf32> -> vector<64x1xf32>
    %55 = vector.broadcast %54 : vector<64x1xf32> to vector<64x32xf32>
    %56 = arith.mulf %51, %55 : vector<64x32xf32>
    %cst_24 = arith.constant dense<0.000000e+00> : vector<64x16xf32>
    %57 = tpu.matmul %56, %26, %cst_24 {dimension_numbers = #tpu.dot_dimension_numbers<[1], [0], [0], [1], [0, 0, 1, 1], [], []>} : vector<64x32xf32>, vector<32x16xf32>, vector<64x16xf32> -> vector<64x16xf32>
    %58 = vector.extract_strided_slice %57 {offsets = [0, 0], sizes = [32, 16], strides = [1, 1]} : vector<64x16xf32> to vector<32x16xf32>
    %59 = vector.extract_strided_slice %57 {offsets = [32, 0], sizes = [32, 16], strides = [1, 1]} : vector<64x16xf32> to vector<32x16xf32>
    %60 = tpu.concatenate %58, %59 in 1 : vector<32x16xf32>, vector<32x16xf32> -> vector<32x32xf32>
    %61 = tpu.concatenate %60, %60, %60 in 1 : vector<32x32xf32>, vector<32x32xf32>, vector<32x32xf32> -> vector<32x96xf32>
    %62 = arith.mulf %61, %4 : vector<32x96xf32>
    %c0_25 = arith.constant 0 : index
    %c0_26 = arith.constant 0 : index
    %c0_27 = arith.constant 0 : index
    %63 = vector.load %arg8[%c0_25, %c0_26, %c0_27] : memref<2x96x32xf32, #tpu.memory_space<vmem>>, vector<1x96x32xf32>
    %64 = vector.shape_cast %63 : vector<1x96x32xf32> to vector<96x32xf32>
    %cst_28 = arith.constant dense<0.000000e+00> : vector<32x32xf32>
    %65 = tpu.matmul %62, %64, %cst_28 {dimension_numbers = #tpu.dot_dimension_numbers<[1], [0], [0], [1], [0, 0, 1, 1], [], []>} : vector<32x96xf32>, vector<96x32xf32>, vector<32x32xf32> -> vector<32x32xf32>
    %66 = arith.addf %0, %65 : vector<32x32xf32>
    %67 = arith.mulf %66, %66 : vector<32x32xf32>
    %cst_29 = arith.constant dense<0.000000e+00> : vector<32xf32>
    %68 = vector.multi_reduction <add>, %67, %cst_29 [1] : vector<32x32xf32> to vector<32xf32>
    %69 = vector.shape_cast %68 : vector<32xf32> to vector<32x1xf32>
    %cst_30 = arith.constant 3.200000e+01 : f32
    %70 = vector.broadcast %cst_30 : f32 to vector<32x1xf32>
    %71 = arith.divf %69, %70 : vector<32x1xf32>
    %cst_31 = arith.constant 9.99999997E-7 : f32
    %72 = vector.broadcast %cst_31 : f32 to vector<32x1xf32>
    %73 = arith.addf %71, %72 : vector<32x1xf32>
    %74 = math.rsqrt %73 : vector<32x1xf32>
    %75 = vector.broadcast %74 : vector<32x1xf32> to vector<32x32xf32>
    %76 = arith.mulf %66, %75 : vector<32x32xf32>
    %77 = tpu.concatenate %76, %76, %76 in 1 : vector<32x32xf32>, vector<32x32xf32>, vector<32x32xf32> -> vector<32x96xf32>
    %78 = arith.mulf %77, %3 : vector<32x96xf32>
    %c0_32 = arith.constant 0 : index
    %c0_33 = arith.constant 0 : index
    %c0_34 = arith.constant 0 : index
    %79 = vector.load %arg9[%c0_32, %c0_33, %c0_34] : memref<2x96x128xf32, #tpu.memory_space<vmem>>, vector<1x96x128xf32>
    %80 = vector.shape_cast %79 : vector<1x96x128xf32> to vector<96x128xf32>
    %cst_35 = arith.constant dense<0.000000e+00> : vector<32x128xf32>
    %81 = tpu.matmul %78, %80, %cst_35 {dimension_numbers = #tpu.dot_dimension_numbers<[1], [0], [0], [1], [0, 0, 1, 1], [], []>} : vector<32x96xf32>, vector<96x128xf32>, vector<32x128xf32> -> vector<32x128xf32>
    %82 = vector.extract_strided_slice %81 {offsets = [0, 0], sizes = [32, 64], strides = [1, 1]} : vector<32x128xf32> to vector<32x64xf32>
    %83 = arith.mulf %82, %82 : vector<32x64xf32>
    %84 = arith.mulf %82, %83 : vector<32x64xf32>
    %cst_36 = arith.constant 4.471500e-02 : f32
    %85 = vector.broadcast %cst_36 : f32 to vector<32x64xf32>
    %86 = arith.mulf %85, %84 : vector<32x64xf32>
    %87 = arith.addf %82, %86 : vector<32x64xf32>
    %cst_37 = arith.constant 0.797884583 : f32
    %88 = vector.broadcast %cst_37 : f32 to vector<32x64xf32>
    %89 = arith.mulf %88, %87 : vector<32x64xf32>
    %90 = math.tanh %89 : vector<32x64xf32>
    %cst_38 = arith.constant 1.000000e+00 : f32
    %91 = vector.broadcast %cst_38 : f32 to vector<32x64xf32>
    %92 = arith.addf %91, %90 : vector<32x64xf32>
    %cst_39 = arith.constant 5.000000e-01 : f32
    %93 = vector.broadcast %cst_39 : f32 to vector<32x64xf32>
    %94 = arith.mulf %93, %92 : vector<32x64xf32>
    %95 = arith.mulf %82, %94 : vector<32x64xf32>
    %96 = vector.extract_strided_slice %81 {offsets = [0, 64], sizes = [32, 64], strides = [1, 1]} : vector<32x128xf32> to vector<32x64xf32>
    %97 = arith.mulf %95, %96 : vector<32x64xf32>
    %98 = tpu.concatenate %97, %97, %97 in 1 : vector<32x64xf32>, vector<32x64xf32>, vector<32x64xf32> -> vector<32x192xf32>
    %99 = arith.mulf %98, %5 : vector<32x192xf32>
    %c0_40 = arith.constant 0 : index
    %c0_41 = arith.constant 0 : index
    %c0_42 = arith.constant 0 : index
    %100 = vector.load %arg10[%c0_40, %c0_41, %c0_42] : memref<2x192x32xf32, #tpu.memory_space<vmem>>, vector<1x192x32xf32>
    %101 = vector.shape_cast %100 : vector<1x192x32xf32> to vector<192x32xf32>
    %cst_43 = arith.constant dense<0.000000e+00> : vector<32x32xf32>
    %102 = tpu.matmul %99, %101, %cst_43 {dimension_numbers = #tpu.dot_dimension_numbers<[1], [0], [0], [1], [0, 0, 1, 1], [], []>} : vector<32x192xf32>, vector<192x32xf32>, vector<32x32xf32> -> vector<32x32xf32>
    %103 = arith.addf %66, %102 : vector<32x32xf32>
    %104 = arith.mulf %103, %103 : vector<32x32xf32>
    %cst_44 = arith.constant dense<0.000000e+00> : vector<32xf32>
    %105 = vector.multi_reduction <add>, %104, %cst_44 [1] : vector<32x32xf32> to vector<32xf32>
    %106 = vector.shape_cast %105 : vector<32xf32> to vector<32x1xf32>
    %cst_45 = arith.constant 3.200000e+01 : f32
    %107 = vector.broadcast %cst_45 : f32 to vector<32x1xf32>
    %108 = arith.divf %106, %107 : vector<32x1xf32>
    %cst_46 = arith.constant 9.99999997E-7 : f32
    %109 = vector.broadcast %cst_46 : f32 to vector<32x1xf32>
    %110 = arith.addf %108, %109 : vector<32x1xf32>
    %111 = math.rsqrt %110 : vector<32x1xf32>
    %112 = vector.broadcast %111 : vector<32x1xf32> to vector<32x32xf32>
    %113 = arith.mulf %103, %112 : vector<32x32xf32>
    %114 = tpu.concatenate %113, %113, %113 in 1 : vector<32x32xf32>, vector<32x32xf32>, vector<32x32xf32> -> vector<32x96xf32>
    %115 = arith.mulf %114, %3 : vector<32x96xf32>
    %c1 = arith.constant 1 : index
    %c0_47 = arith.constant 0 : index
    %c0_48 = arith.constant 0 : index
    %116 = vector.load %arg7[%c1, %c0_47, %c0_48] : memref<2x96x64xf32, #tpu.memory_space<vmem>>, vector<1x96x64xf32>
    %117 = vector.shape_cast %116 : vector<1x96x64xf32> to vector<96x64xf32>
    %cst_49 = arith.constant dense<0.000000e+00> : vector<32x64xf32>
    %118 = tpu.matmul %115, %117, %cst_49 {dimension_numbers = #tpu.dot_dimension_numbers<[1], [0], [0], [1], [0, 0, 1, 1], [], []>} : vector<32x96xf32>, vector<96x64xf32>, vector<32x64xf32> -> vector<32x64xf32>
    %119 = vector.extract_strided_slice %118 {offsets = [0, 32], sizes = [32, 16], strides = [1, 1]} : vector<32x64xf32> to vector<32x16xf32>
    %120 = vector.extract_strided_slice %118 {offsets = [0, 48], sizes = [32, 16], strides = [1, 1]} : vector<32x64xf32> to vector<32x16xf32>
    %121 = arith.mulf %119, %1 : vector<32x16xf32>
    %122 = vector.extract_strided_slice %119 {offsets = [0, 8], sizes = [32, 8], strides = [1, 1]} : vector<32x16xf32> to vector<32x8xf32>
    %123 = vector.extract_strided_slice %119 {offsets = [0, 0], sizes = [32, 8], strides = [1, 1]} : vector<32x16xf32> to vector<32x8xf32>
    %124 = tpu.concatenate %122, %123 in 1 : vector<32x8xf32>, vector<32x8xf32> -> vector<32x16xf32>
    %125 = arith.mulf %124, %2 : vector<32x16xf32>
    %126 = arith.addf %121, %125 : vector<32x16xf32>
    %127 = vector.extract_strided_slice %118 {offsets = [0, 0], sizes = [32, 16], strides = [1, 1]} : vector<32x64xf32> to vector<32x16xf32>
    %128 = vector.extract_strided_slice %118 {offsets = [0, 16], sizes = [32, 16], strides = [1, 1]} : vector<32x64xf32> to vector<32x16xf32>
    %129 = tpu.concatenate %127, %128 in 0 : vector<32x16xf32>, vector<32x16xf32> -> vector<64x16xf32>
    %130 = arith.mulf %129, %6 : vector<64x16xf32>
    %131 = vector.extract_strided_slice %129 {offsets = [0, 8], sizes = [64, 8], strides = [1, 1]} : vector<64x16xf32> to vector<64x8xf32>
    %132 = vector.extract_strided_slice %129 {offsets = [0, 0], sizes = [64, 8], strides = [1, 1]} : vector<64x16xf32> to vector<64x8xf32>
    %133 = tpu.concatenate %131, %132 in 1 : vector<64x8xf32>, vector<64x8xf32> -> vector<64x16xf32>
    %134 = arith.mulf %133, %7 : vector<64x16xf32>
    %135 = arith.addf %130, %134 : vector<64x16xf32>
    %cst_50 = arith.constant dense<0.000000e+00> : vector<64x32xf32>
    %136 = tpu.matmul %135, %126, %cst_50 {dimension_numbers = #tpu.dot_dimension_numbers<[1], [1], [0], [0], [0, 0, 1, 0], [], []>} : vector<64x16xf32>, vector<32x16xf32>, vector<64x32xf32> -> vector<64x32xf32>
    %cst_51 = arith.constant 2.500000e-01 : f32
    %137 = vector.broadcast %cst_51 : f32 to vector<64x32xf32>
    %138 = arith.mulf %136, %137 : vector<64x32xf32>
    %cst_52 = arith.constant 2.000000e-02 : f32
    %139 = vector.broadcast %cst_52 : f32 to vector<64x32xf32>
    %140 = arith.mulf %138, %139 : vector<64x32xf32>
    %141 = math.tanh %140 : vector<64x32xf32>
    %cst_53 = arith.constant 5.000000e+01 : f32
    %142 = vector.broadcast %cst_53 : f32 to vector<64x32xf32>
    %143 = arith.mulf %141, %142 : vector<64x32xf32>
    %144 = arith.addf %143, %9 : vector<64x32xf32>
    %145 = math.exp %144 : vector<64x32xf32>
    %cst_54 = arith.constant dense<0.000000e+00> : vector<64xf32>
    %146 = vector.multi_reduction <add>, %145, %cst_54 [1] : vector<64x32xf32> to vector<64xf32>
    %147 = vector.shape_cast %146 : vector<64xf32> to vector<64x1xf32>
    %148 = tpu.reciprocal %147 {approx = true} : vector<64x1xf32> -> vector<64x1xf32>
    %149 = vector.broadcast %148 : vector<64x1xf32> to vector<64x32xf32>
    %150 = arith.mulf %145, %149 : vector<64x32xf32>
    %cst_55 = arith.constant dense<0.000000e+00> : vector<64x16xf32>
    %151 = tpu.matmul %150, %120, %cst_55 {dimension_numbers = #tpu.dot_dimension_numbers<[1], [0], [0], [1], [0, 0, 1, 1], [], []>} : vector<64x32xf32>, vector<32x16xf32>, vector<64x16xf32> -> vector<64x16xf32>
    %152 = vector.extract_strided_slice %151 {offsets = [0, 0], sizes = [32, 16], strides = [1, 1]} : vector<64x16xf32> to vector<32x16xf32>
    %153 = vector.extract_strided_slice %151 {offsets = [32, 0], sizes = [32, 16], strides = [1, 1]} : vector<64x16xf32> to vector<32x16xf32>
    %154 = tpu.concatenate %152, %153 in 1 : vector<32x16xf32>, vector<32x16xf32> -> vector<32x32xf32>
    %155 = tpu.concatenate %154, %154, %154 in 1 : vector<32x32xf32>, vector<32x32xf32>, vector<32x32xf32> -> vector<32x96xf32>
    %156 = arith.mulf %155, %4 : vector<32x96xf32>
    %c1_56 = arith.constant 1 : index
    %c0_57 = arith.constant 0 : index
    %c0_58 = arith.constant 0 : index
    %157 = vector.load %arg8[%c1_56, %c0_57, %c0_58] : memref<2x96x32xf32, #tpu.memory_space<vmem>>, vector<1x96x32xf32>
    %158 = vector.shape_cast %157 : vector<1x96x32xf32> to vector<96x32xf32>
    %cst_59 = arith.constant dense<0.000000e+00> : vector<32x32xf32>
    %159 = tpu.matmul %156, %158, %cst_59 {dimension_numbers = #tpu.dot_dimension_numbers<[1], [0], [0], [1], [0, 0, 1, 1], [], []>} : vector<32x96xf32>, vector<96x32xf32>, vector<32x32xf32> -> vector<32x32xf32>
    %160 = arith.addf %103, %159 : vector<32x32xf32>
    %161 = arith.mulf %160, %160 : vector<32x32xf32>
    %cst_60 = arith.constant dense<0.000000e+00> : vector<32xf32>
    %162 = vector.multi_reduction <add>, %161, %cst_60 [1] : vector<32x32xf32> to vector<32xf32>
    %163 = vector.shape_cast %162 : vector<32xf32> to vector<32x1xf32>
    %cst_61 = arith.constant 3.200000e+01 : f32
    %164 = vector.broadcast %cst_61 : f32 to vector<32x1xf32>
    %165 = arith.divf %163, %164 : vector<32x1xf32>
    %cst_62 = arith.constant 9.99999997E-7 : f32
    %166 = vector.broadcast %cst_62 : f32 to vector<32x1xf32>
    %167 = arith.addf %165, %166 : vector<32x1xf32>
    %168 = math.rsqrt %167 : vector<32x1xf32>
    %169 = vector.broadcast %168 : vector<32x1xf32> to vector<32x32xf32>
    %170 = arith.mulf %160, %169 : vector<32x32xf32>
    %171 = tpu.concatenate %170, %170, %170 in 1 : vector<32x32xf32>, vector<32x32xf32>, vector<32x32xf32> -> vector<32x96xf32>
    %172 = arith.mulf %171, %3 : vector<32x96xf32>
    %c1_63 = arith.constant 1 : index
    %c0_64 = arith.constant 0 : index
    %c0_65 = arith.constant 0 : index
    %173 = vector.load %arg9[%c1_63, %c0_64, %c0_65] : memref<2x96x128xf32, #tpu.memory_space<vmem>>, vector<1x96x128xf32>
    %174 = vector.shape_cast %173 : vector<1x96x128xf32> to vector<96x128xf32>
    %cst_66 = arith.constant dense<0.000000e+00> : vector<32x128xf32>
    %175 = tpu.matmul %172, %174, %cst_66 {dimension_numbers = #tpu.dot_dimension_numbers<[1], [0], [0], [1], [0, 0, 1, 1], [], []>} : vector<32x96xf32>, vector<96x128xf32>, vector<32x128xf32> -> vector<32x128xf32>
    %176 = vector.extract_strided_slice %175 {offsets = [0, 0], sizes = [32, 64], strides = [1, 1]} : vector<32x128xf32> to vector<32x64xf32>
    %177 = arith.mulf %176, %176 : vector<32x64xf32>
    %178 = arith.mulf %176, %177 : vector<32x64xf32>
    %cst_67 = arith.constant 4.471500e-02 : f32
    %179 = vector.broadcast %cst_67 : f32 to vector<32x64xf32>
    %180 = arith.mulf %179, %178 : vector<32x64xf32>
    %181 = arith.addf %176, %180 : vector<32x64xf32>
    %cst_68 = arith.constant 0.797884583 : f32
    %182 = vector.broadcast %cst_68 : f32 to vector<32x64xf32>
    %183 = arith.mulf %182, %181 : vector<32x64xf32>
    %184 = math.tanh %183 : vector<32x64xf32>
    %cst_69 = arith.constant 1.000000e+00 : f32
    %185 = vector.broadcast %cst_69 : f32 to vector<32x64xf32>
    %186 = arith.addf %185, %184 : vector<32x64xf32>
    %cst_70 = arith.constant 5.000000e-01 : f32
    %187 = vector.broadcast %cst_70 : f32 to vector<32x64xf32>
    %188 = arith.mulf %187, %186 : vector<32x64xf32>
    %189 = arith.mulf %176, %188 : vector<32x64xf32>
    %190 = vector.extract_strided_slice %175 {offsets = [0, 64], sizes = [32, 64], strides = [1, 1]} : vector<32x128xf32> to vector<32x64xf32>
    %191 = arith.mulf %189, %190 : vector<32x64xf32>
    %192 = tpu.concatenate %191, %191, %191 in 1 : vector<32x64xf32>, vector<32x64xf32>, vector<32x64xf32> -> vector<32x192xf32>
    %193 = arith.mulf %192, %5 : vector<32x192xf32>
    %c1_71 = arith.constant 1 : index
    %c0_72 = arith.constant 0 : index
    %c0_73 = arith.constant 0 : index
    %194 = vector.load %arg10[%c1_71, %c0_72, %c0_73] : memref<2x192x32xf32, #tpu.memory_space<vmem>>, vector<1x192x32xf32>
    %195 = vector.shape_cast %194 : vector<1x192x32xf32> to vector<192x32xf32>
    %cst_74 = arith.constant dense<0.000000e+00> : vector<32x32xf32>
    %196 = tpu.matmul %193, %195, %cst_74 {dimension_numbers = #tpu.dot_dimension_numbers<[1], [0], [0], [1], [0, 0, 1, 1], [], []>} : vector<32x192xf32>, vector<192x32xf32>, vector<32x32xf32> -> vector<32x32xf32>
    %197 = arith.addf %160, %196 : vector<32x32xf32>
    %198 = vector.extract_strided_slice %197 {offsets = [20, 0], sizes = [8, 32], strides = [1, 1]} : vector<32x32xf32> to vector<8x32xf32>
    %199 = arith.mulf %198, %198 : vector<8x32xf32>
    %cst_75 = arith.constant dense<0.000000e+00> : vector<8xf32>
    %200 = vector.multi_reduction <add>, %199, %cst_75 [1] : vector<8x32xf32> to vector<8xf32>
    %201 = vector.shape_cast %200 : vector<8xf32> to vector<8x1xf32>
    %cst_76 = arith.constant 3.200000e+01 : f32
    %202 = vector.broadcast %cst_76 : f32 to vector<8x1xf32>
    %203 = arith.divf %201, %202 : vector<8x1xf32>
    %cst_77 = arith.constant 9.99999997E-7 : f32
    %204 = vector.broadcast %cst_77 : f32 to vector<8x1xf32>
    %205 = arith.addf %203, %204 : vector<8x1xf32>
    %206 = math.rsqrt %205 : vector<8x1xf32>
    %207 = vector.broadcast %206 : vector<8x1xf32> to vector<8x32xf32>
    %208 = arith.mulf %198, %207 : vector<8x32xf32>
    %c0_78 = arith.constant 0 : index
    %c0_79 = arith.constant 0 : index
    %209 = vector.load %arg11[%c0_78, %c0_79] : memref<1x32xf32, #tpu.memory_space<vmem>>, vector<1x32xf32>
    %cst_80 = arith.constant 1.000000e+00 : f32
    %210 = vector.broadcast %cst_80 : f32 to vector<1x32xf32>
    %211 = arith.addf %210, %209 : vector<1x32xf32>
    %212 = vector.broadcast %211 : vector<1x32xf32> to vector<8x32xf32>
    %213 = arith.mulf %208, %212 : vector<8x32xf32>
    %c0_81 = arith.constant 0 : index
    %c0_82 = arith.constant 0 : index
    %214 = vector.load %arg12[%c0_81, %c0_82] : memref<8x32xf32, #tpu.memory_space<vmem>>, vector<8x32xf32>
    tpu.vector_store %arg12[%c0_81, %c0_82], %213 {strides = array<i32>} : memref<8x32xf32, #tpu.memory_space<vmem>>, vector<8x32xf32>,
    return
  }
}

</mosaic_0001>

<bundles_post_ra>
// kernel: joint_model_forward.1
= control target key start
LH: loop header
LB: loop body
LE: loop exit
PB: predicated region body
PF: predicated region fallthrough
CT: control target
= control target key end

     0   :  { %vm78_vm0 = vcmask 261120   ;;  %s4903_s0 = inlined_call_operand.vmem [shape: f32[32,32], index: 0, kind: input, shape index: {}]   ;;  %s4904_s1 = inlined_call_operand.vmem [shape: f32[32,16], index: 1, kind: input, shape index: {}]   ;;  %s4905_s2 = inlined_call_operand.vmem [shape: f32[32,16], index: 2, kind: input, shape index: {}]   ;;  %s4906_s3 = inlined_call_operand.vmem [shape: f32[32,32], index: 3, kind: input, shape index: {}]   ;;  %s4907_s4 = inlined_call_operand.vmem [shape: f32[32,96], index: 4, kind: input, shape index: {}, may-alias: {4,5}]   ;;  %s4908_s5 = inlined_call_operand.vmem [shape: f32[32,96], index: 5, kind: input, shape index: {}, may-alias: {4,5}]   ;;  %s4909_s6 = inlined_call_operand.vmem [shape: f32[32,192], index: 6, kind: input, shape index: {}]   ;;  %s4910_s7 = inlined_call_operand.vmem [shape: f32[2,96,64], index: 7, kind: input, shape index: {}]   ;;  %s4911_s8 = inlined_call_operand.vmem [shape: f32[2,96,32], index: 8, kind: input, shape index: {}]   ;;  %s4912_s9 = inlined_call_operand.vmem [shape: f32[2,96,128], index: 9, kind: input, shape index: {}]   ;;  %s4913_s10 = inlined_call_operand.vmem [shape: f32[2,192,32], index: 10, kind: input, shape index: {}]   ;;  %s4914_s11 = inlined_call_operand.vmem [shape: f32[1,32], index: 11, kind: input, shape index: {}]   ;;  %s4915_s12 = inlined_call_operand.hbm [shape: f32[8,32], index: 12, kind: output, shape index: {}]  }
   0x1   :  { %v3538_v0 = vld [vmem:[%s4903_s0] sm:$0xff]  ;;  %v3543_v1 = vld [vmem:[%s4903_s0 + $0x10] sm:$0xff]  ;;  %v3548_v2 = vld [vmem:[%s4903_s0 + $0x8] sm:$0xff] }
   0x2   :  { %v74_v3 = vmul.f32 %v3538_v0, %v3538_v0  ;;  %v76_v4 = vmul.f32 %v3543_v1, %v3543_v1  ;;  %v75_v5 = vmul.f32 %v3548_v2, %v3548_v2  ;;  %v3559_v6 = vld [vmem:[%s4903_s0 + $0x18] sm:$0xff] }
   0x3   :  { %17 = vsyncpa [#allocation3], 0  ;;  %v77_v7 = vmul.f32 %v3559_v6, %v3559_v6  ;;  %v160_v12 = vld [vmem:[%s4910_s7 + $0x58] sm:$0xff]  ;;  %v159_v13 = vld [vmem:[%s4910_s7 + $0x50] sm:$0xff]  ;;  %s3458_s17 = smov 32   ;;  %s3459_s18 = smov 64  }
   0x4   :  { %v79_v8 = vsel %vm78_vm0, %v74_v3, 0.0  ;;  %v85_v9 = vsel %vm78_vm0, %v76_v4, 0.0  ;;  %v82_v10 = vsel %vm78_vm0, %v75_v5, 0.0  ;;  %2980 = vmatprep.subr.mxu1 %v160_v12  ;;  %v158_v14 = vld [vmem:[%s4910_s7 + $0x48] sm:$0xff]  ;;  %v157_v15 = vld [vmem:[%s4910_s7 + $0x40] sm:$0xff]  ;;  %v156_v16 = vld [vmem:[%s4910_s7 + $0x38] sm:$0xff] }
   0x5   :  { %80 = vadd.xlane.f32.xlu0 %v79_v8  ;;  %86 = vadd.xlane.f32.xlu1 %v85_v9  ;;  %v88_v11 = vsel %vm78_vm0, %v77_v7, 0.0  ;;  %v155_v27 = vld [vmem:[%s4910_s7 + $0x30] sm:$0xff]  ;;  %v154_v28 = vld [vmem:[%s4910_s7 + $0x28] sm:$0xff]  ;;  %v153_v30 = vld [vmem:[%s4910_s7 + $0x20] sm:$0xff]  ;;  %vm140_vm1 = vcmask 523264   ;;  %vm161_vm2 = vcmask 785408  }
   0x6   :  { %2981 = vmatpush3.msra.mxu1 %v160_v12  ;;  %v152_v31 = vld [vmem:[%s4910_s7 + $0x18] sm:$0xff]  ;;  %v151_v33 = vld [vmem:[%s4910_s7 + $0x10] sm:$0xff]  ;;  %v150_v34 = vld [vmem:[%s4910_s7 + $0x8] sm:$0xff]  ;;  %s3460_s27 = smov 104   ;;  %s3461_s28 = smov 88   ;;  %vm307_vm3 = vcmask 64512  }
   0x7   :  { %2982 = vmatprep.subr.mxu1 %v159_v13  ;;  %v149_v38 = vld [vmem:[%s4910_s7] sm:$0xff]  ;;  %v55_v54 = vld [vmem:[%s4907_s4 + $0x8] sm:$0xff]  ;;  %v56_v56 = vld [vmem:[%s4907_s4 + $0x10] sm:$0xff]  ;;  %s3462_s21 = smov 112   ;;  %s3463_s22 = smov 8   ;;  %vm440_vm4 = vcmask 130048  }
   0x8   :  { %2983 = vmatpush3.msra.mxu1 %v159_v13  ;;  %v54_v47 = vld [vmem:[%s4907_s4] sm:$0xff]  ;;  %v57_v63 = vld [vmem:[%s4907_s4 + $0x18] sm:$0xff]  ;;  %v3673_v9 = vld [vmem:[%s4904_s1 + $0x10] sm:$0xff]  ;;  %s3464_s15 = smov 120   ;;  %s3465_s16 = smov 96   ;;  %vm2662_vm5 = vcmask 261124  }
   0x9   :  { %83 = vadd.xlane.f32.xlu0 %v82_v10  ;;  %89 = vadd.xlane.f32.xlu1 %v88_v11  ;;  %v3666_v8 = vld [vmem:[%s4904_s1 + $0x18] sm:$0xff]  ;;  %v3680_v10 = vld [vmem:[%s4904_s1 + $0x8] sm:$0xff]  ;;  %v3687_v11 = vld [vmem:[%s4904_s1] sm:$0xff]  ;;  %s3466_s13 = smov 80   ;;  %s3467_s14 = smov 16   ;;  %vm2666_vm6 = vcmask 257024  }
   0xa   :  { %2984 = vmatprep.subr.mxu1 %v158_v14  ;;  %v3700_v12 = vld [vmem:[%s4905_s2 + $0x18] sm:$0xff] }
   0xb   :  { %2985 = vmatpush3.msra.mxu1 %v158_v14 }
   0xc   :  { %2986 = vmatprep.subr.mxu1 %v157_v15 }
   0xd   :  { %2987 = vmatpush3.msra.mxu1 %v157_v15 }
   0xe   :  { %2988 = vmatprep.subr.mxu1 %v156_v16 }
   0xf   :  { %2989 = vmatpush3.msra.mxu1 %v156_v16 }
  0x10   :  { %2990 = vmatprep.subr.mxu1 %v155_v27 }
  0x11   :  { %2991 = vmatpush3.msra.mxu1 %v155_v27  ;;  %v3723_v27 = vld [vmem:[%s4905_s2] sm:$0xff] }
  0x12   :  { %2992 = vmatprep.subr.mxu1 %v154_v28 }
  0x13   :  { %2993 = vmatpush3.msra.mxu1 %v154_v28 }
  0x14   :  { %2994 = vmatprep.subr.mxu1 %v153_v30 }
  0x15   :  { %2995 = vmatpush3.msra.mxu1 %v153_v30 }
  0x16   :  { %2996 = vmatprep.subr.mxu1 %v152_v31 }
  0x17   :  { %2997 = vmatpush3.msra.mxu1 %v152_v31 }
  0x18   :  { %2998 = vmatprep.subr.mxu1 %v151_v33 }
  0x19   :  { %2999 = vmatpush3.msra.mxu1 %v151_v33 }
  0x1a   :  { %3000 = vmatprep.subr.mxu1 %v150_v34 }
  0x1b   :  { %3001 = vmatpush3.msra.mxu1 %v150_v34 }
  0x1c   :  { %3002 = vmatprep.subr.mxu1 %v149_v38 }
  0x1d   :  { %3003 = vmatpush3.msra.mxu1 %v149_v38 }
  0x8e   :  { %v81_v17 = vpop.xlane.xlu0 %80  ;;  %v87_v18 = vpop.xlane.xlu1 %86 }
  0x8f   :  { %v92_v19 = vmul.f32 0.03125, %v81_v17  ;;  %v94_v20 = vmul.f32 0.03125, %v87_v18  ;;  %v3707_v17 = vld [vmem:[%s4905_s2 + $0x10] sm:$0xff] }
  0x91   :  { %v96_v21 = vadd.f32 1e-06, %v92_v19  ;;  %v98_v22 = vadd.f32 1e-06, %v94_v20 }
  0x92   :  { %v84_v23 = vpop.xlane.xlu0 %83  ;;  %v90_v25 = vpop.xlane.xlu1 %89 }
  0x93   :  { %3252 = vrsqrt.f32 %v96_v21  ;;  %v93_v24 = vmul.f32 0.03125, %v84_v23  ;;  %v95_v29 = vmul.f32 0.03125, %v90_v25 }
  0x94   :  { %3254 = vrsqrt.f32 %v98_v22  ;;  %v3715_v22 = vld [vmem:[%s4905_s2 + $0x8] sm:$0xff] }
  0x95   :  { %v97_v26 = vadd.f32 1e-06, %v93_v24  ;;  %v99_v32 = vadd.f32 1e-06, %v95_v29 }
  0x97   :  { %3256 = vrsqrt.f32 %v97_v26 }
  0x98   :  { %3258 = vrsqrt.f32 %v99_v32 }
  0xa0   :  { %v3253_v35 = vpop.eup %3252 }
  0xa1   :  { %v3255_v36 = vpop.eup %3254  ;;  %v104_v37 = vmul.f32 %v3253_v35, %v3538_v0 }
  0xa2   :  { %v106_v39 = vmul.f32 %v3255_v36, %v3543_v1 }
  0xa3   :  { %112 = vrot.lane.b32.xlu0 %v104_v37, %s3458_s17 }
  0xa4   :  { %v3257_v40 = vpop.eup %3256 }
  0xa5   :  { %v105_v41 = vmul.f32 %v3257_v40, %v3548_v2  ;;  %v3259_v42 = vpop.eup %3258 }
  0xa6   :  { %v107_v43 = vmul.f32 %v3259_v42, %v3559_v6 }
  0xa7   :  { %116 = vrot.lane.b32.xlu0 %v106_v39, %s3458_s17  ;;  %114 = vrot.lane.b32.xlu1 %v105_v41, %s3458_s17 }
  0xab   :  { %128 = vrot.lane.b32.xlu0 %v106_v39, %s3459_s18  ;;  %124 = vrot.lane.b32.xlu1 %v104_v37, %s3459_s18 }
  0xaf   :  { %126 = vrot.lane.b32.xlu1 %v105_v41, %s3459_s18 }
  0xb3   :  { %118 = vrot.lane.b32.xlu1 %v107_v43, %s3458_s17 }
  0xb7   :  { %130 = vrot.lane.b32.xlu1 %v107_v43, %s3459_s18 }
 0x115   :  { %v113_v44 = vpop.permute.xlu0 %112 }
 0x116   :  { %v136_v48 = vsel %vm78_vm0, %v104_v37, %v113_v44 }
 0x119   :  { %v115_v45 = vpop.permute.xlu1 %114  ;;  %v117_v46 = vpop.permute.xlu0 %116 }
 0x11a   :  { %v138_v53 = vsel %vm78_vm0, %v106_v39, %v117_v46  ;;  %v137_v55 = vsel %vm78_vm0, %v105_v41, %v115_v45 }
 0x11d   :  { %v125_v49 = vpop.permute.xlu1 %124  ;;  %v129_v51 = vpop.permute.xlu0 %128 }
 0x11e   :  { %v141_v50 = vsel %vm140_vm1, %v136_v48, %v125_v49  ;;  %v143_v57 = vsel %vm140_vm1, %v138_v53, %v129_v51 }
 0x11f   :  { %v145_v52 = vmul.f32 %v141_v50, %v54_v47  ;;  %v147_v61 = vmul.f32 %v143_v57, %v56_v56 }
 0x121   :  { %v127_v58 = vpop.permute.xlu1 %126  ;;  %3004 = vmatprep.mubr.msk.f32.mxu1 %vm161_vm2, %v145_v52 }
 0x122   :  { %v142_v59 = vsel %vm140_vm1, %v137_v55, %v127_v58 }
 0x123   :  { %v146_v60 = vmul.f32 %v142_v59, %v55_v54 }
 0x125   :  { %v119_v62 = vpop.permute.xlu1 %118  ;;  %3005 = vmatmul.mubr.msk.f32.vlgmr.msra.gmra.mxu1 %vm161_vm2, %v146_v60 }
 0x126   :  { %3007 = vmatprep.mubr.msk.f32.mxu1 %vm161_vm2, %v147_v61  ;;  %v139_v0 = vsel %vm78_vm0, %v107_v43, %v119_v62 }
 0x129   :  { %v131_v1 = vpop.permute.xlu1 %130 }
 0x12a   :  { %v144_v2 = vsel %vm140_vm1, %v139_v0, %v131_v1 }
 0x12b   :  { %v148_v3 = vmul.f32 %v144_v2, %v57_v63 }
 0x12d   :  { %3008 = vmatmul.mubr.msk.f32.gmra.mxu1 %vm161_vm2, %v148_v3 }
 0x1e5   :  { %v3639_v4 = vpop.f32.mrf.mxu1 }
 0x1e7   :  { %v3641_v5 = vpop.f32.mrf.mxu1 }
 0x1e8   :  { %v348_v55 = vmul.f32 %v3641_v5, %v3687_v11 }
 0x1ed   :  { %v3643_v6 = vpop.f32.mrf.mxu1 }
 0x1ee   :  { %301 = vrot.lane.b32.xlu1 %v3643_v6, %s3460_s27  ;;  %289 = vrot.lane.b32.xlu0 %v3643_v6, %s3461_s28 }
 0x1ef   :  { %v3649_v7 = vpop.f32.mrf.mxu1 }
 0x1f2   :  { %299 = vrot.lane.b32.xlu1 %v3649_v7, %s3460_s27  ;;  %287 = vrot.lane.b32.xlu0 %v3649_v7, %s3461_s28 }
 0x1f6   :  { %297 = vrot.lane.b32.xlu1 %v3639_v4, %s3460_s27  ;;  %285 = vrot.lane.b32.xlu0 %v3639_v4, %s3461_s28 }
 0x1fa   :  { %295 = vrot.lane.b32.xlu1 %v3641_v5, %s3460_s27  ;;  %283 = vrot.lane.b32.xlu0 %v3641_v5, %s3461_s28 }
 0x1fe   :  { %269 = vrot.lane.b32.xlu0 %v3666_v8, %s3458_s17 }
 0x202   :  { %267 = vrot.lane.b32.xlu0 %v3673_v9, %s3458_s17 }
 0x206   :  { %265 = vrot.lane.b32.xlu0 %v3680_v10, %s3458_s17 }
 0x20a   :  { %263 = vrot.lane.b32.xlu0 %v3687_v11, %s3458_s17 }
 0x20e   :  { %336 = vrot.lane.b32.xlu0 %v3641_v5, %s3462_s21 }
 0x212   :  { %340 = vrot.lane.b32.xlu0 %v3649_v7, %s3462_s21 }
 0x216   :  { %380 = vrot.lane.b32.xlu0 %v3641_v5, %s3463_s22 }
 0x260   :  { %v302_v13 = vpop.permute.xlu1 %301  ;;  %v290_v14 = vpop.permute.xlu0 %289 }
 0x261   :  { %v311_v15 = vsel %vm307_vm3, %v290_v14, %v302_v13 }
 0x262   :  { %v315_v16 = vmul.f32 %v311_v15, %v3700_v12 }
 0x264   :  { %326 = vrot.lane.b32.xlu1 %v315_v16, %s3458_s17  ;;  %v300_v18 = vpop.permute.xlu1 %299  ;;  %v288_v19 = vpop.permute.xlu0 %287 }
 0x265   :  { %v310_v20 = vsel %vm307_vm3, %v288_v19, %v300_v18  ;;  %v349_v18 = vmul.f32 %v3639_v4, %v3680_v10 }
 0x266   :  { %v314_v21 = vmul.f32 %v310_v20, %v3707_v17  ;;  %v350_v20 = vmul.f32 %v3649_v7, %v3673_v9 }
 0x268   :  { %v298_v23 = vpop.permute.xlu1 %297  ;;  %324 = vrot.lane.b32.xlu1 %v314_v21, %s3458_s17  ;;  %v286_v24 = vpop.permute.xlu0 %285 }
 0x269   :  { %v309_v25 = vsel %vm307_vm3, %v286_v24, %v298_v23 }
 0x26a   :  { %v313_v26 = vmul.f32 %v309_v25, %v3715_v22 }
 0x26c   :  { %v296_v28 = vpop.permute.xlu1 %295  ;;  %322 = vrot.lane.b32.xlu1 %v313_v26, %s3458_s17  ;;  %v284_v29 = vpop.permute.xlu0 %283 }
 0x26d   :  { %v308_v30 = vsel %vm307_vm3, %v284_v29, %v296_v28  ;;  %v351_v28 = vmul.f32 %v3643_v6, %v3666_v8 }
 0x26e   :  { %v312_v31 = vmul.f32 %v308_v30, %v3723_v27 }
 0x270   :  { %320 = vrot.lane.b32.xlu1 %v312_v31, %s3458_s17  ;;  %v3737_v32 = vpop.permute.xlu0 %269 }
 0x271   :  { %v278_v41 = vmul.f32 %v3643_v6, %v3737_v32 }
 0x274   :  { %338 = vrot.lane.b32.xlu1 %v3639_v4, %s3462_s21  ;;  %v3739_v33 = vpop.permute.xlu0 %267 }
 0x275   :  { %v277_v47 = vmul.f32 %v3739_v33, %v3649_v7 }
 0x278   :  { %342 = vrot.lane.b32.xlu1 %v3643_v6, %s3462_s21  ;;  %v3741_v34 = vpop.permute.xlu0 %265 }
 0x279   :  { %v276_v38 = vmul.f32 %v3639_v4, %v3741_v34 }
 0x27c   :  { %356 = vrot.lane.b32.xlu1 %v3641_v5, %s3464_s15  ;;  %v3743_v37 = vpop.permute.xlu0 %263 }
 0x27d   :  { %v275_v42 = vmul.f32 %v3743_v37, %v3641_v5 }
 0x280   :  { %358 = vrot.lane.b32.xlu1 %v3639_v4, %s3464_s15  ;;  %v3752_v43 = vpop.permute.xlu0 %336 }
 0x281   :  { %v352_v30 = vmul.f32 %v3752_v43, %v3687_v11 }
 0x284   :  { %v3760_v50 = vpop.permute.xlu0 %340 }
 0x288   :  { %v381_v52 = vpop.permute.xlu0 %380 }
 0x2d6   :  { %v327_v35 = vpop.permute.xlu1 %326 }
 0x2d7   :  { %v335_v45 = vadd.f32 %v327_v35, %v278_v41 }
 0x2da   :  { %v325_v36 = vpop.permute.xlu1 %324 }
 0x2db   :  { %v334_v49 = vadd.f32 %v325_v36, %v277_v47 }
 0x2de   :  { %v323_v39 = vpop.permute.xlu1 %322 }
 0x2df   :  { %v333_v40 = vadd.f32 %v323_v39, %v276_v38 }
 0x2e1   :  { %434 = vrot.lane.b32.xlu0 %v333_v40, %s3465_s16 }
 0x2e2   :  { %v321_v44 = vpop.permute.xlu1 %320 }
 0x2e3   :  { %v332_v46 = vadd.f32 %v321_v44, %v275_v42 }
 0x2e5   :  { %438 = vrot.lane.b32.xlu0 %v335_v45, %s3465_s16  ;;  %432 = vrot.lane.b32.xlu1 %v332_v46, %s3465_s16  ;;  %v354_v45 = vmul.f32 %v3760_v50, %v3673_v9 }
 0x2e6   :  { %v3758_v48 = vpop.permute.xlu1 %338 }
 0x2e7   :  { %v353_v41 = vmul.f32 %v3758_v48, %v3680_v10 }
 0x2e9   :  { %382 = vrot.lane.b32.xlu0 %v3639_v4, %s3463_s22  ;;  %436 = vrot.lane.b32.xlu1 %v334_v49, %s3465_s16 }
 0x2ea   :  { %v3765_v51 = vpop.permute.xlu1 %342 }
 0x2ed   :  { %360 = vrot.lane.b32.xlu0 %v3649_v7, %s3464_s15  ;;  %384 = vrot.lane.b32.xlu1 %v3649_v7, %s3463_s22 }
 0x2ee   :  { %v357_v53 = vpop.permute.xlu1 %356 }
 0x2ef   :  { %v404_v54 = vsel %vm307_vm3, %v357_v53, %v381_v52 }
 0x2f0   :  { %v412_v56 = vmul.f32 %v404_v54, %v3723_v27 }
 0x2f1   :  { %362 = vrot.lane.b32.xlu0 %v3643_v6, %s3464_s15  ;;  %386 = vrot.lane.b32.xlu1 %v3643_v6, %s3463_s22 }
 0x2f2   :  { %v420_v57 = vadd.f32 %v412_v56, %v348_v55  ;;  %v359_v58 = vpop.permute.xlu1 %358 }
 0x2f4   :  { %3018 = vmatprep.mubr.msk.f32.mxu1 %vm440_vm4, %v420_v57 }
 0x2f5   :  { %388 = vrot.lane.b32.xlu1 %v3752_v43, %s3463_s22  ;;  %364 = vrot.lane.b32.xlu0 %v3752_v43, %s3464_s15 }
 0x2f9   :  { %390 = vrot.lane.b32.xlu1 %v3758_v48, %s3463_s22  ;;  %366 = vrot.lane.b32.xlu0 %v3758_v48, %s3464_s15 }
 0x2fd   :  { %392 = vrot.lane.b32.xlu1 %v3760_v50, %s3463_s22  ;;  %368 = vrot.lane.b32.xlu0 %v3760_v50, %s3464_s15 }
 0x301   :  { %394 = vrot.lane.b32.xlu1 %v3765_v51, %s3463_s22  ;;  %370 = vrot.lane.b32.xlu0 %v3765_v51, %s3464_s15 }
 0x353   :  { %v435_v59 = vpop.permute.xlu0 %434 }
 0x357   :  { %v433_v60 = vpop.permute.xlu1 %432  ;;  %v439_v61 = vpop.permute.xlu0 %438 }
 0x358   :  { %3010 = vmatprep.subr.msk.mxu1 %vm440_vm4, %v439_v61 }
 0x359   :  { %3011 = vmatpush3.xpose.msk.msra.mxu1 %vm440_vm4, %v439_v61 }
 0x35b   :  { %v437_v62 = vpop.permute.xlu1 %436  ;;  %v383_v63 = vpop.permute.xlu0 %382 }
 0x35c   :  { %3012 = vmatprep.subr.msk.mxu1 %vm440_vm4, %v437_v62  ;;  %v405_v0 = vsel %vm307_vm3, %v359_v58, %v383_v63 }
 0x35d   :  { %3013 = vmatpush3.xpose.msk.msra.mxu1 %vm440_vm4, %v437_v62  ;;  %v413_v13 = vmul.f32 %v405_v0, %v3715_v22 }
 0x35e   :  { %3014 = vmatprep.subr.msk.mxu1 %vm440_vm4, %v435_v59 }
 0x35f   :  { %v385_v1 = vpop.permute.xlu1 %384  ;;  %v361_v2 = vpop.permute.xlu0 %360  ;;  %v421_v21 = vadd.f32 %v413_v13, %v349_v18  ;;  %v71_v13 = vld [vmem:[%s4906_s3 + $0x8] sm:$0xff] }
 0x360   :  { %v406_v3 = vsel %vm307_vm3, %v361_v2, %v385_v1 }
 0x361   :  { %3015 = vmatpush3.xpose.msk.msra.mxu1 %vm440_vm4, %v435_v59  ;;  %v414_v14 = vmul.f32 %v406_v3, %v3707_v17 }
 0x362   :  { %3016 = vmatprep.subr.msk.mxu1 %vm440_vm4, %v433_v60 }
 0x363   :  { %v387_v15 = vpop.permute.xlu1 %386  ;;  %v363_v16 = vpop.permute.xlu0 %362  ;;  %v422_v24 = vadd.f32 %v414_v14, %v350_v20 }
 0x364   :  { %v407_v19 = vsel %vm307_vm3, %v363_v16, %v387_v15 }
 0x365   :  { %3017 = vmatpush3.xpose.msk.msra.mxu1 %vm440_vm4, %v433_v60  ;;  %v415_v23 = vmul.f32 %v407_v19, %v3700_v12  ;;  %v70_v19 = vld [vmem:[%s4906_s3] sm:$0xff] }
 0x367   :  { %v389_v25 = vpop.permute.xlu1 %388  ;;  %v365_v26 = vpop.permute.xlu0 %364  ;;  %v423_v35 = vadd.f32 %v415_v23, %v351_v28 }
 0x368   :  { %v408_v29 = vsel %vm307_vm3, %v365_v26, %v389_v25  ;;  %3019 = vmatmul.mubr.msk.f32.vlgmr.msra.gmra.mxu1 %vm440_vm4, %v421_v21  ;;  %v73_v26 = vld [vmem:[%s4906_s3 + $0x18] sm:$0xff] }
 0x369   :  { %v416_v31 = vmul.f32 %v408_v29, %v3723_v27  ;;  %3021 = vmatprep.mubr.msk.f32.mxu1 %vm440_vm4, %v422_v24 }
 0x36b   :  { %v424_v36 = vadd.f32 %v416_v31, %v352_v30  ;;  %v391_v38 = vpop.permute.xlu1 %390  ;;  %v367_v39 = vpop.permute.xlu0 %366 }
 0x36c   :  { %v409_v40 = vsel %vm307_vm3, %v367_v39, %v391_v38  ;;  %3022 = vmatmul.mubr.msk.f32.gmra.mxu1 %vm440_vm4, %v423_v35 }
 0x36d   :  { %v417_v42 = vmul.f32 %v409_v40, %v3715_v22  ;;  %3024 = vmatprep.mubr.msk.f32.mxu1 %vm440_vm4, %v424_v36  ;;  %v355_v22 = vmul.f32 %v3765_v51, %v3666_v8  ;;  %v72_v36 = vld [vmem:[%s4906_s3 + $0x10] sm:$0xff] }
 0x36f   :  { %v425_v11 = vadd.f32 %v417_v42, %v353_v41  ;;  %v393_v43 = vpop.permute.xlu1 %392  ;;  %v369_v27 = vpop.permute.xlu0 %368 }
 0x370   :  { %v410_v44 = vsel %vm307_vm3, %v369_v27, %v393_v43 }
 0x371   :  { %v418_v46 = vmul.f32 %v410_v44, %v3707_v17  ;;  %3025 = vmatmul.mubr.msk.f32.gmra.mxu1 %vm440_vm4, %v425_v11 }
 0x373   :  { %v426_v47 = vadd.f32 %v418_v46, %v354_v45  ;;  %v395_v49 = vpop.permute.xlu1 %394  ;;  %v371_v52 = vpop.permute.xlu0 %370 }
 0x374   :  { %v411_v10 = vsel %vm307_vm3, %v371_v52, %v395_v49 }
 0x375   :  { %v419_v48 = vmul.f32 %v411_v10, %v3700_v12  ;;  %3027 = vmatprep.mubr.msk.f32.mxu1 %vm440_vm4, %v426_v47 }
 0x377   :  { %v427_v53 = vadd.f32 %v419_v48, %v355_v22 }
 0x379   :  { %3028 = vmatmul.mubr.msk.f32.gmra.mxu1 %vm440_vm4, %v427_v53 }
 0x428   :  { %v3020_v9 = vpop.f32.mrf.mxu1 }
 0x429   :  { %v579_v50 = vmul.f32 0.25, %v3020_v9 }
 0x42a   :  { %v539_v17 = vpop.f32.mrf.mxu1 }
 0x42b   :  { %v587_v54 = vmul.f32 0.02, %v579_v50  ;;  %v578_v55 = vmul.f32 0.25, %v539_v17 }
 0x42c   :  { %v3023_v56 = vpop.f32.mrf.mxu1 }
 0x42d   :  { %3260 = vtanh.f32 %v587_v54  ;;  %v586_v57 = vmul.f32 0.02, %v578_v55  ;;  %v581_v58 = vmul.f32 0.25, %v3023_v56 }
 0x42e   :  { %v549_v59 = vpop.f32.mrf.mxu1 }
 0x42f   :  { %3262 = vtanh.f32 %v586_v57  ;;  %v589_v60 = vmul.f32 0.02, %v581_v58  ;;  %v580_v8 = vmul.f32 0.25, %v549_v59 }
 0x431   :  { %3264 = vtanh.f32 %v589_v60  ;;  %v588_v12 = vmul.f32 0.02, %v580_v8  ;;  %v3026_v51 = vpop.f32.mrf.mxu1 }
 0x432   :  { %v583_v61 = vmul.f32 0.25, %v3026_v51 }
 0x433   :  { %3266 = vtanh.f32 %v588_v12  ;;  %v559_v62 = vpop.f32.mrf.mxu1 }
 0x434   :  { %v591_v63 = vmul.f32 0.02, %v583_v61  ;;  %v582_v0 = vmul.f32 0.25, %v559_v62 }
 0x436   :  { %3268 = vtanh.f32 %v591_v63  ;;  %v590_v1 = vmul.f32 0.02, %v582_v0 }
 0x438   :  { %3270 = vtanh.f32 %v590_v1 }
 0x439   :  { %v3029_v2 = vpop.f32.mrf.mxu1 }
 0x43a   :  { %v3261_v3 = vpop.eup %3260  ;;  %v585_v14 = vmul.f32 0.25, %v3029_v2 }
 0x43b   :  { %v603_v15 = vmul.f32 50.0, %v3261_v3  ;;  %v569_v16 = vpop.f32.mrf.mxu1 }
 0x43c   :  { %v3263_v18 = vpop.eup %3262  ;;  %v593_v20 = vmul.f32 0.02, %v585_v14  ;;  %v584_v21 = vmul.f32 0.25, %v569_v16 }
 0x43d   :  { %v611_v23 = vadd.f32 %v603_v15, %v71_v13  ;;  %v602_v24 = vmul.f32 50.0, %v3263_v18 }
 0x43e   :  { %v3265_v25 = vpop.eup %3264  ;;  %3272 = vtanh.f32 %v593_v20  ;;  %v592_v28 = vmul.f32 0.02, %v584_v21 }
 0x43f   :  { %v620_v29 = vmul.f32 1.442695, %v611_v23  ;;  %v610_v30 = vadd.f32 %v602_v24, %v70_v19  ;;  %v605_v31 = vmul.f32 50.0, %v3265_v25 }
 0x440   :  { %v3267_v35 = vpop.eup %3266  ;;  %3274 = vtanh.f32 %v592_v28 }
 0x441   :  { %3276 = vpow2.f32 %v620_v29  ;;  %v618_v38 = vmul.f32 1.442695, %v610_v30  ;;  %v613_v39 = vadd.f32 %v605_v31, %v73_v26  ;;  %v604_v40 = vmul.f32 50.0, %v3267_v35 }
 0x443   :  { %v3269_v41 = vpop.eup %3268  ;;  %3278 = vpow2.f32 %v618_v38  ;;  %v624_v42 = vmul.f32 1.442695, %v613_v39  ;;  %v612_v11 = vadd.f32 %v604_v40, %v72_v36 }
 0x444   :  { %v607_v43 = vmul.f32 50.0, %v3269_v41 }
 0x445   :  { %v3271_v27 = vpop.eup %3270  ;;  %3280 = vpow2.f32 %v624_v42  ;;  %v622_v44 = vmul.f32 1.442695, %v612_v11 }
 0x446   :  { %v615_v45 = vadd.f32 %v607_v43, %v71_v13  ;;  %v606_v46 = vmul.f32 50.0, %v3271_v27 }
 0x447   :  { %3282 = vpow2.f32 %v622_v44 }
 0x448   :  { %v628_v47 = vmul.f32 1.442695, %v615_v45  ;;  %v614_v49 = vadd.f32 %v606_v46, %v70_v19 }
 0x44a   :  { %3284 = vpow2.f32 %v628_v47  ;;  %v626_v52 = vmul.f32 1.442695, %v614_v49  ;;  %v886_v49 = vld [vmem:[%s4911_s8 + $0x58] sm:$0xff] }
 0x44b   :  { %v3273_v10 = vpop.eup %3272  ;;  %3050 = vmatprep.subr.mxu1 %v886_v49 }
 0x44c   :  { %v609_v22 = vmul.f32 50.0, %v3273_v10  ;;  %3286 = vpow2.f32 %v626_v52  ;;  %v885_v52 = vld [vmem:[%s4911_s8 + $0x50] sm:$0xff]  ;;  %3051 = vmatpush3.msra.mxu1 %v886_v49 }
 0x44d   :  { %v3275_v48 = vpop.eup %3274  ;;  %3052 = vmatprep.subr.mxu1 %v885_v52  ;;  %v3403_v49 = vld [vmem:[%s4903_s0 + $0x10] sm:$0xff] }
 0x44e   :  { %v3851_v53 = vpop.eup %3276  ;;  %v617_v9 = vadd.f32 %v609_v22, %v73_v26  ;;  %v608_v50 = vmul.f32 50.0, %v3275_v48  ;;  %v884_v22 = vld [vmem:[%s4911_s8 + $0x48] sm:$0xff]  ;;  %3053 = vmatpush3.msra.mxu1 %v885_v52 }
 0x44f   :  { %v637_v17 = vsel %vm78_vm0, %v3851_v53, 0.0  ;;  %3054 = vmatprep.subr.mxu1 %v884_v22 }
 0x450   :  { %v3279_v54 = vpop.eup %3278  ;;  %v632_v55 = vmul.f32 1.442695, %v617_v9  ;;  %v616_v56 = vadd.f32 %v608_v50, %v72_v36  ;;  %638 = vadd.xlane.f32.xlu1 %v637_v17  ;;  %3055 = vmatpush3.msra.mxu1 %v884_v22  ;;  %v882_v9 = vld [vmem:[%s4911_s8 + $0x38] sm:$0xff]  ;;  %v881_v50 = vld [vmem:[%s4911_s8 + $0x30] sm:$0xff]  ;;  %v880_v17 = vld [vmem:[%s4911_s8 + $0x28] sm:$0xff] }
 0x451   :  { %v634_v57 = vsel %vm78_vm0, %v3279_v54, 0.0 }
 0x452   :  { %v3856_v58 = vpop.eup %3280  ;;  %3288 = vpow2.f32 %v632_v55  ;;  %v630_v59 = vmul.f32 1.442695, %v616_v56  ;;  %635 = vadd.xlane.f32.xlu0 %v634_v57  ;;  %v878_v55 = vld [vmem:[%s4911_s8 + $0x18] sm:$0xff]  ;;  %v877_v56 = vld [vmem:[%s4911_s8 + $0x10] sm:$0xff]  ;;  %v876_v57 = vld [vmem:[%s4911_s8 + $0x8] sm:$0xff] }
 0x453   :  { %v643_v60 = vsel %vm78_vm0, %v3856_v58, 0.0 }
 0x454   :  { %3290 = vpow2.f32 %v630_v59  ;;  %v3283_v8 = vpop.eup %3282 }
 0x455   :  { %v640_v61 = vsel %vm78_vm0, %v3283_v8, 0.0 }
 0x456   :  { %644 = vadd.xlane.f32.xlu0 %v643_v60 }
 0x457   :  { %v3860_v12 = vpop.eup %3284 }
 0x458   :  { %v649_v51 = vsel %vm78_vm0, %v3860_v12, 0.0 }
 0x459   :  { %650 = vadd.xlane.f32.xlu1 %v649_v51  ;;  %v3287_v62 = vpop.eup %3286 }
 0x45a   :  { %641 = vadd.xlane.f32.xlu0 %v640_v61  ;;  %v646_v63 = vsel %vm78_vm0, %v3287_v62, 0.0 }
 0x45e   :  { %647 = vadd.xlane.f32.xlu0 %v646_v63 }
 0x45f   :  { %v3289_v0 = vpop.eup %3288 }
 0x460   :  { %v655_v1 = vsel %vm78_vm0, %v3289_v0, 0.0 }
 0x461   :  { %v3291_v2 = vpop.eup %3290  ;;  %656 = vadd.xlane.f32.xlu1 %v655_v1 }
 0x462   :  { %v652_v3 = vsel %vm78_vm0, %v3291_v2, 0.0 }
 0x463   :  { %653 = vadd.xlane.f32.xlu0 %v652_v3 }
 0x472   :  { %678 = vrot.lane.b32.xlu1 %v3649_v7, %s3466_s13 }
 0x476   :  { %676 = vrot.lane.b32.xlu1 %v3639_v4, %s3466_s13 }
 0x479   :  { %680 = vrot.lane.b32.xlu0 %v3643_v6, %s3466_s13 }
 0x47a   :  { %674 = vrot.lane.b32.xlu1 %v3641_v5, %s3466_s13 }
 0x4d9   :  { %v639_v15 = vpop.xlane.xlu1 %638 }
 0x4db   :  { %v636_v13 = vpop.xlane.xlu0 %635 }
 0x4dc   :  { %3292 = vrcp.f32 %v636_v13  ;;  %v58_v13 = vld [vmem:[%s4908_s5] sm:$0xff] }
 0x4dd   :  { %3294 = vrcp.f32 %v639_v15  ;;  %v59_v15 = vld [vmem:[%s4908_s5 + $0x8] sm:$0xff] }
 0x4df   :  { %v645_v14 = vpop.xlane.xlu0 %644 }
 0x4e2   :  { %v651_v18 = vpop.xlane.xlu1 %650 }
 0x4e3   :  { %v642_v16 = vpop.xlane.xlu0 %641 }
 0x4e4   :  { %3296 = vrcp.f32 %v642_v16 }
 0x4e5   :  { %3298 = vrcp.f32 %v645_v14 }
 0x4e7   :  { %v648_v19 = vpop.xlane.xlu0 %647 }
 0x4e8   :  { %3300 = vrcp.f32 %v648_v19 }
 0x4e9   :  { %v3293_v20 = vpop.eup %3292  ;;  %3302 = vrcp.f32 %v651_v18 }
 0x4ea   :  { %v657_v7 = vpop.xlane.xlu1 %656  ;;  %v666_v21 = vmul.f32 %v3293_v20, %v3279_v54  ;;  %v3295_v24 = vpop.eup %3294  ;;  %v879_v54 = vld [vmem:[%s4911_s8 + $0x20] sm:$0xff] }
 0x4eb   :  { %v667_v28 = vmul.f32 %v3295_v24, %v3851_v53  ;;  %v883_v53 = vld [vmem:[%s4911_s8 + $0x40] sm:$0xff] }
 0x4ec   :  { %3038 = vmatprep.mubr.msk.f32.mxu0 %vm78_vm0, %v666_v21  ;;  %v654_v4 = vpop.xlane.xlu0 %653  ;;  %3056 = vmatprep.subr.mxu1 %v883_v53 }
 0x4ed   :  { %3304 = vrcp.f32 %v654_v4  ;;  %3057 = vmatpush3.msra.mxu1 %v883_v53 }
 0x4ee   :  { %v679_v6 = vpop.permute.xlu1 %678  ;;  %3306 = vrcp.f32 %v657_v7  ;;  %3058 = vmatprep.subr.mxu1 %v882_v9 }
 0x4ef   :  { %3059 = vmatpush3.msra.mxu1 %v882_v9  ;;  %v1071_v9 = vld [vmem:[%s4912_s9 + $0x58] sm:$0xff] }
 0x4f0   :  { %v681_v5 = vpop.permute.xlu0 %680  ;;  %3060 = vmatprep.subr.mxu1 %v881_v50 }
 0x4f1   :  { %3030 = vmatprep.subr.mxu0 %v681_v5  ;;  %v3297_v25 = vpop.eup %3296  ;;  %3061 = vmatpush3.msra.mxu1 %v881_v50  ;;  %v1070_v50 = vld [vmem:[%s4912_s9 + $0x50] sm:$0xff] }
 0x4f2   :  { %v677_v23 = vpop.permute.xlu1 %676  ;;  %3031 = vmatpush3.msra.mxu0 %v681_v5  ;;  %v3299_v29 = vpop.eup %3298  ;;  %v668_v30 = vmul.f32 %v3297_v25, %v3283_v8  ;;  %3062 = vmatprep.subr.mxu1 %v880_v17  ;;  %v61_v25 = vld [vmem:[%s4908_s5 + $0x18] sm:$0xff] }
 0x4f3   :  { %3032 = vmatprep.subr.mxu0 %v679_v6  ;;  %v669_v35 = vmul.f32 %v3299_v29, %v3856_v58  ;;  %3063 = vmatpush3.msra.mxu1 %v880_v17  ;;  %v875_v58 = vld [vmem:[%s4911_s8] sm:$0xff]  ;;  %v1069_v17 = vld [vmem:[%s4912_s9 + $0x48] sm:$0xff] }
 0x4f4   :  { %3033 = vmatpush3.msra.mxu0 %v679_v6  ;;  %3064 = vmatprep.subr.mxu1 %v879_v54 }
 0x4f5   :  { %3034 = vmatprep.subr.mxu0 %v677_v23  ;;  %v3301_v31 = vpop.eup %3300  ;;  %3065 = vmatpush3.msra.mxu1 %v879_v54  ;;  %v1068_v54 = vld [vmem:[%s4912_s9 + $0x40] sm:$0xff] }
 0x4f6   :  { %v675_v26 = vpop.permute.xlu1 %674  ;;  %3035 = vmatpush3.msra.mxu0 %v677_v23  ;;  %v3303_v36 = vpop.eup %3302  ;;  %v670_v38 = vmul.f32 %v3301_v31, %v3287_v62  ;;  %3066 = vmatprep.subr.mxu1 %v878_v55  ;;  %v60_v23 = vld [vmem:[%s4908_s5 + $0x10] sm:$0xff] }
 0x4f7   :  { %3036 = vmatprep.subr.mxu0 %v675_v26  ;;  %v671_v40 = vmul.f32 %v3303_v36, %v3860_v12  ;;  %3067 = vmatpush3.msra.mxu1 %v878_v55  ;;  %v3400_v36 = vld [vmem:[%s4903_s0 + $0x8] sm:$0xff]  ;;  %v1067_v55 = vld [vmem:[%s4912_s9 + $0x38] sm:$0xff] }
 0x4f8   :  { %3037 = vmatpush3.msra.mxu0 %v675_v26  ;;  %3068 = vmatprep.subr.mxu1 %v877_v56 }
 0x4f9   :  { %3039 = vmatmul.mubr.msk.f32.vlgmr.msra.gmra.mxu0 %vm78_vm0, %v667_v28  ;;  %3069 = vmatpush3.msra.mxu1 %v877_v56  ;;  %v1066_v56 = vld [vmem:[%s4912_s9 + $0x30] sm:$0xff] }
 0x4fa   :  { %3041 = vmatprep.mubr.msk.f32.mxu0 %vm78_vm0, %v668_v30  ;;  %v3305_v39 = vpop.eup %3304  ;;  %3070 = vmatprep.subr.mxu1 %v876_v57 }
 0x4fb   :  { %v3307_v41 = vpop.eup %3306  ;;  %v672_v42 = vmul.f32 %v3305_v39, %v3291_v2  ;;  %3071 = vmatpush3.msra.mxu1 %v876_v57  ;;  %3080 = vmatprep.subr.mxu0 %v1071_v9  ;;  %v1065_v57 = vld [vmem:[%s4912_s9 + $0x28] sm:$0xff] }
 0x4fc   :  { %v673_v11 = vmul.f32 %v3307_v41, %v3289_v0  ;;  %3072 = vmatprep.subr.mxu1 %v875_v58  ;;  %3081 = vmatpush3.msra.mxu0 %v1071_v9 }
 0x4fd   :  { %3042 = vmatmul.mubr.msk.f32.gmra.mxu0 %vm78_vm0, %v669_v35  ;;  %3073 = vmatpush3.msra.mxu1 %v875_v58 }
 0x4fe   :  { %3044 = vmatprep.mubr.msk.f32.mxu0 %vm78_vm0, %v670_v38  ;;  %3082 = vmatprep.subr.mxu0 %v1070_v50 }
 0x4ff   :  { %3083 = vmatpush3.msra.mxu0 %v1070_v50 }
 0x500   :  { %3084 = vmatprep.subr.mxu0 %v1069_v17 }
 0x501   :  { %3045 = vmatmul.mubr.msk.f32.gmra.mxu0 %vm78_vm0, %v671_v40  ;;  %v3401_v40 = vld [vmem:[%s4903_s0] sm:$0xff] }
 0x502   :  { %3047 = vmatprep.mubr.msk.f32.mxu0 %vm78_vm0, %v672_v42  ;;  %3085 = vmatpush3.msra.mxu0 %v1069_v17  ;;  %v1268_v17 = vld [vmem:[%s4913_s10 + $0x78] sm:$0xff] }
 0x503   :  { %3086 = vmatprep.subr.mxu0 %v1068_v54 }
 0x504   :  { %3087 = vmatpush3.msra.mxu0 %v1068_v54  ;;  %v3468_v54 = vmov 0.0  }
 0x505   :  { %3048 = vmatmul.mubr.msk.f32.gmra.mxu0 %vm78_vm0, %v673_v11  ;;  %3088 = vmatprep.subr.mxu0 %v1067_v55 }
 0x506   :  { %3089 = vmatpush3.msra.mxu0 %v1067_v55  ;;  %1289 = vmatprep.subr.mxu1 %v3468_v54  ;;  %v1267_v55 = vld [vmem:[%s4913_s10 + $0x70] sm:$0xff] }
 0x507   :  { %3090 = vmatprep.subr.mxu0 %v1066_v56 }
 0x508   :  { %3091 = vmatpush3.msra.mxu0 %v1066_v56  ;;  %v1266_v56 = vld [vmem:[%s4913_s10 + $0x68] sm:$0xff] }
 0x509   :  { %3092 = vmatprep.subr.mxu0 %v1065_v57 }
 0x50a   :  { %3093 = vmatpush3.msra.mxu0 %v1065_v57  ;;  %v1265_v57 = vld [vmem:[%s4913_s10 + $0x60] sm:$0xff] }
 0x5b9   :  { %v3040_v43 = vpop.f32.mrf.mxu0 }
 0x5bb   :  { %v776_v27 = vpop.f32.mrf.mxu0 }
 0x5bd   :  { %v3043_v44 = vpop.f32.mrf.mxu0 }
 0x5bf   :  { %v786_v45 = vpop.f32.mrf.mxu0 }
 0x5c1   :  { %v3046_v46 = vpop.f32.mrf.mxu0 }
 0x5c2   :  { %821 = vrot.lane.b32.xlu1 %v3046_v46, %s3467_s14  ;;  %v3402_v46 = vld [vmem:[%s4903_s0 + $0x18] sm:$0xff] }
 0x5c3   :  { %v796_v47 = vpop.f32.mrf.mxu0 }
 0x5c4   :  { %819 = vrot.lane.b32.xlu0 %v796_v47, %s3467_s14 }
 0x5c5   :  { %v3049_v10 = vpop.f32.mrf.mxu0 }
 0x5c6   :  { %825 = vrot.lane.b32.xlu1 %v3049_v10, %s3467_s14 }
 0x5c7   :  { %v806_v48 = vpop.f32.mrf.mxu0 }
 0x5c8   :  { %823 = vrot.lane.b32.xlu0 %v806_v48, %s3467_s14 }
 0x634   :  { %v822_v59 = vpop.permute.xlu1 %821 }
 0x635   :  { %v832_v60 = vsel %vm440_vm4, %v3040_v43, %v822_v59 }
 0x636   :  { %v820_v8 = vpop.permute.xlu0 %819  ;;  %841 = vrot.lane.b32.xlu1 %v832_v60, %s3458_s17 }
 0x637   :  { %v831_v12 = vsel %vm440_vm4, %v776_v27, %v820_v8 }
 0x638   :  { %839 = vrot.lane.b32.xlu0 %v831_v12, %s3458_s17  ;;  %v826_v51 = vpop.permute.xlu1 %825 }
 0x639   :  { %v834_v62 = vsel %vm440_vm4, %v3043_v44, %v826_v51 }
 0x63a   :  { %853 = vrot.lane.b32.xlu1 %v832_v60, %s3459_s18  ;;  %v824_v61 = vpop.permute.xlu0 %823 }
 0x63b   :  { %v833_v63 = vsel %vm440_vm4, %v786_v45, %v824_v61  ;;  %v1064_v61 = vld [vmem:[%s4912_s9 + $0x20] sm:$0xff] }
 0x63c   :  { %851 = vrot.lane.b32.xlu0 %v831_v12, %s3459_s18  ;;  %3094 = vmatprep.subr.mxu0 %v1064_v61 }
 0x63d   :  { %3095 = vmatpush3.msra.mxu0 %v1064_v61  ;;  %v1260_v61 = vld [vmem:[%s4913_s10 + $0x38] sm:$0xff] }
 0x63e   :  { %845 = vrot.lane.b32.xlu1 %v834_v62, %s3458_s17 }
 0x640   :  { %843 = vrot.lane.b32.xlu0 %v833_v63, %s3458_s17 }
 0x642   :  { %857 = vrot.lane.b32.xlu1 %v834_v62, %s3459_s18 }
 0x644   :  { %855 = vrot.lane.b32.xlu0 %v833_v63, %s3459_s18 }
 0x6a8   :  { %v842_v0 = vpop.permute.xlu1 %841 }
 0x6a9   :  { %v864_v3 = vsel %vm78_vm0, %v832_v60, %v842_v0 }
 0x6aa   :  { %v840_v1 = vpop.permute.xlu0 %839 }
 0x6ab   :  { %v863_v14 = vsel %vm78_vm0, %v831_v12, %v840_v1  ;;  %v1062_v1 = vld [vmem:[%s4912_s9 + $0x10] sm:$0xff] }
 0x6ac   :  { %v854_v2 = vpop.permute.xlu1 %853 }
 0x6ad   :  { %v868_v16 = vsel %vm140_vm1, %v864_v3, %v854_v2  ;;  %v1061_v3 = vld [vmem:[%s4912_s9 + $0x8] sm:$0xff] }
 0x6ae   :  { %v852_v18 = vpop.permute.xlu0 %851  ;;  %v872_v21 = vmul.f32 %v868_v16, %v59_v15  ;;  %v1060_v15 = vld [vmem:[%s4912_s9] sm:$0xff] }
 0x6af   :  { %v867_v19 = vsel %vm140_vm1, %v863_v14, %v852_v18 }
 0x6b0   :  { %v871_v20 = vmul.f32 %v867_v19, %v58_v13  ;;  %v846_v7 = vpop.permute.xlu1 %845 }
 0x6b1   :  { %v866_v5 = vsel %vm78_vm0, %v834_v62, %v846_v7 }
 0x6b2   :  { %3074 = vmatprep.mubr.msk.f32.mxu1 %vm161_vm2, %v871_v20  ;;  %v844_v4 = vpop.permute.xlu0 %843 }
 0x6b3   :  { %3075 = vmatmul.mubr.msk.f32.vlgmr.msra.gmra.mxu1 %vm161_vm2, %v872_v21  ;;  %v865_v24 = vsel %vm78_vm0, %v833_v63, %v844_v4  ;;  %v1063_v63 = vld [vmem:[%s4912_s9 + $0x18] sm:$0xff] }
 0x6b4   :  { %v858_v6 = vpop.permute.xlu1 %857  ;;  %3096 = vmatprep.subr.mxu0 %v1063_v63  ;;  %1290 = vmatpush1.msra.mxu1 %v1268_v17  ;;  %v1269_v17 = vld [vmem:[%s4913_s10 + $0x80] sm:$0xff] }
 0x6b5   :  { %v870_v26 = vsel %vm140_vm1, %v866_v5, %v858_v6  ;;  %3097 = vmatpush3.msra.mxu0 %v1063_v63  ;;  %1291 = vmatprep.subr.mxu1 %v3468_v54  ;;  %v1258_v63 = vld [vmem:[%s4913_s10 + $0x28] sm:$0xff] }
 0x6b6   :  { %v856_v28 = vpop.permute.xlu0 %855  ;;  %v874_v31 = vmul.f32 %v870_v26, %v61_v25  ;;  %3098 = vmatprep.subr.mxu0 %v1062_v1  ;;  %1292 = vmatpush1.msra.mxu1 %v1267_v55 }
 0x6b7   :  { %v869_v29 = vsel %vm140_vm1, %v865_v24, %v856_v28  ;;  %3099 = vmatpush3.msra.mxu0 %v1062_v1  ;;  %1293 = vmatprep.subr.mxu1 %v3468_v54  ;;  %v1256_v1 = vld [vmem:[%s4913_s10 + $0x18] sm:$0xff] }
 0x6b8   :  { %v873_v30 = vmul.f32 %v869_v29, %v60_v23  ;;  %3100 = vmatprep.subr.mxu0 %v1061_v3  ;;  %v4048_v29 = vld [vmem:[%s4907_s4] sm:$0xff]  ;;  %1294 = vmatpush1.msra.mxu1 %v1266_v56 }
 0x6b9   :  { %3101 = vmatpush3.msra.mxu0 %v1061_v3  ;;  %1295 = vmatprep.subr.mxu1 %v3468_v54  ;;  %v1254_v3 = vld [vmem:[%s4913_s10 + $0x8] sm:$0xff] }
 0x6ba   :  { %3077 = vmatprep.mubr.msk.f32.mxu1 %vm161_vm2, %v873_v30  ;;  %3102 = vmatprep.subr.mxu0 %v1060_v15 }
 0x6bb   :  { %3078 = vmatmul.mubr.msk.f32.gmra.mxu1 %vm161_vm2, %v874_v31  ;;  %3103 = vmatpush3.msra.mxu0 %v1060_v15  ;;  %v1275_v15 = vld [vmem:[%s4913_s10 + $0xb0] sm:$0xff] }
 0x6bc   :  { %1296 = vmatpush1.msra.mxu1 %v1265_v57 }
 0x6bd   :  { %1297 = vmatprep.subr.mxu1 %v3468_v54 }
 0x773   :  { %v3076_v35 = vpop.f32.mrf.mxu1 }
 0x774   :  { %v3966_v38 = vadd.f32 %v3400_v36, %v3076_v35 }
 0x775   :  { %v965_v39 = vpop.f32.mrf.mxu1 }
 0x776   :  { %v3971_v41 = vadd.f32 %v3401_v40, %v965_v39  ;;  %v989_v42 = vmul.f32 %v3966_v38, %v3966_v38  ;;  %v4057_v39 = vld [vmem:[%s4907_s4 + $0x8] sm:$0xff] }
 0x778   :  { %v995_v11 = vsel %vm78_vm0, %v989_v42, 0.0  ;;  %v988_v43 = vmul.f32 %v3971_v41, %v3971_v41 }
 0x779   :  { %996 = vadd.xlane.f32.xlu1 %v995_v11 }
 0x77a   :  { %v992_v27 = vsel %vm78_vm0, %v988_v43, 0.0 }
 0x77b   :  { %993 = vadd.xlane.f32.xlu0 %v992_v27  ;;  %v3079_v44 = vpop.f32.mrf.mxu1 }
 0x77c   :  { %v3982_v47 = vadd.f32 %v3402_v46, %v3079_v44 }
 0x77d   :  { %v975_v45 = vpop.f32.mrf.mxu1 }
 0x77e   :  { %v3987_v52 = vadd.f32 %v3403_v49, %v975_v45  ;;  %v991_v48 = vmul.f32 %v3982_v47, %v3982_v47  ;;  %v4066_v45 = vld [vmem:[%s4907_s4 + $0x10] sm:$0xff] }
 0x780   :  { %v990_v10 = vmul.f32 %v3987_v52, %v3987_v52  ;;  %v1001_v53 = vsel %vm78_vm0, %v991_v48, 0.0  ;;  %v4075_v48 = vld [vmem:[%s4907_s4 + $0x18] sm:$0xff] }
 0x782   :  { %v998_v22 = vsel %vm78_vm0, %v990_v10, 0.0 }
 0x783   :  { %999 = vadd.xlane.f32.xlu0 %v998_v22 }
 0x787   :  { %1002 = vadd.xlane.f32.xlu0 %v1001_v53 }
 0x802   :  { %v997_v58 = vpop.xlane.xlu1 %996 }
 0x803   :  { %v1005_v59 = vmul.f32 0.03125, %v997_v58  ;;  %v1264_v58 = vld [vmem:[%s4913_s10 + $0x58] sm:$0xff] }
 0x804   :  { %v994_v60 = vpop.xlane.xlu0 %993  ;;  %1298 = vmatpush1.msra.mxu1 %v1264_v58 }
 0x805   :  { %v1009_v8 = vadd.f32 1e-06, %v1005_v59  ;;  %v1004_v12 = vmul.f32 0.03125, %v994_v60  ;;  %v1263_v60 = vld [vmem:[%s4913_s10 + $0x50] sm:$0xff]  ;;  %1299 = vmatprep.subr.mxu1 %v3468_v54 }
 0x806   :  { %1300 = vmatpush1.msra.mxu1 %v1263_v60 }
 0x807   :  { %3308 = vrsqrt.f32 %v1009_v8  ;;  %v1008_v51 = vadd.f32 1e-06, %v1004_v12  ;;  %v1262_v12 = vld [vmem:[%s4913_s10 + $0x48] sm:$0xff]  ;;  %1301 = vmatprep.subr.mxu1 %v3468_v54 }
 0x808   :  { %1302 = vmatpush1.msra.mxu1 %v1262_v12 }
 0x809   :  { %3310 = vrsqrt.f32 %v1008_v51  ;;  %v1261_v51 = vld [vmem:[%s4913_s10 + $0x40] sm:$0xff]  ;;  %1303 = vmatprep.subr.mxu1 %v3468_v54 }
 0x80a   :  { %1304 = vmatpush1.msra.mxu1 %v1261_v51 }
 0x80b   :  { %1305 = vmatprep.subr.mxu1 %v3468_v54 }
 0x80c   :  { %v1000_v62 = vpop.xlane.xlu0 %999  ;;  %1306 = vmatpush1.msra.mxu1 %v1260_v61 }
 0x80d   :  { %v1006_v0 = vmul.f32 0.03125, %v1000_v62  ;;  %v1259_v62 = vld [vmem:[%s4913_s10 + $0x30] sm:$0xff]  ;;  %1307 = vmatprep.subr.mxu1 %v3468_v54 }
 0x80e   :  { %1308 = vmatpush1.msra.mxu1 %v1259_v62 }
 0x80f   :  { %v1010_v2 = vadd.f32 1e-06, %v1006_v0  ;;  %1309 = vmatprep.subr.mxu1 %v3468_v54  ;;  %v1257_v0 = vld [vmem:[%s4913_s10 + $0x20] sm:$0xff] }
 0x810   :  { %v1003_v13 = vpop.xlane.xlu0 %1002  ;;  %1310 = vmatpush1.msra.mxu1 %v1258_v63  ;;  %v63_v63 = vld [vmem:[%s4909_s6 + $0x8] sm:$0xff] }
 0x811   :  { %3312 = vrsqrt.f32 %v1010_v2  ;;  %v1007_v14 = vmul.f32 0.03125, %v1003_v13  ;;  %1311 = vmatprep.subr.mxu1 %v3468_v54  ;;  %v1255_v2 = vld [vmem:[%s4913_s10 + $0x10] sm:$0xff]  ;;  %v1253_v13 = vld [vmem:[%s4913_s10] sm:$0xff] }
 0x812   :  { %1312 = vmatpush1.msra.mxu1 %v1257_v0 }
 0x813   :  { %v1011_v16 = vadd.f32 1e-06, %v1007_v14  ;;  %1313 = vmatprep.subr.mxu1 %v3468_v54  ;;  %v1276_v14 = vld [vmem:[%s4913_s10 + $0xb8] sm:$0xff] }
 0x814   :  { %v3309_v18 = vpop.eup %3308  ;;  %1314 = vmatpush1.msra.mxu1 %v1256_v1 }
 0x815   :  { %3314 = vrsqrt.f32 %v1011_v16  ;;  %v1017_v19 = vmul.f32 %v3309_v18, %v3966_v38  ;;  %1315 = vmatprep.subr.mxu1 %v3468_v54  ;;  %v1274_v16 = vld [vmem:[%s4913_s10 + $0xa8] sm:$0xff]  ;;  %v1273_v18 = vld [vmem:[%s4913_s10 + $0xa0] sm:$0xff] }
 0x816   :  { %v3311_v20 = vpop.eup %3310  ;;  %1316 = vmatpush1.msra.mxu1 %v1255_v2 }
 0x817   :  { %1026 = vrot.lane.b32.xlu1 %v1017_v19, %s3458_s17  ;;  %v1016_v7 = vmul.f32 %v3311_v20, %v3971_v41  ;;  %1317 = vmatprep.subr.mxu1 %v3468_v54 }
 0x818   :  { %1318 = vmatpush1.msra.mxu1 %v1254_v3 }
 0x819   :  { %1024 = vrot.lane.b32.xlu0 %v1016_v7, %s3458_s17  ;;  %1319 = vmatprep.subr.mxu1 %v3468_v54 }
 0x81a   :  { %1320 = vmatpush1.msra.mxu1 %v1253_v13 }
 0x81b   :  { %1036 = vrot.lane.b32.xlu1 %v1016_v7, %s3459_s18  ;;  %1337 = vmatprep.subr.mxu1 %v3468_v54 }
 0x81c   :  { %1338 = vmatpush2.msra.mxu1 %v1276_v14 }
 0x81d   :  { %1339 = vmatprep.subr.mxu1 %v3468_v54 }
 0x81e   :  { %v3313_v21 = vpop.eup %3312  ;;  %1340 = vmatpush2.msra.mxu1 %v1275_v15 }
 0x81f   :  { %1038 = vrot.lane.b32.xlu1 %v1017_v19, %s3459_s18  ;;  %v1018_v4 = vmul.f32 %v3313_v21, %v3987_v52  ;;  %1341 = vmatprep.subr.mxu1 %v3468_v54 }
 0x820   :  { %1342 = vmatpush2.msra.mxu1 %v1274_v16 }
 0x821   :  { %1028 = vrot.lane.b32.xlu0 %v1018_v4, %s3458_s17  ;;  %1343 = vmatprep.subr.mxu1 %v3468_v54 }
 0x822   :  { %v3315_v6 = vpop.eup %3314  ;;  %1344 = vmatpush2.msra.mxu1 %v1273_v18 }
 0x823   :  { %v1019_v5 = vmul.f32 %v3315_v6, %v3982_v47  ;;  %1345 = vmatprep.subr.mxu1 %v3468_v54 }
 0x825   :  { %1040 = vrot.lane.b32.xlu0 %v1018_v4, %s3459_s18  ;;  %1030 = vrot.lane.b32.xlu1 %v1019_v5, %s3458_s17 }
 0x829   :  { %1042 = vrot.lane.b32.xlu1 %v1019_v5, %s3459_s18 }
 0x889   :  { %v1027_v23 = vpop.permute.xlu1 %1026 }
 0x88a   :  { %v1049_v31 = vsel %vm78_vm0, %v1017_v19, %v1027_v23  ;;  %v1272_v19 = vld [vmem:[%s4913_s10 + $0x98] sm:$0xff] }
 0x88b   :  { %v1025_v24 = vpop.permute.xlu0 %1024  ;;  %1346 = vmatpush2.msra.mxu1 %v1272_v19 }
 0x88c   :  { %v1048_v25 = vsel %vm78_vm0, %v1016_v7, %v1025_v24  ;;  %1347 = vmatprep.subr.mxu1 %v3468_v54 }
 0x88d   :  { %v1037_v26 = vpop.permute.xlu1 %1036 }
 0x88e   :  { %v1052_v28 = vsel %vm140_vm1, %v1048_v25, %v1037_v26 }
 0x88f   :  { %v1056_v30 = vmul.f32 %v4048_v29, %v1052_v28 }
 0x891   :  { %v1039_v35 = vpop.permute.xlu1 %1038  ;;  %3104 = vmatprep.mubr.msk.f32.mxu0 %vm161_vm2, %v1056_v30 }
 0x892   :  { %v1053_v36 = vsel %vm140_vm1, %v1049_v31, %v1039_v35 }
 0x893   :  { %v1057_v40 = vmul.f32 %v4057_v39, %v1053_v36  ;;  %v1029_v42 = vpop.permute.xlu0 %1028 }
 0x894   :  { %v1050_v11 = vsel %vm78_vm0, %v1018_v4, %v1029_v42 }
 0x895   :  { %3105 = vmatmul.mubr.msk.f32.vlgmr.msra.gmra.mxu0 %vm161_vm2, %v1057_v40 }
 0x897   :  { %v1031_v43 = vpop.permute.xlu1 %1030  ;;  %v1041_v27 = vpop.permute.xlu0 %1040 }
 0x898   :  { %v1054_v44 = vsel %vm140_vm1, %v1050_v11, %v1041_v27  ;;  %v1051_v49 = vsel %vm78_vm0, %v1019_v5, %v1031_v43 }
 0x899   :  { %v1058_v46 = vmul.f32 %v4066_v45, %v1054_v44 }
 0x89b   :  { %v1043_v10 = vpop.permute.xlu1 %1042  ;;  %3107 = vmatprep.mubr.msk.f32.mxu0 %vm161_vm2, %v1058_v46  ;;  %v1271_v46 = vld [vmem:[%s4913_s10 + $0x90] sm:$0xff] }
 0x89c   :  { %v1055_v22 = vsel %vm140_vm1, %v1051_v49, %v1043_v10  ;;  %1348 = vmatpush2.msra.mxu1 %v1271_v46 }
 0x89d   :  { %v1059_v53 = vmul.f32 %v4075_v48, %v1055_v22  ;;  %1349 = vmatprep.subr.mxu1 %v3468_v54  ;;  %v1270_v22 = vld [vmem:[%s4913_s10 + $0x88] sm:$0xff] }
 0x89e   :  { %1350 = vmatpush2.msra.mxu1 %v1270_v22 }
 0x89f   :  { %3108 = vmatmul.mubr.msk.f32.gmra.mxu0 %vm161_vm2, %v1059_v53  ;;  %1351 = vmatprep.subr.mxu1 %v3468_v54 }
 0x8a0   :  { %1352 = vmatpush2.msra.mxu1 %v1269_v17 }
 0x955   :  { %v4079_v9 = vpop.f32.mrf.mxu0 }
 0x956   :  { %1211 = vrot.lane.b32.xlu1 %v4079_v9, %s3459_s18  ;;  %v1170_v20 = vmul.f32 %v4079_v9, %v4079_v9 }
 0x957   :  { %v4083_v50 = vpop.f32.mrf.mxu0 }
 0x958   :  { %1209 = vrot.lane.b32.xlu0 %v4083_v50, %s3459_s18  ;;  %v1169_v7 = vmul.f32 %v4083_v50, %v4083_v50  ;;  %v1174_v21 = vmul.f32 %v4079_v9, %v1170_v20  ;;  %v62_v20 = vld [vmem:[%s4909_s6] sm:$0xff] }
 0x95a   :  { %v1173_v4 = vmul.f32 %v1169_v7, %v4083_v50  ;;  %v1178_v6 = vmul.f32 0.044715, %v1174_v21  ;;  %v65_v7 = vld [vmem:[%s4909_s6 + $0x18] sm:$0xff] }
 0x95c   :  { %v1177_v5 = vmul.f32 0.044715, %v1173_v4  ;;  %v1182_v24 = vadd.f32 %v4079_v9, %v1178_v6 }
 0x95e   :  { %v1181_v26 = vadd.f32 %v1177_v5, %v4083_v50  ;;  %v1186_v30 = vmul.f32 0.7978846, %v1182_v24  ;;  %v64_v5 = vld [vmem:[%s4909_s6 + $0x10] sm:$0xff]  ;;  %v67_v24 = vld [vmem:[%s4909_s6 + $0x28] sm:$0xff] }
 0x95f   :  { %v4106_v59 = vpop.f32.mrf.mxu0 }
 0x960   :  { %1215 = vrot.lane.b32.xlu1 %v4106_v59, %s3459_s18  ;;  %v1172_v23 = vmul.f32 %v4106_v59, %v4106_v59  ;;  %v1185_v35 = vmul.f32 0.7978846, %v1181_v26  ;;  %3316 = vtanh.f32 %v1186_v30  ;;  %v69_v30 = vld [vmem:[%s4909_s6 + $0x38] sm:$0xff] }
 0x961   :  { %v4114_v8 = vpop.f32.mrf.mxu0 }
 0x962   :  { %1213 = vrot.lane.b32.xlu0 %v4114_v8, %s3459_s18  ;;  %v1171_v25 = vmul.f32 %v4114_v8, %v4114_v8  ;;  %v1176_v28 = vmul.f32 %v4106_v59, %v1172_v23  ;;  %3318 = vtanh.f32 %v1185_v35 }
 0x964   :  { %v1175_v31 = vmul.f32 %v1171_v25, %v4114_v8  ;;  %v1180_v36 = vmul.f32 0.044715, %v1176_v28  ;;  %v66_v28 = vld [vmem:[%s4909_s6 + $0x20] sm:$0xff] }
 0x966   :  { %v1179_v40 = vmul.f32 0.044715, %v1175_v31  ;;  %v1184_v42 = vadd.f32 %v4106_v59, %v1180_v36 }
 0x968   :  { %v1183_v11 = vadd.f32 %v1179_v40, %v4114_v8  ;;  %v1188_v43 = vmul.f32 0.7978846, %v1184_v42 }
 0x96a   :  { %v1187_v27 = vmul.f32 0.7978846, %v1183_v11  ;;  %3320 = vtanh.f32 %v1188_v43  ;;  %v68_v11 = vld [vmem:[%s4909_s6 + $0x30] sm:$0xff] }
 0x96c   :  { %3322 = vtanh.f32 %v1187_v27 }
 0x96d   :  { %v3317_v44 = vpop.eup %3316 }
 0x96e   :  { %v1194_v10 = vadd.f32 1.0, %v3317_v44 }
 0x96f   :  { %v3319_v49 = vpop.eup %3318 }
 0x970   :  { %v1193_v53 = vadd.f32 1.0, %v3319_v49  ;;  %v1198_v55 = vmul.f32 0.5, %v1194_v10 }
 0x972   :  { %v1197_v56 = vmul.f32 0.5, %v1193_v53  ;;  %v1202_v58 = vmul.f32 %v4079_v9, %v1198_v55 }
 0x974   :  { %v1201_v61 = vmul.f32 %v1197_v56, %v4083_v50 }
 0x977   :  { %v3321_v57 = vpop.eup %3320 }
 0x978   :  { %v1196_v62 = vadd.f32 1.0, %v3321_v57 }
 0x979   :  { %v3323_v60 = vpop.eup %3322 }
 0x97a   :  { %v1195_v2 = vadd.f32 1.0, %v3323_v60  ;;  %v1200_v13 = vmul.f32 0.5, %v1196_v62 }
 0x97c   :  { %v1199_v9 = vmul.f32 0.5, %v1195_v2  ;;  %v1204_v14 = vmul.f32 %v4106_v59, %v1200_v13  ;;  %v2748_v2 = vld [vmem:[%s4910_s7 + $0xa0] sm:$0xff]  ;;  %v2746_v13 = vld [vmem:[%s4910_s7 + $0x90] sm:$0xff] }
 0x97e   :  { %v1203_v16 = vmul.f32 %v1199_v9, %v4114_v8  ;;  %v2745_v9 = vld [vmem:[%s4910_s7 + $0x88] sm:$0xff] }
 0x9c8   :  { %v1212_v12 = vpop.permute.xlu1 %1211 }
 0x9c9   :  { %v1222_v51 = vmul.f32 %v1212_v12, %v1202_v58 }
 0x9ca   :  { %v1210_v0 = vpop.permute.xlu0 %1209 }
 0x9cb   :  { %v1221_v1 = vmul.f32 %v1210_v0, %v1201_v61  ;;  %1231 = vrot.lane.b32.xlu1 %v1222_v51, %s3459_s18  ;;  %v1248_v8 = vmul.f32 %v1222_v51, %v65_v7 }
 0x9cd   :  { %v1246_v3 = vmul.f32 %v1221_v1, %v63_v63  ;;  %1229 = vrot.lane.b32.xlu0 %v1221_v1, %s3459_s18 }
 0x9cf   :  { %2736 = vmatprep.mubr.msk.f32.mxu1 %vm140_vm1, %v1246_v3  ;;  %v2747_v3 = vld [vmem:[%s4910_s7 + $0x98] sm:$0xff] }
 0x9d2   :  { %v1216_v50 = vpop.permute.xlu1 %1215 }
 0x9d3   :  { %v1224_v15 = vmul.f32 %v1216_v50, %v1204_v14 }
 0x9d4   :  { %v1214_v18 = vpop.permute.xlu0 %1213 }
 0x9d5   :  { %v1223_v19 = vmul.f32 %v1214_v18, %v1203_v16  ;;  %1235 = vrot.lane.b32.xlu1 %v1224_v15, %s3459_s18  ;;  %v1252_v42 = vmul.f32 %v1224_v15, %v69_v30 }
 0x9d7   :  { %1233 = vrot.lane.b32.xlu0 %v1223_v19, %s3459_s18  ;;  %v1250_v26 = vmul.f32 %v1223_v19, %v67_v24  ;;  %v2740_v24 = vld [vmem:[%s4910_s7 + $0x60] sm:$0xff] }
 0xa3d   :  { %v1232_v21 = vpop.permute.xlu1 %1231 }
 0xa3e   :  { %v1242_v23 = vsel %vm140_vm1, %v1222_v51, %v1232_v21  ;;  %v2743_v21 = vld [vmem:[%s4910_s7 + $0x78] sm:$0xff] }
 0xa3f   :  { %v1230_v59 = vpop.permute.xlu0 %1229  ;;  %v1247_v25 = vmul.f32 %v1242_v23, %v64_v5 }
 0xa40   :  { %v1241_v4 = vsel %vm140_vm1, %v1221_v1, %v1230_v59  ;;  %v2750_v1 = vld [vmem:[%s4910_s7 + $0xb0] sm:$0xff] }
 0xa41   :  { %v1245_v6 = vmul.f32 %v1241_v4, %v62_v20  ;;  %v2744_v20 = vld [vmem:[%s4910_s7 + $0x80] sm:$0xff]  ;;  %v2742_v4 = vld [vmem:[%s4910_s7 + $0x70] sm:$0xff] }
 0xa43   :  { %1354 = vmatmul.mubr.f32.vlgmr.msra.gmra.mxu1 %v1245_v6  ;;  %v2741_v6 = vld [vmem:[%s4910_s7 + $0x68] sm:$0xff] }
 0xa44   :  { %2737 = vmatprep.mubr.msk.f32.mxu1 %vm140_vm1, %v1248_v8 }
 0xa47   :  { %1359 = vmatmul.mubr.f32.gmra.mxu1 %v1247_v25  ;;  %v1236_v31 = vpop.permute.xlu1 %1235 }
 0xa48   :  { %2738 = vmatprep.mubr.msk.f32.mxu1 %vm140_vm1, %v1250_v26  ;;  %v1244_v43 = vsel %vm140_vm1, %v1224_v15, %v1236_v31 }
 0xa49   :  { %v1234_v35 = vpop.permute.xlu0 %1233  ;;  %v1251_v27 = vmul.f32 %v1244_v43, %v68_v11 }
 0xa4a   :  { %v1243_v36 = vsel %vm140_vm1, %v1223_v19, %v1234_v35 }
 0xa4b   :  { %v1249_v40 = vmul.f32 %v1243_v36, %v66_v28 }
 0xa4d   :  { %1364 = vmatmul.mubr.f32.gmra.mxu1 %v1249_v40 }
 0xa4e   :  { %2739 = vmatprep.mubr.msk.f32.mxu1 %vm140_vm1, %v1252_v42 }
 0xa51   :  { %1369 = vmatmul.mubr.f32.gmra.mxu1 %v1251_v27 }
 0xb03   :  { %v1355_v44 = vpop.f32.mrf.mxu1 }
 0xb04   :  { %v4248_v46 = vadd.f32 %v1355_v44, %v3971_v41 }
 0xb05   :  { %v1357_v49 = vpop.f32.mrf.mxu1 }
 0xb06   :  { %v1378_v10 = vmul.f32 %v4248_v46, %v4248_v46 }
 0xb07   :  { %v1360_v22 = vpop.f32.mrf.mxu1 }
 0xb08   :  { %v4253_v53 = vadd.f32 %v1360_v22, %v3966_v38  ;;  %v1382_v17 = vsel %vm78_vm0, %v1378_v10, 0.0 }
 0xb09   :  { %1383 = vadd.xlane.f32.xlu0 %v1382_v17  ;;  %v1362_v55 = vpop.f32.mrf.mxu1 }
 0xb0a   :  { %v1379_v56 = vmul.f32 %v4253_v53, %v4253_v53 }
 0xb0c   :  { %v1385_v57 = vsel %vm78_vm0, %v1379_v56, 0.0 }
 0xb0d   :  { %1386 = vadd.xlane.f32.xlu1 %v1385_v57  ;;  %v1365_v41 = vpop.f32.mrf.mxu1 }
 0xb0e   :  { %v4260_v58 = vadd.f32 %v1365_v41, %v3987_v52  ;;  %v2751_v52 = vld [vmem:[%s4910_s7 + $0xb8] sm:$0xff] }
 0xb0f   :  { %v1367_v60 = vpop.f32.mrf.mxu1  ;;  %3110 = vmatprep.subr.mxu0 %v2751_v52 }
 0xb10   :  { %v1380_v12 = vmul.f32 %v4260_v58, %v4260_v58  ;;  %3111 = vmatpush3.msra.mxu0 %v2751_v52 }
 0xb11   :  { %v1370_v38 = vpop.f32.mrf.mxu1  ;;  %3112 = vmatprep.subr.mxu0 %v2750_v1 }
 0xb12   :  { %v4265_v51 = vadd.f32 %v1370_v38, %v3982_v47  ;;  %v1388_v61 = vsel %vm78_vm0, %v1380_v12, 0.0  ;;  %v2749_v47 = vld [vmem:[%s4910_s7 + $0xa8] sm:$0xff]  ;;  %3113 = vmatpush3.msra.mxu0 %v2750_v1 }
 0xb13   :  { %1389 = vadd.xlane.f32.xlu0 %v1388_v61  ;;  %v1372_v62 = vpop.f32.mrf.mxu1  ;;  %3114 = vmatprep.subr.mxu0 %v2749_v47 }
 0xb14   :  { %v1381_v63 = vmul.f32 %v4265_v51, %v4265_v51  ;;  %3115 = vmatpush3.msra.mxu0 %v2749_v47 }
 0xb15   :  { %3116 = vmatprep.subr.mxu0 %v2748_v2 }
 0xb16   :  { %v1391_v0 = vsel %vm78_vm0, %v1381_v63, 0.0  ;;  %3117 = vmatpush3.msra.mxu0 %v2748_v2 }
 0xb17   :  { %1392 = vadd.xlane.f32.xlu0 %v1391_v0  ;;  %3118 = vmatprep.subr.mxu0 %v2747_v3 }
 0xb18   :  { %3119 = vmatpush3.msra.mxu0 %v2747_v3  ;;  %v4363_v3 = vld [vmem:[%s4905_s2 + $0x18] sm:$0xff] }
 0xb19   :  { %3120 = vmatprep.subr.mxu0 %v2746_v13 }
 0xb1a   :  { %3121 = vmatpush3.msra.mxu0 %v2746_v13 }
 0xb1b   :  { %3122 = vmatprep.subr.mxu0 %v2745_v9 }
 0xb1c   :  { %3123 = vmatpush3.msra.mxu0 %v2745_v9 }
 0xb1d   :  { %3124 = vmatprep.subr.mxu0 %v2744_v20 }
 0xb1e   :  { %3125 = vmatpush3.msra.mxu0 %v2744_v20 }
 0xb1f   :  { %3126 = vmatprep.subr.mxu0 %v2743_v21 }
 0xb20   :  { %3127 = vmatpush3.msra.mxu0 %v2743_v21 }
 0xb21   :  { %3128 = vmatprep.subr.mxu0 %v2742_v4 }
 0xb22   :  { %3129 = vmatpush3.msra.mxu0 %v2742_v4 }
 0xb23   :  { %3130 = vmatprep.subr.mxu0 %v2741_v6 }
 0xb24   :  { %3131 = vmatpush3.msra.mxu0 %v2741_v6 }
 0xb25   :  { %3132 = vmatprep.subr.mxu0 %v2740_v24 }
 0xb26   :  { %3133 = vmatpush3.msra.mxu0 %v2740_v24 }
 0xb92   :  { %v1384_v14 = vpop.xlane.xlu0 %1383 }
 0xb93   :  { %v1394_v50 = vmul.f32 0.03125, %v1384_v14 }
 0xb95   :  { %v1398_v15 = vadd.f32 1e-06, %v1394_v50 }
 0xb96   :  { %v1387_v16 = vpop.xlane.xlu1 %1386 }
 0xb97   :  { %3324 = vrsqrt.f32 %v1398_v15  ;;  %v1395_v18 = vmul.f32 0.03125, %v1387_v16  ;;  %v4371_v15 = vld [vmem:[%s4905_s2 + $0x10] sm:$0xff] }
 0xb99   :  { %v1399_v19 = vadd.f32 1e-06, %v1395_v18 }
 0xb9b   :  { %3326 = vrsqrt.f32 %v1399_v19 }
 0xb9c   :  { %v1390_v7 = vpop.xlane.xlu0 %1389 }
 0xb9d   :  { %v1396_v59 = vmul.f32 0.03125, %v1390_v7  ;;  %v4379_v7 = vld [vmem:[%s4905_s2 + $0x8] sm:$0xff] }
 0xb9f   :  { %v1400_v8 = vadd.f32 1e-06, %v1396_v59 }
 0xba0   :  { %v1393_v5 = vpop.xlane.xlu0 %1392 }
 0xba1   :  { %3328 = vrsqrt.f32 %v1400_v8  ;;  %v1397_v23 = vmul.f32 0.03125, %v1393_v5  ;;  %v4387_v8 = vld [vmem:[%s4905_s2] sm:$0xff]  ;;  %s3469_s2 = smov [#allocation2]  }
 0xba3   :  { %v1401_v25 = vadd.f32 1e-06, %v1397_v23 }
 0xba4   :  { %v3325_v26 = vpop.eup %3324 }
 0xba5   :  { %3330 = vrsqrt.f32 %v1401_v25  ;;  %v1406_v28 = vmul.f32 %v3325_v26, %v4248_v46 }
 0xba7   :  { %1426 = vrot.lane.b32.xlu1 %v1406_v28, %s3459_s18  ;;  %1414 = vrot.lane.b32.xlu0 %v1406_v28, %s3458_s17 }
 0xba8   :  { %v3327_v30 = vpop.eup %3326 }
 0xba9   :  { %v1407_v31 = vmul.f32 %v3327_v30, %v4253_v53 }
 0xbab   :  { %1416 = vrot.lane.b32.xlu1 %v1407_v31, %s3458_s17 }
 0xbae   :  { %v3329_v35 = vpop.eup %3328 }
 0xbaf   :  { %1428 = vrot.lane.b32.xlu1 %v1407_v31, %s3459_s18  ;;  %v1408_v36 = vmul.f32 %v3329_v35, %v4260_v58 }
 0xbb1   :  { %1418 = vrot.lane.b32.xlu0 %v1408_v36, %s3458_s17 }
 0xbb2   :  { %v3331_v40 = vpop.eup %3330 }
 0xbb3   :  { %v1409_v42 = vmul.f32 %v3331_v40, %v4265_v51 }
 0xbb5   :  { %1430 = vrot.lane.b32.xlu0 %v1408_v36, %s3459_s18  ;;  %1420 = vrot.lane.b32.xlu1 %v1409_v42, %s3458_s17 }
 0xbb9   :  { %1432 = vrot.lane.b32.xlu1 %v1409_v42, %s3459_s18 }
 0xc19   :  { %v1427_v11 = vpop.permute.xlu1 %1426  ;;  %v1415_v43 = vpop.permute.xlu0 %1414 }
 0xc1a   :  { %v1438_v27 = vsel %vm78_vm0, %v1406_v28, %v1415_v43 }
 0xc1b   :  { %v1442_v44 = vsel %vm140_vm1, %v1438_v27, %v1427_v11 }
 0xc1c   :  { %v1446_v49 = vmul.f32 %v4048_v29, %v1442_v44 }
 0xc1d   :  { %v1417_v10 = vpop.permute.xlu1 %1416 }
 0xc1e   :  { %3134 = vmatprep.mubr.msk.f32.mxu0 %vm161_vm2, %v1446_v49  ;;  %v1439_v22 = vsel %vm78_vm0, %v1407_v31, %v1417_v10  ;;  %v3412_v49 = vld [vmem:[%s4904_s1] sm:$0xff] }
 0xc21   :  { %v1429_v17 = vpop.permute.xlu1 %1428 }
 0xc22   :  { %v1443_v55 = vsel %vm140_vm1, %v1439_v22, %v1429_v17 }
 0xc23   :  { %v1447_v56 = vmul.f32 %v4057_v39, %v1443_v55  ;;  %v1419_v57 = vpop.permute.xlu0 %1418 }
 0xc24   :  { %v1440_v41 = vsel %vm78_vm0, %v1408_v36, %v1419_v57 }
 0xc25   :  { %3135 = vmatmul.mubr.msk.f32.vlgmr.msra.gmra.mxu0 %vm161_vm2, %v1447_v56 }
 0xc27   :  { %v1421_v60 = vpop.permute.xlu1 %1420  ;;  %v1431_v12 = vpop.permute.xlu0 %1430 }
 0xc28   :  { %v1444_v38 = vsel %vm140_vm1, %v1440_v41, %v1431_v12  ;;  %v1441_v61 = vsel %vm78_vm0, %v1409_v42, %v1421_v60 }
 0xc29   :  { %v1448_v29 = vmul.f32 %v4066_v45, %v1444_v38 }
 0xc2b   :  { %v1433_v62 = vpop.permute.xlu1 %1432  ;;  %3137 = vmatprep.mubr.msk.f32.mxu0 %vm161_vm2, %v1448_v29 }
 0xc2c   :  { %v1445_v63 = vsel %vm140_vm1, %v1441_v61, %v1433_v62 }
 0xc2d   :  { %v1449_v39 = vmul.f32 %v4075_v48, %v1445_v63 }
 0xc2f   :  { %3138 = vmatmul.mubr.msk.f32.gmra.mxu0 %vm161_vm2, %v1449_v39 }
 0xce5   :  { %v4335_v0 = vpop.f32.mrf.mxu0 }
 0xce6   :  { %v1561_v24 = vmul.f32 %v4335_v0, %v3741_v34 }
 0xce7   :  { %v4337_v52 = vpop.f32.mrf.mxu0 }
 0xce8   :  { %v1560_v31 = vmul.f32 %v4337_v52, %v3743_v37  ;;  %v1632_v10 = vmul.f32 %v3412_v49, %v4337_v52 }
 0xcef   :  { %v4339_v1 = vpop.f32.mrf.mxu0 }
 0xcf0   :  { %1586 = vrot.lane.b32.xlu1 %v4339_v1, %s3460_s27  ;;  %1574 = vrot.lane.b32.xlu0 %v4339_v1, %s3461_s28  ;;  %v1563_v30 = vmul.f32 %v4339_v1, %v3737_v32 }
 0xcf1   :  { %v4345_v45 = vpop.f32.mrf.mxu0 }
 0xcf2   :  { %v1562_v11 = vmul.f32 %v4345_v45, %v3739_v33 }
 0xcf4   :  { %1584 = vrot.lane.b32.xlu1 %v4345_v45, %s3460_s27  ;;  %1572 = vrot.lane.b32.xlu0 %v4345_v45, %s3461_s28 }
 0xcf8   :  { %1582 = vrot.lane.b32.xlu1 %v4335_v0, %s3460_s27  ;;  %1570 = vrot.lane.b32.xlu0 %v4335_v0, %s3461_s28 }
 0xcfc   :  { %1580 = vrot.lane.b32.xlu1 %v4337_v52, %s3460_s27  ;;  %1568 = vrot.lane.b32.xlu0 %v4337_v52, %s3461_s28 }
 0xd62   :  { %v1587_v48 = vpop.permute.xlu1 %1586  ;;  %v1575_v47 = vpop.permute.xlu0 %1574 }
 0xd63   :  { %v1595_v2 = vsel %vm307_vm3, %v1575_v47, %v1587_v48 }
 0xd64   :  { %v1599_v13 = vmul.f32 %v4363_v3, %v1595_v2  ;;  %v3413_v2 = vld [vmem:[%s4904_s1 + $0x8] sm:$0xff] }
 0xd66   :  { %v1585_v9 = vpop.permute.xlu1 %1584  ;;  %1610 = vrot.lane.b32.xlu0 %v1599_v13, %s3458_s17  ;;  %v1573_v14 = vpop.permute.xlu0 %1572  ;;  %v1633_v13 = vmul.f32 %v3413_v2, %v4335_v0 }
 0xd67   :  { %v1594_v50 = vsel %vm307_vm3, %v1573_v14, %v1585_v9  ;;  %v3414_v14 = vld [vmem:[%s4904_s1 + $0x10] sm:$0xff] }
 0xd68   :  { %v1598_v16 = vmul.f32 %v4371_v15, %v1594_v50  ;;  %v1634_v50 = vmul.f32 %v3414_v14, %v4345_v45 }
 0xd6a   :  { %v1583_v18 = vpop.permute.xlu1 %1582  ;;  %1608 = vrot.lane.b32.xlu1 %v1598_v16, %s3458_s17  ;;  %v1571_v19 = vpop.permute.xlu0 %1570 }
 0xd6b   :  { %v1593_v20 = vsel %vm307_vm3, %v1571_v19, %v1583_v18 }
 0xd6c   :  { %v1597_v21 = vmul.f32 %v4379_v7, %v1593_v20 }
 0xd6e   :  { %v1581_v59 = vpop.permute.xlu1 %1580  ;;  %1606 = vrot.lane.b32.xlu0 %v1597_v21, %s3458_s17  ;;  %v1569_v4 = vpop.permute.xlu0 %1568 }
 0xd6f   :  { %v1592_v6 = vsel %vm307_vm3, %v1569_v4, %v1581_v59  ;;  %v3415_v59 = vld [vmem:[%s4904_s1 + $0x18] sm:$0xff] }
 0xd70   :  { %v1596_v5 = vmul.f32 %v4387_v8, %v1592_v6  ;;  %v1635_v4 = vmul.f32 %v3415_v59, %v4339_v1 }
 0xd72   :  { %1620 = vrot.lane.b32.xlu0 %v4337_v52, %s3462_s21  ;;  %1604 = vrot.lane.b32.xlu1 %v1596_v5, %s3458_s17 }
 0xd76   :  { %1624 = vrot.lane.b32.xlu0 %v4345_v45, %s3462_s21  ;;  %1622 = vrot.lane.b32.xlu1 %v4335_v0, %s3462_s21 }
 0xd7a   :  { %1664 = vrot.lane.b32.xlu0 %v4337_v52, %s3463_s22  ;;  %1626 = vrot.lane.b32.xlu1 %v4339_v1, %s3462_s21  ;;  %s2696_s21 = sshll.u32 %s3469_s2, 4  ;;  %s2697_s21 = int_to_ptr.vmem [resolvable:$true] %s2696_s21 }
 0xd7b   :  { %p3441_p1 = scmp.lt.s32.totalorder %s2697_s21, %s2697_s21 }
 0xd7e   :  { %1640 = vrot.lane.b32.xlu1 %v4337_v52, %s3464_s15 }
 0xd82   :  { %1642 = vrot.lane.b32.xlu1 %v4335_v0, %s3464_s15 }
 0xdd8   :  { %v1611_v23 = vpop.permute.xlu0 %1610 }
 0xdd9   :  { %v1619_v40 = vadd.f32 %v1611_v23, %v1563_v30 }
 0xddc   :  { %v1609_v25 = vpop.permute.xlu1 %1608 }
 0xddd   :  { %v1618_v32 = vadd.f32 %v1609_v25, %v1562_v11 }
 0xde0   :  { %v1607_v26 = vpop.permute.xlu0 %1606 }
 0xde1   :  { %v1617_v28 = vadd.f32 %v1607_v26, %v1561_v24 }
 0xde3   :  { %1718 = vrot.lane.b32.xlu0 %v1617_v28, %s3465_s16 }
 0xde4   :  { %v1605_v35 = vpop.permute.xlu1 %1604  ;;  %v4412_v36 = vpop.permute.xlu0 %1620 }
 0xde5   :  { %v1616_v42 = vadd.f32 %v1605_v35, %v1560_v31  ;;  %v1636_v5 = vmul.f32 %v3412_v49, %v4412_v36 }
 0xde7   :  { %1716 = vrot.lane.b32.xlu1 %v1616_v42, %s3465_s16  ;;  %1722 = vrot.lane.b32.xlu0 %v1619_v40, %s3465_s16 }
 0xde8   :  { %v4418_v34 = vpop.permute.xlu1 %1622  ;;  %v4420_v43 = vpop.permute.xlu0 %1624 }
 0xde9   :  { %v1637_v31 = vmul.f32 %v3413_v2, %v4418_v34  ;;  %v1638_v11 = vmul.f32 %v3414_v14, %v4420_v43 }
 0xdeb   :  { %1666 = vrot.lane.b32.xlu0 %v4335_v0, %s3463_s22  ;;  %1720 = vrot.lane.b32.xlu1 %v1618_v32, %s3465_s16 }
 0xdec   :  { %v4425_v37 = vpop.permute.xlu1 %1626  ;;  %v1665_v33 = vpop.permute.xlu0 %1664 }
 0xdef   :  { %1644 = vrot.lane.b32.xlu0 %v4345_v45, %s3464_s15  ;;  %1668 = vrot.lane.b32.xlu1 %v4345_v45, %s3463_s22 }
 0xdf0   :  { %v1641_v27 = vpop.permute.xlu1 %1640 }
 0xdf1   :  { %v1688_v44 = vsel %vm307_vm3, %v1641_v27, %v1665_v33 }
 0xdf2   :  { %v1696_v22 = vmul.f32 %v4387_v8, %v1688_v44 }
 0xdf3   :  { %1646 = vrot.lane.b32.xlu0 %v4339_v1, %s3464_s15  ;;  %1670 = vrot.lane.b32.xlu1 %v4339_v1, %s3463_s22 }
 0xdf4   :  { %v1704_v17 = vadd.f32 %v1696_v22, %v1632_v10  ;;  %v1643_v55 = vpop.permute.xlu1 %1642 }
 0xdf6   :  { %3148 = vmatprep.mubr.msk.f32.mxu0 %vm440_vm4, %v1704_v17 }
 0xdf7   :  { %1648 = vrot.lane.b32.xlu0 %v4412_v36, %s3464_s15  ;;  %1672 = vrot.lane.b32.xlu1 %v4412_v36, %s3463_s22 }
 0xdfb   :  { %1650 = vrot.lane.b32.xlu0 %v4418_v34, %s3464_s15  ;;  %1674 = vrot.lane.b32.xlu1 %v4418_v34, %s3463_s22 }
 0xdff   :  { %1652 = vrot.lane.b32.xlu0 %v4420_v43, %s3464_s15  ;;  %1676 = vrot.lane.b32.xlu1 %v4420_v43, %s3463_s22 }
 0xe03   :  { %1654 = vrot.lane.b32.xlu0 %v4425_v37, %s3464_s15  ;;  %1678 = vrot.lane.b32.xlu1 %v4425_v37, %s3463_s22  ;;  %s3436_s22 = scalar_lea.vmem %s2697_s21, 128 }
 0xe04   :  { %p3437_p0 = scmp.ne.s32.totalorder %s2697_s21, %s3436_s22  ;;  %p3442_p2 = scmp.lt.s32.totalorder %s3436_s22, %s3436_s22 }
 0xe06   :  { %p3443_p3 = por %p3442_p2, %p3441_p1 }
 0xe08   :  { %p3444_p4 = pnand %p3443_p3, %p3437_p0 }
 0xe55   :  { %v1719_v56 = vpop.permute.xlu0 %1718 }
 0xe59   :  { %v1717_v57 = vpop.permute.xlu1 %1716  ;;  %v1723_v41 = vpop.permute.xlu0 %1722 }
 0xe5a   :  { %3140 = vmatprep.subr.msk.mxu0 %vm440_vm4, %v1723_v41 }
 0xe5b   :  { %3141 = vmatpush3.xpose.msk.msra.mxu0 %vm440_vm4, %v1723_v41 }
 0xe5d   :  { %v1667_v60 = vpop.permute.xlu0 %1666  ;;  %v1721_v12 = vpop.permute.xlu1 %1720 }
 0xe5e   :  { %3142 = vmatprep.subr.msk.mxu0 %vm440_vm4, %v1721_v12  ;;  %v1689_v38 = vsel %vm307_vm3, %v1643_v55, %v1667_v60 }
 0xe5f   :  { %3143 = vmatpush3.xpose.msk.msra.mxu0 %vm440_vm4, %v1721_v12  ;;  %v1697_v63 = vmul.f32 %v4379_v7, %v1689_v38 }
 0xe60   :  { %3144 = vmatprep.subr.msk.mxu0 %vm440_vm4, %v1719_v56 }
 0xe61   :  { %v1645_v29 = vpop.permute.xlu0 %1644  ;;  %v1669_v61 = vpop.permute.xlu1 %1668  ;;  %v1705_v16 = vadd.f32 %v1697_v63, %v1633_v13 }
 0xe62   :  { %v1690_v62 = vsel %vm307_vm3, %v1645_v29, %v1669_v61 }
 0xe63   :  { %3145 = vmatpush3.xpose.msk.msra.mxu0 %vm440_vm4, %v1719_v56  ;;  %v1698_v39 = vmul.f32 %v4371_v15, %v1690_v62 }
 0xe64   :  { %3146 = vmatprep.subr.msk.mxu0 %vm440_vm4, %v1717_v57 }
 0xe65   :  { %v1647_v48 = vpop.permute.xlu0 %1646  ;;  %v1671_v47 = vpop.permute.xlu1 %1670  ;;  %v1706_v19 = vadd.f32 %v1698_v39, %v1634_v50 }
 0xe66   :  { %v1691_v9 = vsel %vm307_vm3, %v1647_v48, %v1671_v47 }
 0xe67   :  { %3147 = vmatpush3.xpose.msk.msra.mxu0 %vm440_vm4, %v1717_v57  ;;  %v1699_v18 = vmul.f32 %v4363_v3, %v1691_v9 }
 0xe69   :  { %v1649_v20 = vpop.permute.xlu0 %1648  ;;  %v1673_v21 = vpop.permute.xlu1 %1672  ;;  %v1707_v24 = vadd.f32 %v1699_v18, %v1635_v4  ;;  %v3416_v18 = vld [vmem:[%s4906_s3 + $0x8] sm:$0xff] }
 0xe6a   :  { %v1692_v6 = vsel %vm307_vm3, %v1649_v20, %v1673_v21  ;;  %3149 = vmatmul.mubr.msk.f32.vlgmr.msra.gmra.mxu0 %vm440_vm4, %v1705_v16 }
 0xe6b   :  { %v1700_v23 = vmul.f32 %v4387_v8, %v1692_v6  ;;  %3151 = vmatprep.mubr.msk.f32.mxu0 %vm440_vm4, %v1706_v19  ;;  %v3417_v6 = vld [vmem:[%s4906_s3] sm:$0xff] }
 0xe6d   :  { %v1708_v25 = vadd.f32 %v1700_v23, %v1636_v5  ;;  %v1651_v26 = vpop.permute.xlu0 %1650  ;;  %v1675_v28 = vpop.permute.xlu1 %1674 }
 0xe6e   :  { %v1693_v30 = vsel %vm307_vm3, %v1651_v26, %v1675_v28  ;;  %3152 = vmatmul.mubr.msk.f32.gmra.mxu0 %vm440_vm4, %v1707_v24  ;;  %v3418_v26 = vld [vmem:[%s4906_s3 + $0x18] sm:$0xff] }
 0xe6f   :  { %v1701_v35 = vmul.f32 %v4379_v7, %v1693_v30  ;;  %3154 = vmatprep.mubr.msk.f32.mxu0 %vm440_vm4, %v1708_v25  ;;  %v1639_v7 = vmul.f32 %v3415_v59, %v4425_v37 }
 0xe71   :  { %v1709_v40 = vadd.f32 %v1701_v35, %v1637_v31  ;;  %v1653_v36 = vpop.permute.xlu0 %1652  ;;  %v1677_v42 = vpop.permute.xlu1 %1676 }
 0xe72   :  { %v1694_v8 = vsel %vm307_vm3, %v1653_v36, %v1677_v42 }
 0xe73   :  { %v1702_v32 = vmul.f32 %v4371_v15, %v1694_v8  ;;  %3155 = vmatmul.mubr.msk.f32.gmra.mxu0 %vm440_vm4, %v1709_v40  ;;  %v3419_v40 = vld [vmem:[%s4906_s3 + $0x10] sm:$0xff] }
 0xe75   :  { %v1710_v33 = vadd.f32 %v1702_v32, %v1638_v11  ;;  %v1655_v27 = vpop.permute.xlu0 %1654  ;;  %v1679_v44 = vpop.permute.xlu1 %1678 }
 0xe76   :  { %v1695_v34 = vsel %vm307_vm3, %v1655_v27, %v1679_v44 }
 0xe77   :  { %v1703_v49 = vmul.f32 %v4363_v3, %v1695_v34  ;;  %3157 = vmatprep.mubr.msk.f32.mxu0 %vm440_vm4, %v1710_v33 }
 0xe79   :  { %v1711_v10 = vadd.f32 %v1703_v49, %v1639_v7 }
 0xe7b   :  { %3158 = vmatmul.mubr.msk.f32.gmra.mxu0 %vm440_vm4, %v1711_v10 }
 0xf2a   :  { %v3150_v22 = vpop.f32.mrf.mxu0 }
 0xf2b   :  { %v1862_v43 = vmul.f32 0.25, %v3150_v22 }
 0xf2c   :  { %v1822_v17 = vpop.f32.mrf.mxu0 }
 0xf2d   :  { %v1870_v15 = vmul.f32 0.02, %v1862_v43  ;;  %v1861_v55 = vmul.f32 0.25, %v1822_v17 }
 0xf2e   :  { %v3153_v56 = vpop.f32.mrf.mxu0 }
 0xf2f   :  { %3332 = vtanh.f32 %v1870_v15  ;;  %v1869_v57 = vmul.f32 0.02, %v1861_v55  ;;  %v1864_v41 = vmul.f32 0.25, %v3153_v56 }
 0xf30   :  { %v1832_v60 = vpop.f32.mrf.mxu0 }
 0xf31   :  { %3334 = vtanh.f32 %v1869_v57  ;;  %v1872_v12 = vmul.f32 0.02, %v1864_v41  ;;  %v1863_v37 = vmul.f32 0.25, %v1832_v60 }
 0xf33   :  { %3336 = vtanh.f32 %v1872_v12  ;;  %v1871_v3 = vmul.f32 0.02, %v1863_v37  ;;  %v3156_v38 = vpop.f32.mrf.mxu0 }
 0xf34   :  { %v1866_v29 = vmul.f32 0.25, %v3156_v38 }
 0xf35   :  { %3338 = vtanh.f32 %v1871_v3  ;;  %v1842_v61 = vpop.f32.mrf.mxu0 }
 0xf36   :  { %v1874_v62 = vmul.f32 0.02, %v1866_v29  ;;  %v1865_v63 = vmul.f32 0.25, %v1842_v61 }
 0xf38   :  { %3340 = vtanh.f32 %v1874_v62  ;;  %v1873_v39 = vmul.f32 0.02, %v1865_v63 }
 0xf3a   :  { %3342 = vtanh.f32 %v1873_v39 }
 0xf3b   :  { %v3159_v48 = vpop.f32.mrf.mxu0 }
 0xf3c   :  { %v3333_v47 = vpop.eup %3332  ;;  %v1868_v2 = vmul.f32 0.25, %v3159_v48 }
 0xf3d   :  { %v1886_v13 = vmul.f32 50.0, %v3333_v47  ;;  %v1852_v9 = vpop.f32.mrf.mxu0 }
 0xf3e   :  { %v3335_v14 = vpop.eup %3334  ;;  %v1876_v50 = vmul.f32 0.02, %v1868_v2  ;;  %v1867_v16 = vmul.f32 0.25, %v1852_v9 }
 0xf3f   :  { %v1894_v19 = vadd.f32 %v3416_v18, %v1886_v13  ;;  %v1885_v20 = vmul.f32 50.0, %v3335_v14 }
 0xf40   :  { %v3337_v21 = vpop.eup %3336  ;;  %3344 = vtanh.f32 %v1876_v50  ;;  %v1875_v59 = vmul.f32 0.02, %v1867_v16 }
 0xf41   :  { %v1903_v4 = vmul.f32 1.442695, %v1894_v19  ;;  %v1893_v5 = vadd.f32 %v3417_v6, %v1885_v20  ;;  %v1888_v23 = vmul.f32 50.0, %v3337_v21 }
 0xf42   :  { %v3339_v24 = vpop.eup %3338  ;;  %3346 = vtanh.f32 %v1875_v59 }
 0xf43   :  { %3348 = vpow2.f32 %v1903_v4  ;;  %v1901_v25 = vmul.f32 1.442695, %v1893_v5  ;;  %v1896_v28 = vadd.f32 %v3418_v26, %v1888_v23  ;;  %v1887_v30 = vmul.f32 50.0, %v3339_v24 }
 0xf45   :  { %v3341_v31 = vpop.eup %3340  ;;  %3350 = vpow2.f32 %v1901_v25  ;;  %v1907_v35 = vmul.f32 1.442695, %v1896_v28  ;;  %v1895_v36 = vadd.f32 %v3419_v40, %v1887_v30 }
 0xf46   :  { %v1890_v42 = vmul.f32 50.0, %v3341_v31 }
 0xf47   :  { %v3343_v8 = vpop.eup %3342  ;;  %3352 = vpow2.f32 %v1907_v35  ;;  %v1905_v11 = vmul.f32 1.442695, %v1895_v36 }
 0xf48   :  { %v1898_v32 = vadd.f32 %v3416_v18, %v1890_v42  ;;  %v1889_v33 = vmul.f32 50.0, %v3343_v8 }
 0xf49   :  { %3354 = vpow2.f32 %v1905_v11 }
 0xf4a   :  { %v1911_v27 = vmul.f32 1.442695, %v1898_v32  ;;  %v1897_v44 = vadd.f32 %v3417_v6, %v1889_v33 }
 0xf4c   :  { %3356 = vpow2.f32 %v1911_v27  ;;  %v1909_v34 = vmul.f32 1.442695, %v1897_v44 }
 0xf4d   :  { %v3345_v7 = vpop.eup %3344 }
 0xf4e   :  { %v1892_v49 = vmul.f32 50.0, %v3345_v7  ;;  %3358 = vpow2.f32 %v1909_v34  ;;  %v2787_v34 = vld [vmem:[%s4911_s8 + $0xb8] sm:$0xff]  ;;  %v2786_v7 = vld [vmem:[%s4911_s8 + $0xb0] sm:$0xff] }
 0xf4f   :  { %v3347_v10 = vpop.eup %3346  ;;  %3180 = vmatprep.subr.mxu0 %v2787_v34 }
 0xf50   :  { %v4515_v22 = vpop.eup %3348  ;;  %v1900_v43 = vadd.f32 %v3418_v26, %v1892_v49  ;;  %v1891_v17 = vmul.f32 50.0, %v3347_v10  ;;  %3181 = vmatpush3.msra.mxu0 %v2787_v34  ;;  %v2785_v10 = vld [vmem:[%s4911_s8 + $0xa8] sm:$0xff] }
 0xf51   :  { %v1920_v15 = vsel %vm78_vm0, %v4515_v22, 0.0  ;;  %3182 = vmatprep.subr.mxu0 %v2786_v7 }
 0xf52   :  { %v3351_v55 = vpop.eup %3350  ;;  %v1915_v56 = vmul.f32 1.442695, %v1900_v43  ;;  %v1899_v57 = vadd.f32 %v3419_v40, %v1891_v17  ;;  %1921 = vadd.xlane.f32.xlu1 %v1920_v15  ;;  %3183 = vmatpush3.msra.mxu0 %v2786_v7  ;;  %v2784_v43 = vld [vmem:[%s4911_s8 + $0xa0] sm:$0xff]  ;;  %v2783_v17 = vld [vmem:[%s4911_s8 + $0x98] sm:$0xff]  ;;  %v2782_v15 = vld [vmem:[%s4911_s8 + $0x90] sm:$0xff] }
 0xf53   :  { %v1917_v41 = vsel %vm78_vm0, %v3351_v55, 0.0  ;;  %3184 = vmatprep.subr.mxu0 %v2785_v10  ;;  %v2801_v7 = vld [vmem:[%s4912_s9 + $0xa8] sm:$0xff] }
 0xf54   :  { %v4520_v60 = vpop.eup %3352  ;;  %3360 = vpow2.f32 %v1915_v56  ;;  %v1913_v12 = vmul.f32 1.442695, %v1899_v57  ;;  %1918 = vadd.xlane.f32.xlu0 %v1917_v41  ;;  %3185 = vmatpush3.msra.mxu0 %v2785_v10  ;;  %v2780_v56 = vld [vmem:[%s4911_s8 + $0x80] sm:$0xff]  ;;  %v2779_v57 = vld [vmem:[%s4911_s8 + $0x78] sm:$0xff]  ;;  %v2778_v41 = vld [vmem:[%s4911_s8 + $0x70] sm:$0xff] }
 0xf55   :  { %v1926_v37 = vsel %vm78_vm0, %v4520_v60, 0.0  ;;  %3186 = vmatprep.subr.mxu0 %v2784_v43  ;;  %v2799_v10 = vld [vmem:[%s4912_s9 + $0x98] sm:$0xff] }
 0xf56   :  { %3362 = vpow2.f32 %v1913_v12  ;;  %v3355_v3 = vpop.eup %3354  ;;  %3187 = vmatpush3.msra.mxu0 %v2784_v43  ;;  %v2776_v12 = vld [vmem:[%s4911_s8 + $0x60] sm:$0xff]  ;;  %v2797_v43 = vld [vmem:[%s4912_s9 + $0x88] sm:$0xff] }
 0xf57   :  { %v1923_v61 = vsel %vm78_vm0, %v3355_v3, 0.0  ;;  %3188 = vmatprep.subr.mxu0 %v2783_v17 }
 0xf58   :  { %1927 = vadd.xlane.f32.xlu0 %v1926_v37  ;;  %3189 = vmatpush3.msra.mxu0 %v2783_v17 }
 0xf59   :  { %v4524_v38 = vpop.eup %3356  ;;  %3190 = vmatprep.subr.mxu0 %v2782_v15 }
 0xf5a   :  { %v1932_v29 = vsel %vm78_vm0, %v4524_v38, 0.0  ;;  %3191 = vmatpush3.msra.mxu0 %v2782_v15 }
 0xf5b   :  { %1933 = vadd.xlane.f32.xlu1 %v1932_v29  ;;  %v3359_v62 = vpop.eup %3358 }
 0xf5c   :  { %1924 = vadd.xlane.f32.xlu0 %v1923_v61  ;;  %v1929_v63 = vsel %vm78_vm0, %v3359_v62, 0.0 }
 0xf60   :  { %1930 = vadd.xlane.f32.xlu0 %v1929_v63 }
 0xf61   :  { %v3361_v39 = vpop.eup %3360 }
 0xf62   :  { %v1938_v48 = vsel %vm78_vm0, %v3361_v39, 0.0 }
 0xf63   :  { %v3363_v47 = vpop.eup %3362  ;;  %1939 = vadd.xlane.f32.xlu1 %v1938_v48 }
 0xf64   :  { %v1935_v2 = vsel %vm78_vm0, %v3363_v47, 0.0 }
 0xf65   :  { %1936 = vadd.xlane.f32.xlu0 %v1935_v2 }
 0xf74   :  { %1961 = vrot.lane.b32.xlu1 %v4345_v45, %s3466_s13 }
 0xf78   :  { %1959 = vrot.lane.b32.xlu1 %v4335_v0, %s3466_s13 }
 0xf7b   :  { %1963 = vrot.lane.b32.xlu0 %v4339_v1, %s3466_s13 }
 0xf7c   :  { %1957 = vrot.lane.b32.xlu1 %v4337_v52, %s3466_s13 }
 0xfdb   :  { %v1922_v14 = vpop.xlane.xlu1 %1921 }
 0xfdd   :  { %v1919_v13 = vpop.xlane.xlu0 %1918 }
 0xfde   :  { %3364 = vrcp.f32 %v1919_v13 }
 0xfdf   :  { %3366 = vrcp.f32 %v1922_v14 }
 0xfe1   :  { %v1928_v9 = vpop.xlane.xlu0 %1927 }
 0xfe4   :  { %v1934_v16 = vpop.xlane.xlu1 %1933 }
 0xfe5   :  { %v1925_v50 = vpop.xlane.xlu0 %1924 }
 0xfe6   :  { %3368 = vrcp.f32 %v1925_v50 }
 0xfe7   :  { %3370 = vrcp.f32 %v1928_v9 }
 0xfe9   :  { %v1931_v18 = vpop.xlane.xlu0 %1930 }
 0xfea   :  { %3372 = vrcp.f32 %v1931_v18  ;;  %v3420_v18 = vld [vmem:[%s4908_s5] sm:$0xff] }
 0xfeb   :  { %v3365_v19 = vpop.eup %3364  ;;  %3374 = vrcp.f32 %v1934_v16 }
 0xfec   :  { %v1940_v45 = vpop.xlane.xlu1 %1939  ;;  %v1949_v20 = vmul.f32 %v3365_v19, %v3351_v55  ;;  %v3367_v59 = vpop.eup %3366  ;;  %v2781_v55 = vld [vmem:[%s4911_s8 + $0x88] sm:$0xff] }
 0xfed   :  { %v1950_v5 = vmul.f32 %v3367_v59, %v4515_v22  ;;  %3192 = vmatprep.subr.mxu0 %v2781_v55 }
 0xfee   :  { %3168 = vmatprep.mubr.msk.f32.mxu1 %vm78_vm0, %v1949_v20  ;;  %v1937_v0 = vpop.xlane.xlu0 %1936  ;;  %3193 = vmatpush3.msra.mxu0 %v2781_v55  ;;  %v3421_v20 = vld [vmem:[%s4908_s5 + $0x8] sm:$0xff] }
 0xfef   :  { %3376 = vrcp.f32 %v1937_v0  ;;  %3194 = vmatprep.subr.mxu0 %v2780_v56 }
 0xff0   :  { %v1962_v1 = vpop.permute.xlu1 %1961  ;;  %3378 = vrcp.f32 %v1940_v45  ;;  %3195 = vmatpush3.msra.mxu0 %v2780_v56 }
 0xff1   :  { %3196 = vmatprep.subr.mxu0 %v2779_v57 }
 0xff2   :  { %v1964_v52 = vpop.permute.xlu0 %1963  ;;  %3197 = vmatpush3.msra.mxu0 %v2779_v57 }
 0xff3   :  { %3160 = vmatprep.subr.mxu1 %v1964_v52  ;;  %v3369_v4 = vpop.eup %3368  ;;  %3198 = vmatprep.subr.mxu0 %v2778_v41 }
 0xff4   :  { %3161 = vmatpush3.msra.mxu1 %v1964_v52  ;;  %v1960_v21 = vpop.permute.xlu1 %1959  ;;  %v3371_v23 = vpop.eup %3370  ;;  %v1951_v24 = vmul.f32 %v3369_v4, %v3355_v3  ;;  %3199 = vmatpush3.msra.mxu0 %v2778_v41 }
 0xff5   :  { %3162 = vmatprep.subr.mxu1 %v1962_v1  ;;  %v1952_v26 = vmul.f32 %v3371_v23, %v4520_v60  ;;  %v2777_v60 = vld [vmem:[%s4911_s8 + $0x68] sm:$0xff]  ;;  %v3422_v23 = vld [vmem:[%s4908_s5 + $0x10] sm:$0xff] }
 0xff6   :  { %3163 = vmatpush3.msra.mxu1 %v1962_v1  ;;  %3200 = vmatprep.subr.mxu0 %v2777_v60 }
 0xff7   :  { %3164 = vmatprep.subr.mxu1 %v1960_v21  ;;  %v3373_v25 = vpop.eup %3372  ;;  %3201 = vmatpush3.msra.mxu0 %v2777_v60  ;;  %v2796_v60 = vld [vmem:[%s4912_s9 + $0x80] sm:$0xff] }
 0xff8   :  { %3165 = vmatpush3.msra.mxu1 %v1960_v21  ;;  %v1958_v6 = vpop.permute.xlu1 %1957  ;;  %v3375_v28 = vpop.eup %3374  ;;  %v1953_v30 = vmul.f32 %v3373_v25, %v3359_v62  ;;  %3202 = vmatprep.subr.mxu0 %v2776_v12  ;;  %v3423_v25 = vld [vmem:[%s4908_s5 + $0x18] sm:$0xff] }
 0xff9   :  { %3166 = vmatprep.subr.mxu1 %v1958_v6  ;;  %v1954_v35 = vmul.f32 %v3375_v28, %v4524_v38  ;;  %3203 = vmatpush3.msra.mxu0 %v2776_v12 }
 0xffa   :  { %3167 = vmatpush3.msra.mxu1 %v1958_v6  ;;  %2575 = vmatprep.subr.mxu0 %v3468_v54 }
 0xffb   :  { %3169 = vmatmul.mubr.msk.f32.vlgmr.msra.gmra.mxu1 %vm78_vm0, %v1950_v5 }
 0xffc   :  { %3171 = vmatprep.mubr.msk.f32.mxu1 %vm78_vm0, %v1951_v24  ;;  %v3377_v31 = vpop.eup %3376 }
 0xffd   :  { %v3379_v40 = vpop.eup %3378  ;;  %v1955_v36 = vmul.f32 %v3377_v31, %v3363_v47 }
 0xffe   :  { %v1956_v42 = vmul.f32 %v3379_v40, %v3361_v39 }
 0xfff   :  { %3172 = vmatmul.mubr.msk.f32.gmra.mxu1 %vm78_vm0, %v1952_v26 }
0x1000   :  { %3174 = vmatprep.mubr.msk.f32.mxu1 %vm78_vm0, %v1953_v30 }
0x1003   :  { %3175 = vmatmul.mubr.msk.f32.gmra.mxu1 %vm78_vm0, %v1954_v35 }
0x1004   :  { %3177 = vmatprep.mubr.msk.f32.mxu1 %vm78_vm0, %v1955_v36 }
0x1007   :  { %3178 = vmatmul.mubr.msk.f32.gmra.mxu1 %vm78_vm0, %v1956_v42 }
0x10bb   :  { %v3170_v8 = vpop.f32.mrf.mxu1 }
0x10bd   :  { %v2059_v11 = vpop.f32.mrf.mxu1 }
0x10bf   :  { %v3173_v32 = vpop.f32.mrf.mxu1 }
0x10c1   :  { %v2069_v33 = vpop.f32.mrf.mxu1 }
0x10c3   :  { %v3176_v27 = vpop.f32.mrf.mxu1 }
0x10c4   :  { %2104 = vrot.lane.b32.xlu1 %v3176_v27, %s3467_s14 }
0x10c5   :  { %v2079_v44 = vpop.f32.mrf.mxu1 }
0x10c6   :  { %2102 = vrot.lane.b32.xlu0 %v2079_v44, %s3467_s14 }
0x10c7   :  { %v3179_v49 = vpop.f32.mrf.mxu1 }
0x10c8   :  { %2108 = vrot.lane.b32.xlu1 %v3179_v49, %s3467_s14  ;;  %v2800_v49 = vld [vmem:[%s4912_s9 + $0xa0] sm:$0xff] }
0x10c9   :  { %v2089_v22 = vpop.f32.mrf.mxu1 }
0x10ca   :  { %2106 = vrot.lane.b32.xlu0 %v2089_v22, %s3467_s14  ;;  %v2798_v22 = vld [vmem:[%s4912_s9 + $0x90] sm:$0xff] }
0x1136   :  { %v2105_v37 = vpop.permute.xlu1 %2104 }
0x1137   :  { %v2115_v3 = vsel %vm440_vm4, %v3170_v8, %v2105_v37  ;;  %v2795_v37 = vld [vmem:[%s4912_s9 + $0x78] sm:$0xff] }
0x1138   :  { %v2103_v38 = vpop.permute.xlu0 %2102  ;;  %2124 = vrot.lane.b32.xlu1 %v2115_v3, %s3458_s17 }
0x1139   :  { %v2114_v29 = vsel %vm440_vm4, %v2059_v11, %v2103_v38  ;;  %v2794_v38 = vld [vmem:[%s4912_s9 + $0x70] sm:$0xff] }
0x113a   :  { %2122 = vrot.lane.b32.xlu0 %v2114_v29, %s3458_s17  ;;  %v2109_v61 = vpop.permute.xlu1 %2108 }
0x113b   :  { %v2117_v63 = vsel %vm440_vm4, %v3173_v32, %v2109_v61  ;;  %v2793_v61 = vld [vmem:[%s4912_s9 + $0x68] sm:$0xff] }
0x113c   :  { %2136 = vrot.lane.b32.xlu1 %v2115_v3, %s3459_s18  ;;  %v2107_v62 = vpop.permute.xlu0 %2106 }
0x113d   :  { %v2116_v39 = vsel %vm440_vm4, %v2069_v33, %v2107_v62 }
0x113e   :  { %2134 = vrot.lane.b32.xlu0 %v2114_v29, %s3459_s18 }
0x1140   :  { %2128 = vrot.lane.b32.xlu1 %v2117_v63, %s3458_s17 }
0x1142   :  { %2126 = vrot.lane.b32.xlu0 %v2116_v39, %s3458_s17 }
0x1144   :  { %2140 = vrot.lane.b32.xlu1 %v2117_v63, %s3459_s18 }
0x1146   :  { %2138 = vrot.lane.b32.xlu0 %v2116_v39, %s3459_s18 }
0x11aa   :  { %v2125_v48 = vpop.permute.xlu1 %2124 }
0x11ab   :  { %v2147_v13 = vsel %vm78_vm0, %v2115_v3, %v2125_v48 }
0x11ac   :  { %v2123_v47 = vpop.permute.xlu0 %2122 }
0x11ad   :  { %v2146_v9 = vsel %vm78_vm0, %v2114_v29, %v2123_v47 }
0x11ae   :  { %v2137_v2 = vpop.permute.xlu1 %2136 }
0x11af   :  { %v2151_v14 = vsel %vm140_vm1, %v2147_v13, %v2137_v2 }
0x11b0   :  { %v2135_v50 = vpop.permute.xlu0 %2134  ;;  %v2155_v0 = vmul.f32 %v3421_v20, %v2151_v14 }
0x11b1   :  { %v2150_v16 = vsel %vm140_vm1, %v2146_v9, %v2135_v50 }
0x11b2   :  { %v2154_v19 = vmul.f32 %v3420_v18, %v2150_v16  ;;  %v2129_v45 = vpop.permute.xlu1 %2128 }
0x11b3   :  { %v2149_v21 = vsel %vm78_vm0, %v2117_v63, %v2129_v45 }
0x11b4   :  { %3204 = vmatprep.mubr.msk.f32.mxu0 %vm161_vm2, %v2154_v19  ;;  %v2127_v1 = vpop.permute.xlu0 %2126 }
0x11b5   :  { %3205 = vmatmul.mubr.msk.f32.vlgmr.msra.gmra.mxu0 %vm161_vm2, %v2155_v0  ;;  %v2148_v59 = vsel %vm78_vm0, %v2116_v39, %v2127_v1  ;;  %v2792_v39 = vld [vmem:[%s4912_s9 + $0x60] sm:$0xff] }
0x11b6   :  { %v2141_v52 = vpop.permute.xlu1 %2140 }
0x11b7   :  { %v2153_v4 = vsel %vm140_vm1, %v2149_v21, %v2141_v52  ;;  %v3424_v52 = vld [vmem:[%s4907_s4] sm:$0xff] }
0x11b8   :  { %v2139_v6 = vpop.permute.xlu0 %2138  ;;  %v2157_v26 = vmul.f32 %v3423_v25, %v2153_v4 }
0x11b9   :  { %v2152_v5 = vsel %vm140_vm1, %v2148_v59, %v2139_v6 }
0x11ba   :  { %v2156_v24 = vmul.f32 %v3422_v23, %v2152_v5  ;;  %v3425_v5 = vld [vmem:[%s4907_s4 + $0x8] sm:$0xff] }
0x11bc   :  { %3207 = vmatprep.mubr.msk.f32.mxu0 %vm161_vm2, %v2156_v24 }
0x11bd   :  { %3208 = vmatmul.mubr.msk.f32.gmra.mxu0 %vm161_vm2, %v2157_v26 }
0x1275   :  { %v3206_v28 = vpop.f32.mrf.mxu0 }
0x1276   :  { %v4629_v30 = vadd.f32 %v3206_v28, %v4253_v53 }
0x1277   :  { %v2249_v31 = vpop.f32.mrf.mxu0 }
0x1278   :  { %v2273_v35 = vmul.f32 %v4629_v30, %v4629_v30  ;;  %v4634_v40 = vadd.f32 %v2249_v31, %v4248_v46  ;;  %v3426_v31 = vld [vmem:[%s4907_s4 + $0x10] sm:$0xff] }
0x127a   :  { %v2272_v36 = vmul.f32 %v4634_v40, %v4634_v40  ;;  %v2279_v42 = vsel %vm78_vm0, %v2273_v35, 0.0 }
0x127b   :  { %2280 = vadd.xlane.f32.xlu1 %v2279_v42 }
0x127c   :  { %v2276_v8 = vsel %vm78_vm0, %v2272_v36, 0.0 }
0x127d   :  { %2277 = vadd.xlane.f32.xlu0 %v2276_v8  ;;  %v3209_v11 = vpop.f32.mrf.mxu0  ;;  %v3427_v8 = vld [vmem:[%s4907_s4 + $0x18] sm:$0xff] }
0x127e   :  { %v4641_v53 = vadd.f32 %v3209_v11, %v4265_v51  ;;  %v2803_v51 = vld [vmem:[%s4912_s9 + $0xb8] sm:$0xff] }
0x127f   :  { %v2259_v32 = vpop.f32.mrf.mxu0  ;;  %3210 = vmatprep.subr.mxu1 %v2803_v51 }
0x1280   :  { %v4644_v33 = vadd.f32 %v2259_v32, %v4260_v58  ;;  %v2275_v44 = vmul.f32 %v4641_v53, %v4641_v53  ;;  %v2802_v58 = vld [vmem:[%s4912_s9 + $0xb0] sm:$0xff]  ;;  %3211 = vmatpush3.msra.mxu1 %v2803_v51  ;;  %v2820_v51 = vld [vmem:[%s4913_s10 + $0x120] sm:$0xff] }
0x1281   :  { %3212 = vmatprep.subr.mxu1 %v2802_v58 }
0x1282   :  { %v2274_v46 = vmul.f32 %v4644_v33, %v4644_v33  ;;  %v2285_v34 = vsel %vm78_vm0, %v2275_v44, 0.0  ;;  %3213 = vmatpush3.msra.mxu1 %v2802_v58  ;;  %v2822_v44 = vld [vmem:[%s4913_s10 + $0x130] sm:$0xff]  ;;  %v2819_v58 = vld [vmem:[%s4913_s10 + $0x118] sm:$0xff] }
0x1283   :  { %3214 = vmatprep.subr.mxu1 %v2801_v7 }
0x1284   :  { %v2282_v27 = vsel %vm78_vm0, %v2274_v46, 0.0  ;;  %3215 = vmatpush3.msra.mxu1 %v2801_v7 }
0x1285   :  { %2283 = vadd.xlane.f32.xlu0 %v2282_v27  ;;  %3216 = vmatprep.subr.mxu1 %v2800_v49  ;;  %v2823_v27 = vld [vmem:[%s4913_s10 + $0x138] sm:$0xff] }
0x1286   :  { %3217 = vmatpush3.msra.mxu1 %v2800_v49  ;;  %2576 = vmatpush1.msra.mxu0 %v2823_v27  ;;  %v2818_v49 = vld [vmem:[%s4913_s10 + $0x110] sm:$0xff] }
0x1287   :  { %3218 = vmatprep.subr.mxu1 %v2799_v10  ;;  %2577 = vmatprep.subr.mxu0 %v3468_v54 }
0x1288   :  { %3219 = vmatpush3.msra.mxu1 %v2799_v10  ;;  %2578 = vmatpush1.msra.mxu0 %v2822_v44 }
0x1289   :  { %2286 = vadd.xlane.f32.xlu0 %v2285_v34  ;;  %3220 = vmatprep.subr.mxu1 %v2798_v22  ;;  %v2821_v34 = vld [vmem:[%s4913_s10 + $0x128] sm:$0xff] }
0x128a   :  { %3221 = vmatpush3.msra.mxu1 %v2798_v22  ;;  %2579 = vmatprep.subr.mxu0 %v3468_v54  ;;  %v2817_v22 = vld [vmem:[%s4913_s10 + $0x108] sm:$0xff] }
0x128b   :  { %3222 = vmatprep.subr.mxu1 %v2797_v43  ;;  %2580 = vmatpush1.msra.mxu0 %v2821_v34  ;;  %v3428_v34 = vld [vmem:[%s4909_s6 + $0x8] sm:$0xff] }
0x128c   :  { %3223 = vmatpush3.msra.mxu1 %v2797_v43  ;;  %2581 = vmatprep.subr.mxu0 %v3468_v54  ;;  %v2816_v43 = vld [vmem:[%s4913_s10 + $0x100] sm:$0xff] }
0x128d   :  { %3224 = vmatprep.subr.mxu1 %v2796_v60  ;;  %2582 = vmatpush1.msra.mxu0 %v2820_v51 }
0x128e   :  { %3225 = vmatpush3.msra.mxu1 %v2796_v60  ;;  %2583 = vmatprep.subr.mxu0 %v3468_v54  ;;  %v2809_v60 = vld [vmem:[%s4913_s10 + $0xc8] sm:$0xff] }
0x128f   :  { %3226 = vmatprep.subr.mxu1 %v2795_v37  ;;  %2584 = vmatpush1.msra.mxu0 %v2819_v58 }
0x1290   :  { %3227 = vmatpush3.msra.mxu1 %v2795_v37  ;;  %2585 = vmatprep.subr.mxu0 %v3468_v54  ;;  %v2831_v37 = vld [vmem:[%s4913_s10 + $0x178] sm:$0xff] }
0x1291   :  { %3228 = vmatprep.subr.mxu1 %v2794_v38  ;;  %2586 = vmatpush1.msra.mxu0 %v2818_v49 }
0x1292   :  { %3229 = vmatpush3.msra.mxu1 %v2794_v38  ;;  %2587 = vmatprep.subr.mxu0 %v3468_v54  ;;  %v2829_v38 = vld [vmem:[%s4913_s10 + $0x168] sm:$0xff] }
0x1293   :  { %3230 = vmatprep.subr.mxu1 %v2793_v61  ;;  %2588 = vmatpush1.msra.mxu0 %v2817_v22 }
0x1294   :  { %3231 = vmatpush3.msra.mxu1 %v2793_v61  ;;  %2589 = vmatprep.subr.mxu0 %v3468_v54  ;;  %v2827_v61 = vld [vmem:[%s4913_s10 + $0x158] sm:$0xff] }
0x1295   :  { %3232 = vmatprep.subr.mxu1 %v2792_v39  ;;  %2590 = vmatpush1.msra.mxu0 %v2816_v43 }
0x1296   :  { %3233 = vmatpush3.msra.mxu1 %v2792_v39  ;;  %2591 = vmatprep.subr.mxu0 %v3468_v54 }
0x1304   :  { %v2281_v17 = vpop.xlane.xlu1 %2280 }
0x1305   :  { %v2289_v15 = vmul.f32 0.03125, %v2281_v17  ;;  %v2815_v17 = vld [vmem:[%s4913_s10 + $0xf8] sm:$0xff] }
0x1306   :  { %v2278_v55 = vpop.xlane.xlu0 %2277  ;;  %2592 = vmatpush1.msra.mxu0 %v2815_v17 }
0x1307   :  { %v2293_v56 = vadd.f32 1e-06, %v2289_v15  ;;  %v2288_v57 = vmul.f32 0.03125, %v2278_v55  ;;  %v2814_v15 = vld [vmem:[%s4913_s10 + $0xf0] sm:$0xff]  ;;  %2593 = vmatprep.subr.mxu0 %v3468_v54  ;;  %v2813_v55 = vld [vmem:[%s4913_s10 + $0xe8] sm:$0xff] }
0x1308   :  { %2594 = vmatpush1.msra.mxu0 %v2814_v15 }
0x1309   :  { %3380 = vrsqrt.f32 %v2293_v56  ;;  %v2292_v41 = vadd.f32 1e-06, %v2288_v57  ;;  %2595 = vmatprep.subr.mxu0 %v3468_v54  ;;  %v2812_v56 = vld [vmem:[%s4913_s10 + $0xe0] sm:$0xff]  ;;  %v2811_v57 = vld [vmem:[%s4913_s10 + $0xd8] sm:$0xff] }
0x130a   :  { %2596 = vmatpush1.msra.mxu0 %v2813_v55 }
0x130b   :  { %3382 = vrsqrt.f32 %v2292_v41  ;;  %2597 = vmatprep.subr.mxu0 %v3468_v54  ;;  %v2810_v41 = vld [vmem:[%s4913_s10 + $0xd0] sm:$0xff] }
0x130c   :  { %2598 = vmatpush1.msra.mxu0 %v2812_v56 }
0x130d   :  { %2599 = vmatprep.subr.mxu0 %v3468_v54 }
0x130e   :  { %v2284_v12 = vpop.xlane.xlu0 %2283  ;;  %2600 = vmatpush1.msra.mxu0 %v2811_v57 }
0x130f   :  { %v2290_v3 = vmul.f32 0.03125, %v2284_v12  ;;  %2601 = vmatprep.subr.mxu0 %v3468_v54  ;;  %v2808_v12 = vld [vmem:[%s4913_s10 + $0xc0] sm:$0xff] }
0x1310   :  { %2602 = vmatpush1.msra.mxu0 %v2810_v41  ;;  %v3429_v41 = vld [vmem:[%s4909_s6] sm:$0xff] }
0x1311   :  { %v2294_v29 = vadd.f32 1e-06, %v2290_v3  ;;  %2603 = vmatprep.subr.mxu0 %v3468_v54  ;;  %v2830_v3 = vld [vmem:[%s4913_s10 + $0x170] sm:$0xff] }
0x1312   :  { %v2287_v62 = vpop.xlane.xlu0 %2286  ;;  %2604 = vmatpush1.msra.mxu0 %v2809_v60 }
0x1313   :  { %3384 = vrsqrt.f32 %v2294_v29  ;;  %v2291_v63 = vmul.f32 0.03125, %v2287_v62  ;;  %2605 = vmatprep.subr.mxu0 %v3468_v54  ;;  %v2828_v29 = vld [vmem:[%s4913_s10 + $0x160] sm:$0xff] }
0x1314   :  { %2606 = vmatpush1.msra.mxu0 %v2808_v12 }
0x1315   :  { %v2295_v48 = vadd.f32 1e-06, %v2291_v63  ;;  %2623 = vmatprep.subr.mxu0 %v3468_v54 }
0x1316   :  { %v3381_v47 = vpop.eup %3380  ;;  %2624 = vmatpush2.msra.mxu0 %v2831_v37  ;;  %v3431_v37 = vld [vmem:[%s4909_s6 + $0x10] sm:$0xff] }
0x1317   :  { %3386 = vrsqrt.f32 %v2295_v48  ;;  %v2301_v2 = vmul.f32 %v3381_v47, %v4629_v30  ;;  %2625 = vmatprep.subr.mxu0 %v3468_v54 }
0x1318   :  { %v3383_v13 = vpop.eup %3382  ;;  %2626 = vmatpush2.msra.mxu0 %v2830_v3 }
0x1319   :  { %2310 = vrot.lane.b32.xlu1 %v2301_v2, %s3458_s17  ;;  %v2300_v9 = vmul.f32 %v3383_v13, %v4634_v40  ;;  %2627 = vmatprep.subr.mxu0 %v3468_v54 }
0x131a   :  { %2628 = vmatpush2.msra.mxu0 %v2829_v38  ;;  %v3432_v38 = vld [vmem:[%s4909_s6 + $0x28] sm:$0xff] }
0x131b   :  { %2308 = vrot.lane.b32.xlu0 %v2300_v9, %s3458_s17  ;;  %2629 = vmatprep.subr.mxu0 %v3468_v54 }
0x131c   :  { %2630 = vmatpush2.msra.mxu0 %v2828_v29 }
0x131d   :  { %2320 = vrot.lane.b32.xlu1 %v2300_v9, %s3459_s18  ;;  %2631 = vmatprep.subr.mxu0 %v3468_v54 }
0x131e   :  { %2632 = vmatpush2.msra.mxu0 %v2827_v61 }
0x131f   :  { %2633 = vmatprep.subr.mxu0 %v3468_v54 }
0x1320   :  { %v3385_v14 = vpop.eup %3384 }
0x1321   :  { %2322 = vrot.lane.b32.xlu1 %v2301_v2, %s3459_s18  ;;  %v2302_v50 = vmul.f32 %v3385_v14, %v4644_v33 }
0x1323   :  { %2312 = vrot.lane.b32.xlu0 %v2302_v50, %s3458_s17 }
0x1324   :  { %v3387_v16 = vpop.eup %3386 }
0x1325   :  { %v2303_v18 = vmul.f32 %v3387_v16, %v4641_v53 }
0x1327   :  { %2324 = vrot.lane.b32.xlu0 %v2302_v50, %s3459_s18  ;;  %2314 = vrot.lane.b32.xlu1 %v2303_v18, %s3458_s17 }
0x132b   :  { %2326 = vrot.lane.b32.xlu1 %v2303_v18, %s3459_s18 }
0x138b   :  { %v2311_v19 = vpop.permute.xlu1 %2310 }
0x138c   :  { %v2333_v59 = vsel %vm78_vm0, %v2301_v2, %v2311_v19 }
0x138d   :  { %v2309_v45 = vpop.permute.xlu0 %2308 }
0x138e   :  { %v2332_v20 = vsel %vm78_vm0, %v2300_v9, %v2309_v45 }
0x138f   :  { %v2321_v0 = vpop.permute.xlu1 %2320 }
0x1390   :  { %v2336_v1 = vsel %vm140_vm1, %v2332_v20, %v2321_v0 }
0x1391   :  { %v2340_v21 = vmul.f32 %v3424_v52, %v2336_v1 }
0x1393   :  { %v2323_v4 = vpop.permute.xlu1 %2322  ;;  %3234 = vmatprep.mubr.msk.f32.mxu1 %vm161_vm2, %v2340_v21 }
0x1394   :  { %v2337_v6 = vsel %vm140_vm1, %v2333_v59, %v2323_v4 }
0x1395   :  { %v2341_v23 = vmul.f32 %v3425_v5, %v2337_v6  ;;  %v2313_v24 = vpop.permute.xlu0 %2312  ;;  %v2826_v6 = vld [vmem:[%s4913_s10 + $0x150] sm:$0xff] }
0x1396   :  { %v2334_v25 = vsel %vm78_vm0, %v2302_v50, %v2313_v24  ;;  %2634 = vmatpush2.msra.mxu0 %v2826_v6  ;;  %v2825_v24 = vld [vmem:[%s4913_s10 + $0x148] sm:$0xff] }
0x1397   :  { %3235 = vmatmul.mubr.msk.f32.vlgmr.msra.gmra.mxu1 %vm161_vm2, %v2341_v23  ;;  %2635 = vmatprep.subr.mxu0 %v3468_v54 }
0x1398   :  { %2636 = vmatpush2.msra.mxu0 %v2825_v24 }
0x1399   :  { %v2315_v26 = vpop.permute.xlu1 %2314  ;;  %v2325_v28 = vpop.permute.xlu0 %2324  ;;  %2637 = vmatprep.subr.mxu0 %v3468_v54 }
0x139a   :  { %v2338_v30 = vsel %vm140_vm1, %v2334_v25, %v2325_v28  ;;  %v2335_v40 = vsel %vm78_vm0, %v2303_v18, %v2315_v26  ;;  %v2824_v26 = vld [vmem:[%s4913_s10 + $0x140] sm:$0xff] }
0x139b   :  { %v2342_v35 = vmul.f32 %v3426_v31, %v2338_v30  ;;  %2638 = vmatpush2.msra.mxu0 %v2824_v26 }
0x139d   :  { %v2327_v36 = vpop.permute.xlu1 %2326  ;;  %3237 = vmatprep.mubr.msk.f32.mxu1 %vm161_vm2, %v2342_v35 }
0x139e   :  { %v2339_v42 = vsel %vm140_vm1, %v2335_v40, %v2327_v36 }
0x139f   :  { %v2343_v11 = vmul.f32 %v3427_v8, %v2339_v42 }
0x13a1   :  { %3238 = vmatmul.mubr.msk.f32.gmra.mxu1 %vm161_vm2, %v2343_v11 }
0x1457   :  { %v4724_v32 = vpop.f32.mrf.mxu1 }
0x1458   :  { %2496 = vrot.lane.b32.xlu1 %v4724_v32, %s3459_s18  ;;  %v2455_v62 = vmul.f32 %v4724_v32, %v4724_v32 }
0x1459   :  { %v4728_v46 = vpop.f32.mrf.mxu1 }
0x145a   :  { %2494 = vrot.lane.b32.xlu0 %v4728_v46, %s3459_s18  ;;  %v2454_v63 = vmul.f32 %v4728_v46, %v4728_v46  ;;  %v2459_v39 = vmul.f32 %v4724_v32, %v2455_v62 }
0x145c   :  { %v2458_v48 = vmul.f32 %v2454_v63, %v4728_v46  ;;  %v2463_v47 = vmul.f32 0.044715, %v2459_v39  ;;  %v3433_v39 = vld [vmem:[%s4909_s6 + $0x20] sm:$0xff] }
0x145e   :  { %v2462_v2 = vmul.f32 0.044715, %v2458_v48  ;;  %v2467_v9 = vadd.f32 %v4724_v32, %v2463_v47  ;;  %v3434_v47 = vld [vmem:[%s4909_s6 + $0x38] sm:$0xff] }
0x1460   :  { %v2466_v50 = vadd.f32 %v2462_v2, %v4728_v46  ;;  %v2471_v19 = vmul.f32 0.7978846, %v2467_v9  ;;  %v3435_v9 = vld [vmem:[%s4909_s6 + $0x30] sm:$0xff] }
0x1461   :  { %v4750_v7 = vpop.f32.mrf.mxu1 }
0x1462   :  { %2500 = vrot.lane.b32.xlu1 %v4750_v7, %s3459_s18  ;;  %v2457_v13 = vmul.f32 %v4750_v7, %v4750_v7  ;;  %v2470_v20 = vmul.f32 0.7978846, %v2466_v50  ;;  %3388 = vtanh.f32 %v2471_v19 }
0x1463   :  { %v4758_v10 = vpop.f32.mrf.mxu1 }
0x1464   :  { %2498 = vrot.lane.b32.xlu0 %v4758_v10, %s3459_s18  ;;  %v2456_v14 = vmul.f32 %v4758_v10, %v4758_v10  ;;  %v2461_v16 = vmul.f32 %v4750_v7, %v2457_v13  ;;  %3390 = vtanh.f32 %v2470_v20 }
0x1466   :  { %v2460_v18 = vmul.f32 %v2456_v14, %v4758_v10  ;;  %v2465_v45 = vmul.f32 0.044715, %v2461_v16 }
0x1468   :  { %v2464_v0 = vmul.f32 0.044715, %v2460_v18  ;;  %v2469_v1 = vadd.f32 %v4750_v7, %v2465_v45 }
0x146a   :  { %v2468_v52 = vadd.f32 %v2464_v0, %v4758_v10  ;;  %v2473_v21 = vmul.f32 0.7978846, %v2469_v1 }
0x146c   :  { %v2472_v59 = vmul.f32 0.7978846, %v2468_v52  ;;  %3392 = vtanh.f32 %v2473_v21 }
0x146e   :  { %3394 = vtanh.f32 %v2472_v59 }
0x146f   :  { %v3389_v4 = vpop.eup %3388 }
0x1470   :  { %v2479_v23 = vadd.f32 1.0, %v3389_v4 }
0x1471   :  { %v3391_v5 = vpop.eup %3390 }
0x1472   :  { %v2478_v25 = vadd.f32 1.0, %v3391_v5  ;;  %v2483_v28 = vmul.f32 0.5, %v2479_v23 }
0x1474   :  { %v2482_v30 = vmul.f32 0.5, %v2478_v25  ;;  %v2487_v35 = vmul.f32 %v4724_v32, %v2483_v28  ;;  %v2681_v28 = vlaneseq }
0x1476   :  { %v2486_v8 = vmul.f32 %v2482_v30, %v4728_v46 }
0x1479   :  { %v3393_v31 = vpop.eup %3392 }
0x147a   :  { %v2481_v11 = vadd.f32 1.0, %v3393_v31  ;;  %v2682_v31 = vshrl.u32 %v2681_v28, 7 }
0x147b   :  { %v3395_v40 = vpop.eup %3394 }
0x147c   :  { %v2480_v54 = vadd.f32 1.0, %v3395_v40  ;;  %v2485_v58 = vmul.f32 0.5, %v2481_v11  ;;  %v2683_v40 = vsub.s32 0, %v2682_v31 }
0x147e   :  { %v2484_v32 = vmul.f32 0.5, %v2480_v54  ;;  %v2489_v49 = vmul.f32 %v4750_v7, %v2485_v58  ;;  %v3430_v7 = vld [vmem:[%s4909_s6 + $0x18] sm:$0xff] }
0x1480   :  { %v2488_v43 = vmul.f32 %v2484_v32, %v4758_v10 }
0x14ca   :  { %v2497_v36 = vpop.permute.xlu1 %2496 }
0x14cb   :  { %v2507_v42 = vmul.f32 %v2497_v36, %v2487_v35 }
0x14cc   :  { %v2495_v27 = vpop.permute.xlu0 %2494 }
0x14cd   :  { %v2506_v44 = vmul.f32 %v2495_v27, %v2486_v8  ;;  %2516 = vrot.lane.b32.xlu1 %v2507_v42, %s3459_s18  ;;  %v2533_v10 = vmul.f32 %v3430_v7, %v2507_v42 }
0x14cf   :  { %v2531_v51 = vmul.f32 %v3428_v34, %v2506_v44  ;;  %2514 = vrot.lane.b32.xlu0 %v2506_v44, %s3459_s18 }
0x14d1   :  { %2832 = vmatprep.mubr.msk.f32.mxu0 %vm140_vm1, %v2531_v51 }
0x14d4   :  { %v2501_v46 = vpop.permute.xlu1 %2500 }
0x14d5   :  { %v2509_v22 = vmul.f32 %v2501_v46, %v2489_v49 }
0x14d6   :  { %v2499_v17 = vpop.permute.xlu0 %2498 }
0x14d7   :  { %v2508_v15 = vmul.f32 %v2499_v17, %v2488_v43  ;;  %2520 = vrot.lane.b32.xlu1 %v2509_v22, %s3459_s18  ;;  %v2537_v2 = vmul.f32 %v3434_v47, %v2509_v22 }
0x14d9   :  { %2518 = vrot.lane.b32.xlu0 %v2508_v15, %s3459_s18  ;;  %v2535_v29 = vmul.f32 %v3432_v38, %v2508_v15 }
0x153f   :  { %v2517_v55 = vpop.permute.xlu1 %2516 }
0x1540   :  { %v2527_v12 = vsel %vm140_vm1, %v2507_v42, %v2517_v55 }
0x1541   :  { %v2515_v56 = vpop.permute.xlu0 %2514  ;;  %v2532_v3 = vmul.f32 %v3431_v37, %v2527_v12 }
0x1542   :  { %v2526_v57 = vsel %vm140_vm1, %v2506_v44, %v2515_v56 }
0x1543   :  { %v2530_v60 = vmul.f32 %v3429_v41, %v2526_v57 }
0x1545   :  { %2640 = vmatmul.mubr.f32.vlgmr.msra.gmra.mxu0 %v2530_v60 }
0x1546   :  { %2833 = vmatprep.mubr.msk.f32.mxu0 %vm140_vm1, %v2533_v10 }
0x1549   :  { %2644 = vmatmul.mubr.f32.gmra.mxu0 %v2532_v3  ;;  %v2521_v61 = vpop.permute.xlu1 %2520 }
0x154a   :  { %2834 = vmatprep.mubr.msk.f32.mxu0 %vm140_vm1, %v2535_v29  ;;  %v2529_v13 = vsel %vm140_vm1, %v2509_v22, %v2521_v61 }
0x154b   :  { %v2519_v62 = vpop.permute.xlu0 %2518  ;;  %v2536_v14 = vmul.f32 %v3435_v9, %v2529_v13 }
0x154c   :  { %v2528_v63 = vsel %vm140_vm1, %v2508_v15, %v2519_v62 }
0x154d   :  { %v2534_v48 = vmul.f32 %v3433_v39, %v2528_v63 }
0x154f   :  { %2648 = vmatmul.mubr.f32.gmra.mxu0 %v2534_v48 }
0x1550   :  { %2835 = vmatprep.mubr.msk.f32.mxu0 %vm140_vm1, %v2537_v2 }
0x1553   :  { %2653 = vmatmul.mubr.f32.gmra.mxu0 %v2536_v14 }
0x1605   :  { %v2641_v50 = vpop.f32.mrf.mxu0 }
0x1607   :  { %v2642_v16 = vpop.f32.mrf.mxu0 }
0x1609   :  { %v2645_v18 = vpop.f32.mrf.mxu0 }
0x160b   :  { %v2646_v19 = vpop.f32.mrf.mxu0 }
0x160f   :  { %v2649_v45 = vpop.f32.mrf.mxu0 }
0x1610   :  { %v2658_v20 = vadd.f32 %v2649_v45, %v4644_v33 }
0x1611   :  { %v2651_v0 = vpop.f32.mrf.mxu0 }
0x1612   :  { %v2660_v1 = vmul.f32 %v2658_v20, %v2658_v20 }
0x1613   :  { %v2654_v52 = vpop.f32.mrf.mxu0 }
0x1614   :  { %v2659_v21 = vadd.f32 %v2654_v52, %v4641_v53  ;;  %v2663_v59 = vsel %vm2662_vm5, %v2660_v1, 0.0  ;;  %v2678_v53 = vld [vmem:[%s4914_s11] sm:$0x1] }
0x1615   :  { %2664 = vadd.xlane.f32.xlu0 %v2663_v59  ;;  %v2656_v4 = vpop.f32.mrf.mxu0  ;;  %v2679_v35 = vadd.f32 1.0, %v2678_v53 }
0x1616   :  { %v2661_v6 = vmul.f32 %v2659_v21, %v2659_v21 }
0x1617   :  { %v2684_v36 = vrot.slane %v2679_v35, %v2683_v40 }
0x1618   :  { %v2667_v5 = vsel %vm2666_vm6, %v2661_v6, 0.0 }
0x1619   :  { %2668 = vadd.xlane.f32.xlu1 %v2667_v5 }
0x169e   :  { %v2665_v23 = vpop.xlane.xlu0 %2664 }
0x169f   :  { %v2670_v24 = vmul.f32 0.03125, %v2665_v23 }
0x16a1   :  { %v2672_v25 = vadd.f32 1e-06, %v2670_v24 }
0x16a2   :  { %v2669_v26 = vpop.xlane.xlu1 %2668 }
0x16a3   :  { %3396 = vrsqrt.f32 %v2672_v25  ;;  %v2671_v33 = vmul.f32 0.03125, %v2669_v26 }
0x16a5   :  { %v2673_v30 = vadd.f32 1e-06, %v2671_v33 }
0x16a7   :  { %3398 = vrsqrt.f32 %v2673_v30 }
0x16b0   :  { %v3397_v42 = vpop.eup %3396 }
0x16b1   :  { %v2676_v8 = vmul.f32 %v3397_v42, %v2658_v20 }
0x16b3   :  { %v2686_v11 = vmul.f32 %v2684_v36, %v2676_v8 }
0x16b4   :  { %v3399_v27 = vpop.eup %3398 }
0x16b5   :  { %v2677_v44 = vmul.f32 %v3399_v27, %v2659_v21  ;;  %2688 = vst.msk [vmem:[#allocation2 - $0x4] sm:$0xf0] %vm2662_vm5, %v2686_v11 }
0x16b7   :  { %v2687_v54 = vmul.f32 %v2684_v36, %v2677_v44 }
0x16b9   :  { %2689 = vst.msk [vmem:[#allocation2 + $0x4] sm:$0xf] %vm2666_vm6, %v2687_v54 }
0x16ba   :  { %3447 = shalt.err (!%p3444_p4)
}
0x16bb   :  { %2699 = dma.vmem_to_hbm [thread:$0]  %s2697_s21, 128, %s4915_s12, [#allocation3]  }
0x16bc   :  { %3456 = dma.done.wait [#allocation3], 128  }
0x16bd   :  { %3457 = vsyncadd [#allocation3], 4294967168 }
0x16be   :  { %2703 = vsyncpa [#allocation3], 1 }

</bundles_post_ra>
